<compile_context>
chip_gen: v6e
topology: v6e:2x2x1
jax: 0.10.0
libtpu: 0.0.40
codegen_flags: <defaults>
</compile_context>

<pallas_src>
import jax
import jax.numpy as jnp
from jax.experimental import pallas as pl
from jax.experimental.pallas import tpu as pltpu

LANES = 128  # channel padding target: TPU vreg lane width


def make_fused_kernel(n_layers, nb, H, W, c_pad):
    """Fused stack of n_layers x (conv3x3 stride1 pad1 + ReLU).

    Kernel refs: x_pad, w_0..w_{L-1}, b_0..b_{L-1}, out, act_scratch.
      x_pad: (nb, H+2, W+2, c_pad) bf16, spatial zero halo already applied.
      w_l:   (3, 3*c_pad, c_pad) bf16 with K index = kx*c_pad + cin.
      b_l:   (1, c_pad) f32.
      out:   (nb, H, W, c_pad) f32 (lane-dense).
      act:   (nb, H+2, W+2, c_pad) bf16 scratch for intermediate activations.
    """
    rows = nb * H * W

    def kernel(*refs):
        x_ref = refs[0]
        w_refs = refs[1:1 + n_layers]
        b_refs = refs[1 + n_layers:1 + 2 * n_layers]
        o_ref = refs[1 + 2 * n_layers]
        act_ref = refs[2 + 2 * n_layers]

        # Zero only the 1-px halo border of the activation scratch (the
        # interior is fully overwritten every layer; the input carries its own
        # zero halo from the wrapper).  Unconditional on purpose: with a
        # "parallel" grid axis each TensorCore has its own scratch, so a
        # pl.program_id(0)==0 guard would be unsafe under megacore sharding.
        if n_layers > 1:
            zrow = jnp.zeros((nb, 1, W + 2, c_pad), act_ref.dtype)
            zcol = jnp.zeros((nb, H, 1, c_pad), act_ref.dtype)
            act_ref[:, 0:1, :, :] = zrow
            act_ref[:, H + 1:H + 2, :, :] = zrow
            act_ref[:, 1:H + 1, 0:1, :] = zcol
            act_ref[:, 1:H + 1, W + 1:W + 2, :] = zcol

        for l in range(n_layers):
            src = x_ref if l == 0 else act_ref
            acc = None
            for ky in range(3):
                # Per-ky "im2col" patch built fully in registers: the 3 kx taps
                # (each a full 128-lane slab) are concatenated along lanes, so
                # there is no patch scratch and no masked stores.  The ky
                # offset indexes a non-tiled dim (cheap); kx=1,2 are static
                # sublane-offset reads (load-side only).
                taps = [src[:, ky:ky + H, kx:kx + W, :] for kx in range(3)]
                p = jnp.concatenate(taps, axis=-1).reshape(rows, 3 * c_pad)
                d = jnp.dot(p, w_refs[l][ky],
                            preferred_element_type=jnp.float32)
                acc = d if acc is None else acc + d
            y = jnp.maximum(acc + b_refs[l][...], 0.0)   # bias + ReLU in f32
            if l + 1 < n_layers:
                act_ref[:, 1:H + 1, 1:W + 1, :] = (
                    y.reshape(nb, H, W, c_pad).astype(act_ref.dtype))
            else:
                # Lane-dense (last dim = 128) unmasked f32 store.
                o_ref[...] = y.reshape(nb, H, W, c_pad).astype(o_ref.dtype)

    return kernel


def _multi_tensorcore_chip():
    """True on chips with >1 TensorCore per chip (v7x); False on v5e/v6e."""
    try:
        kind = jax.devices()[0].device_kind.lower().replace(" ", "")
    except Exception:
        return False
    return ("v7" in kind) or ("tpu7" in kind)


def _vmem_limit_bytes(nb, H, W, c_pad, n_layers):
    """Rough VMEM footprint (double-buffered blocks + scratch) with headroom."""
    hp, wp = H + 2, W + 2
    act = nb * hp * wp * c_pad * 2                        # bf16 scratch
    x_blk = 2 * nb * hp * wp * c_pad * 2                  # input (double-buffered)
    w_blk = 2 * n_layers * 9 * c_pad * c_pad * 2          # weights
    b_blk = 2 * n_layers * c_pad * 4                      # biases
    o_blk = 2 * nb * H * W * c_pad * 4                    # f32 output
    live = nb * H * W * (3 * c_pad * 2 + c_pad * 4)       # patch + acc (regs/spill)
    est = act + x_blk + w_blk + b_blk + o_blk + live
    return int(min(max(2 * est, 16 * 1024 * 1024), 48 * 1024 * 1024))


@jax.jit
def concealment_forward(x_nhwc, weights_oihw, biases):
    """Fused n-layer Conv3x3(stride=1, pad=1) + ReLU stack (Concealment.forward).

    x_nhwc:       (N, H, W, C_in) float32
    weights_oihw: list of (C_out_l, C_in_l, 3, 3) float32 (PyTorch layout)
    biases:       list of (C_out_l,) float32
    Returns (N, H, W, C_out_last) float32.
    """
    N, H, W, c_prev = x_nhwc.shape
    n_layers = len(weights_oihw)
    c_pad = LANES

    w_b, b_f = [], []
    for w, b in zip(weights_oihw, biases):
        c_out, c_in, kh, kw = w.shape
        assert (kh, kw) == (3, 3) and c_in == c_prev, "conv chain mismatch"
        assert c_in <= c_pad and c_out <= c_pad, "channels > 128 need C-tiling"
        # (Cout,Cin,3,3) -> (ky,kx,Cin,Cout), zero-pad channels to 128, then
        # (3, 3*128, 128): K index = kx*128 + cin, matching the in-kernel
        # lane-concat order of the three kx taps.
        wk = jnp.transpose(w, (2, 3, 1, 0))
        wk = jnp.pad(wk, ((0, 0), (0, 0), (0, c_pad - c_in), (0, c_pad - c_out)))
        w_b.append(wk.reshape(3, 3 * c_pad, c_pad).astype(jnp.bfloat16))
        b_f.append(jnp.pad(b, (0, c_pad - c_out)).reshape(1, c_pad)
                   .astype(jnp.float32))
        c_prev = c_out
    c_out_last = c_prev

    # bf16 input, zero-padded host-side: +1 px spatial halo (the conv padding)
    # and channels to 128.  The kernel never bulk-zeroes or re-pads anything.
    x_p = jnp.pad(x_nhwc.astype(jnp.bfloat16),
                  ((0, 0), (1, 1), (1, 1), (0, c_pad - x_nhwc.shape[-1])))

    # Batch mapping: keep batch as a parallel grid axis only when each grid
    # step still feeds the MXU >= 512 rows (multi-TC chips at production
    # spatial sizes); otherwise fold batch into the matmul M dim (grid=(1,)).
    split = _multi_tensorcore_chip() and N > 1 and (H * W) >= 512
    nb = 1 if split else N
    grid = (N // nb,)

    kernel = make_fused_kernel(n_layers, nb, H, W, c_pad)

    in_specs = [pl.BlockSpec((nb, H + 2, W + 2, c_pad), lambda n: (n, 0, 0, 0))]
    in_specs += [pl.BlockSpec((3, 3 * c_pad, c_pad), lambda n: (0, 0, 0))
                 for _ in range(n_layers)]
    in_specs += [pl.BlockSpec((1, c_pad), lambda n: (0, 0))
                 for _ in range(n_layers)]

    out = pl.pallas_call(
        kernel,
        out_shape=jax.ShapeDtypeStruct((N, H, W, c_pad), jnp.float32),
        grid=grid,
        in_specs=in_specs,
        out_specs=pl.BlockSpec((nb, H, W, c_pad), lambda n: (n, 0, 0, 0)),
        scratch_shapes=[pltpu.VMEM((nb, H + 2, W + 2, c_pad), jnp.bfloat16)],
        compiler_params=pltpu.CompilerParams(
            dimension_semantics=("parallel",),
            vmem_limit_bytes=_vmem_limit_bytes(nb, H, W, c_pad, n_layers)),
    )(x_p, *w_b, *b_f)
    # TODO(synk): at production spatial sizes (H=W>=128) tile H via the grid
    # with a 1-row halo instead of holding the whole image in one block.
    return out[..., :c_out_last]


def init_block_params(key, c_in, c_out):
    """Deterministic Conv2d init (PyTorch-style kaiming-uniform bounds)."""
    kw, kb = jax.random.split(key)
    bound = (c_in * 9) ** -0.5
    w_oihw = jax.random.uniform(kw, (c_out, c_in, 3, 3), jnp.float32,
                                -bound, bound)
    b = jax.random.uniform(kb, (c_out,), jnp.float32, -bound, bound)
    return w_oihw, b


def reference_forward_nchw(x_nchw, weights_oihw, biases):
    """Pure-JAX NCHW reference matching nn.Conv2d + ReLU, with bf16 rounding
    applied at the same points as the kernel (input, weights, inter-layer
    activations) so only accumulation-order differences remain."""
    f32 = jnp.float32
    y = x_nchw.astype(jnp.bfloat16).astype(f32)
    n_layers = len(weights_oihw)
    for i, (w_oihw, b) in enumerate(zip(weights_oihw, biases)):
        w = w_oihw.astype(jnp.bfloat16).astype(f32)
        y = jax.lax.conv_general_dilated(
            y, w, window_strides=(1, 1), padding=((1, 1), (1, 1)),
            dimension_numbers=("NCHW", "OIHW", "NCHW"))
        y = jnp.maximum(y + b[None, :, None, None].astype(f32), 0.0)
        if i + 1 < n_layers:
            y = y.astype(jnp.bfloat16).astype(f32)
    return y


if __name__ == "__main__":
    # Shapes consistent with the module: batch=2, C_in=C_out=64 (module
    # default), 8x8 spatial, 3 layers.
    N, C_IN, C_OUT, H, W, N_LAYERS = 2, 64, 64, 8, 8, 3

    key = jax.random.PRNGKey(0)
    kx_key, *layer_keys = jax.random.split(key, 1 + N_LAYERS)

    x_nchw = jax.random.normal(kx_key, (N, C_IN, H, W), jnp.float32)
    x_nhwc = jnp.transpose(x_nchw, (0, 2, 3, 1))

    weights, biases = [], []
    c_prev = C_IN
    for lk in layer_keys:
        w_oihw, b = init_block_params(lk, c_prev, C_OUT)
        weights.append(w_oihw)
        biases.append(b)
        c_prev = C_OUT

    out_nhwc = concealment_forward(x_nhwc, weights, biases)
    out_nhwc = jax.block_until_ready(out_nhwc)
    out_nchw = jnp.transpose(out_nhwc, (0, 3, 1, 2))

    ref = reference_forward_nchw(x_nchw, weights, biases)
    assert out_nchw.shape == (N, C_OUT, H, W), out_nchw.shape
    max_err = float(jnp.max(jnp.abs(out_nchw - ref)))
    assert jnp.allclose(out_nchw, ref, atol=2e-2, rtol=2e-2), max_err

    print("KERNEL_OK")
</pallas_src>

<mosaic_0001>
module attributes {stable_mosaic.version = 11 : i64} {
  func.func @kernel(%arg0: i32, %arg1: memref<2x10x10x128xbf16, #tpu.memory_space<vmem>>, %arg2: memref<3x384x128xbf16, #tpu.memory_space<vmem>>, %arg3: memref<3x384x128xbf16, #tpu.memory_space<vmem>>, %arg4: memref<3x384x128xbf16, #tpu.memory_space<vmem>>, %arg5: memref<1x128xf32, #tpu.memory_space<vmem>>, %arg6: memref<1x128xf32, #tpu.memory_space<vmem>>, %arg7: memref<1x128xf32, #tpu.memory_space<vmem>>, %arg8: memref<2x8x8x128xf32, #tpu.memory_space<vmem>>, %arg9: memref<2x10x10x128xbf16, #tpu.memory_space<vmem>>) attributes {dimension_semantics = [#tpu.dimension_semantics<parallel>], iteration_bounds = array<i64: 1>, scalar_prefetch = 0 : i64, scratch_operands = 1 : i64, tpu.core_type = #tpu.core_type<tc>, window_params = [{transform_indices = @transform_0, window_bounds = array<i64: 2, 10, 10, 128>}, {pipeline_mode = #tpu.pipeline_mode<synchronous>, transform_indices = @transform_1, window_bounds = array<i64: 3, 384, 128>}, {pipeline_mode = #tpu.pipeline_mode<synchronous>, transform_indices = @transform_2, window_bounds = array<i64: 3, 384, 128>}, {pipeline_mode = #tpu.pipeline_mode<synchronous>, transform_indices = @transform_3, window_bounds = array<i64: 3, 384, 128>}, {pipeline_mode = #tpu.pipeline_mode<synchronous>, transform_indices = @transform_4, window_bounds = array<i64: 1, 128>}, {pipeline_mode = #tpu.pipeline_mode<synchronous>, transform_indices = @transform_5, window_bounds = array<i64: 1, 128>}, {pipeline_mode = #tpu.pipeline_mode<synchronous>, transform_indices = @transform_6, window_bounds = array<i64: 1, 128>}, {transform_indices = @transform_7, window_bounds = array<i64: 2, 8, 8, 128>}]} {
    %cst = arith.constant 0.000000e+00 : bf16
    %0 = vector.broadcast %cst : bf16 to vector<2x1x10x128xbf16>
    %cst_0 = arith.constant 0.000000e+00 : bf16
    %1 = vector.broadcast %cst_0 : bf16 to vector<2x8x1x128xbf16>
    %c0 = arith.constant 0 : index
    %c0_1 = arith.constant 0 : index
    %c0_2 = arith.constant 0 : index
    %c0_3 = arith.constant 0 : index
    %2 = vector.load %arg9[%c0, %c0_1, %c0_2, %c0_3] : memref<2x10x10x128xbf16, #tpu.memory_space<vmem>>, vector<2x1x10x128xbf16>
    tpu.vector_store %arg9[%c0, %c0_1, %c0_2, %c0_3], %0 {strides = array<i32>} : memref<2x10x10x128xbf16, #tpu.memory_space<vmem>>, vector<2x1x10x128xbf16>,
    %c0_4 = arith.constant 0 : index
    %c9 = arith.constant 9 : index
    %c0_5 = arith.constant 0 : index
    %c0_6 = arith.constant 0 : index
    %3 = vector.load %arg9[%c0_4, %c9, %c0_5, %c0_6] : memref<2x10x10x128xbf16, #tpu.memory_space<vmem>>, vector<2x1x10x128xbf16>
    tpu.vector_store %arg9[%c0_4, %c9, %c0_5, %c0_6], %0 {strides = array<i32>} : memref<2x10x10x128xbf16, #tpu.memory_space<vmem>>, vector<2x1x10x128xbf16>,
    %c0_7 = arith.constant 0 : index
    %c1 = arith.constant 1 : index
    %c0_8 = arith.constant 0 : index
    %c0_9 = arith.constant 0 : index
    %4 = vector.load %arg9[%c0_7, %c1, %c0_8, %c0_9] : memref<2x10x10x128xbf16, #tpu.memory_space<vmem>>, vector<2x8x1x128xbf16>
    tpu.vector_store %arg9[%c0_7, %c1, %c0_8, %c0_9], %1 {strides = array<i32>} : memref<2x10x10x128xbf16, #tpu.memory_space<vmem>>, vector<2x8x1x128xbf16>,
    %c0_10 = arith.constant 0 : index
    %c1_11 = arith.constant 1 : index
    %c9_12 = arith.constant 9 : index
    %c0_13 = arith.constant 0 : index
    %5 = vector.load %arg9[%c0_10, %c1_11, %c9_12, %c0_13] : memref<2x10x10x128xbf16, #tpu.memory_space<vmem>>, vector<2x8x1x128xbf16>
    tpu.vector_store %arg9[%c0_10, %c1_11, %c9_12, %c0_13], %1 {strides = array<i32>} : memref<2x10x10x128xbf16, #tpu.memory_space<vmem>>, vector<2x8x1x128xbf16>,
    %c0_14 = arith.constant 0 : index
    %c0_15 = arith.constant 0 : index
    %c0_16 = arith.constant 0 : index
    %c0_17 = arith.constant 0 : index
    %6 = vector.load %arg1[%c0_14, %c0_15, %c0_16, %c0_17] : memref<2x10x10x128xbf16, #tpu.memory_space<vmem>>, vector<2x8x8x128xbf16>
    %c0_18 = arith.constant 0 : index
    %c0_19 = arith.constant 0 : index
    %c1_20 = arith.constant 1 : index
    %c0_21 = arith.constant 0 : index
    %7 = vector.load %arg1[%c0_18, %c0_19, %c1_20, %c0_21] : memref<2x10x10x128xbf16, #tpu.memory_space<vmem>>, vector<2x8x8x128xbf16>
    %c0_22 = arith.constant 0 : index
    %c0_23 = arith.constant 0 : index
    %c2 = arith.constant 2 : index
    %c0_24 = arith.constant 0 : index
    %8 = vector.load %arg1[%c0_22, %c0_23, %c2, %c0_24] : memref<2x10x10x128xbf16, #tpu.memory_space<vmem>>, vector<2x8x8x128xbf16>
    %9 = tpu.concatenate %6, %7, %8 in 3 : vector<2x8x8x128xbf16>, vector<2x8x8x128xbf16>, vector<2x8x8x128xbf16> -> vector<2x8x8x384xbf16>
    %10 = vector.shape_cast %9 : vector<2x8x8x384xbf16> to vector<128x384xbf16>
    %c0_25 = arith.constant 0 : index
    %c0_26 = arith.constant 0 : index
    %c0_27 = arith.constant 0 : index
    %11 = vector.load %arg2[%c0_25, %c0_26, %c0_27] : memref<3x384x128xbf16, #tpu.memory_space<vmem>>, vector<1x384x128xbf16>
    %12 = vector.shape_cast %11 : vector<1x384x128xbf16> to vector<384x128xbf16>
    %cst_28 = arith.constant dense<0.000000e+00> : vector<128x128xf32>
    %13 = tpu.matmul %10, %12, %cst_28 {dimension_numbers = #tpu.dot_dimension_numbers<[1], [0], [0], [1], [0, 0, 1, 1], [], []>} : vector<128x384xbf16>, vector<384x128xbf16>, vector<128x128xf32> -> vector<128x128xf32>
    %c0_29 = arith.constant 0 : index
    %c1_30 = arith.constant 1 : index
    %c0_31 = arith.constant 0 : index
    %c0_32 = arith.constant 0 : index
    %14 = vector.load %arg1[%c0_29, %c1_30, %c0_31, %c0_32] : memref<2x10x10x128xbf16, #tpu.memory_space<vmem>>, vector<2x8x8x128xbf16>
    %c0_33 = arith.constant 0 : index
    %c1_34 = arith.constant 1 : index
    %c1_35 = arith.constant 1 : index
    %c0_36 = arith.constant 0 : index
    %15 = vector.load %arg1[%c0_33, %c1_34, %c1_35, %c0_36] : memref<2x10x10x128xbf16, #tpu.memory_space<vmem>>, vector<2x8x8x128xbf16>
    %c0_37 = arith.constant 0 : index
    %c1_38 = arith.constant 1 : index
    %c2_39 = arith.constant 2 : index
    %c0_40 = arith.constant 0 : index
    %16 = vector.load %arg1[%c0_37, %c1_38, %c2_39, %c0_40] : memref<2x10x10x128xbf16, #tpu.memory_space<vmem>>, vector<2x8x8x128xbf16>
    %17 = tpu.concatenate %14, %15, %16 in 3 : vector<2x8x8x128xbf16>, vector<2x8x8x128xbf16>, vector<2x8x8x128xbf16> -> vector<2x8x8x384xbf16>
    %18 = vector.shape_cast %17 : vector<2x8x8x384xbf16> to vector<128x384xbf16>
    %c1_41 = arith.constant 1 : index
    %c0_42 = arith.constant 0 : index
    %c0_43 = arith.constant 0 : index
    %19 = vector.load %arg2[%c1_41, %c0_42, %c0_43] : memref<3x384x128xbf16, #tpu.memory_space<vmem>>, vector<1x384x128xbf16>
    %20 = vector.shape_cast %19 : vector<1x384x128xbf16> to vector<384x128xbf16>
    %cst_44 = arith.constant dense<0.000000e+00> : vector<128x128xf32>
    %21 = tpu.matmul %18, %20, %cst_44 {dimension_numbers = #tpu.dot_dimension_numbers<[1], [0], [0], [1], [0, 0, 1, 1], [], []>} : vector<128x384xbf16>, vector<384x128xbf16>, vector<128x128xf32> -> vector<128x128xf32>
    %22 = arith.addf %13, %21 : vector<128x128xf32>
    %c0_45 = arith.constant 0 : index
    %c2_46 = arith.constant 2 : index
    %c0_47 = arith.constant 0 : index
    %c0_48 = arith.constant 0 : index
    %23 = vector.load %arg1[%c0_45, %c2_46, %c0_47, %c0_48] : memref<2x10x10x128xbf16, #tpu.memory_space<vmem>>, vector<2x8x8x128xbf16>
    %c0_49 = arith.constant 0 : index
    %c2_50 = arith.constant 2 : index
    %c1_51 = arith.constant 1 : index
    %c0_52 = arith.constant 0 : index
    %24 = vector.load %arg1[%c0_49, %c2_50, %c1_51, %c0_52] : memref<2x10x10x128xbf16, #tpu.memory_space<vmem>>, vector<2x8x8x128xbf16>
    %c0_53 = arith.constant 0 : index
    %c2_54 = arith.constant 2 : index
    %c2_55 = arith.constant 2 : index
    %c0_56 = arith.constant 0 : index
    %25 = vector.load %arg1[%c0_53, %c2_54, %c2_55, %c0_56] : memref<2x10x10x128xbf16, #tpu.memory_space<vmem>>, vector<2x8x8x128xbf16>
    %26 = tpu.concatenate %23, %24, %25 in 3 : vector<2x8x8x128xbf16>, vector<2x8x8x128xbf16>, vector<2x8x8x128xbf16> -> vector<2x8x8x384xbf16>
    %27 = vector.shape_cast %26 : vector<2x8x8x384xbf16> to vector<128x384xbf16>
    %c2_57 = arith.constant 2 : index
    %c0_58 = arith.constant 0 : index
    %c0_59 = arith.constant 0 : index
    %28 = vector.load %arg2[%c2_57, %c0_58, %c0_59] : memref<3x384x128xbf16, #tpu.memory_space<vmem>>, vector<1x384x128xbf16>
    %29 = vector.shape_cast %28 : vector<1x384x128xbf16> to vector<384x128xbf16>
    %cst_60 = arith.constant dense<0.000000e+00> : vector<128x128xf32>
    %30 = tpu.matmul %27, %29, %cst_60 {dimension_numbers = #tpu.dot_dimension_numbers<[1], [0], [0], [1], [0, 0, 1, 1], [], []>} : vector<128x384xbf16>, vector<384x128xbf16>, vector<128x128xf32> -> vector<128x128xf32>
    %31 = arith.addf %22, %30 : vector<128x128xf32>
    %c0_61 = arith.constant 0 : index
    %c0_62 = arith.constant 0 : index
    %32 = vector.load %arg5[%c0_61, %c0_62] : memref<1x128xf32, #tpu.memory_space<vmem>>, vector<1x128xf32>
    %33 = vector.broadcast %32 : vector<1x128xf32> to vector<128x128xf32>
    %34 = arith.addf %31, %33 : vector<128x128xf32>
    %cst_63 = arith.constant 0.000000e+00 : f32
    %35 = vector.broadcast %cst_63 : f32 to vector<128x128xf32>
    %36 = arith.maximumf %34, %35 : vector<128x128xf32>
    %37 = vector.shape_cast %36 : vector<128x128xf32> to vector<2x8x8x128xf32>
    %38 = arith.truncf %37 : vector<2x8x8x128xf32> to vector<2x8x8x128xbf16>
    %c0_64 = arith.constant 0 : index
    %c1_65 = arith.constant 1 : index
    %c1_66 = arith.constant 1 : index
    %c0_67 = arith.constant 0 : index
    %39 = vector.load %arg9[%c0_64, %c1_65, %c1_66, %c0_67] : memref<2x10x10x128xbf16, #tpu.memory_space<vmem>>, vector<2x8x8x128xbf16>
    tpu.vector_store %arg9[%c0_64, %c1_65, %c1_66, %c0_67], %38 {strides = array<i32>} : memref<2x10x10x128xbf16, #tpu.memory_space<vmem>>, vector<2x8x8x128xbf16>,
    %c0_68 = arith.constant 0 : index
    %c0_69 = arith.constant 0 : index
    %c0_70 = arith.constant 0 : index
    %c0_71 = arith.constant 0 : index
    %40 = vector.load %arg9[%c0_68, %c0_69, %c0_70, %c0_71] : memref<2x10x10x128xbf16, #tpu.memory_space<vmem>>, vector<2x8x8x128xbf16>
    %c0_72 = arith.constant 0 : index
    %c0_73 = arith.constant 0 : index
    %c1_74 = arith.constant 1 : index
    %c0_75 = arith.constant 0 : index
    %41 = vector.load %arg9[%c0_72, %c0_73, %c1_74, %c0_75] : memref<2x10x10x128xbf16, #tpu.memory_space<vmem>>, vector<2x8x8x128xbf16>
    %c0_76 = arith.constant 0 : index
    %c0_77 = arith.constant 0 : index
    %c2_78 = arith.constant 2 : index
    %c0_79 = arith.constant 0 : index
    %42 = vector.load %arg9[%c0_76, %c0_77, %c2_78, %c0_79] : memref<2x10x10x128xbf16, #tpu.memory_space<vmem>>, vector<2x8x8x128xbf16>
    %43 = tpu.concatenate %40, %41, %42 in 3 : vector<2x8x8x128xbf16>, vector<2x8x8x128xbf16>, vector<2x8x8x128xbf16> -> vector<2x8x8x384xbf16>
    %44 = vector.shape_cast %43 : vector<2x8x8x384xbf16> to vector<128x384xbf16>
    %c0_80 = arith.constant 0 : index
    %c0_81 = arith.constant 0 : index
    %c0_82 = arith.constant 0 : index
    %45 = vector.load %arg3[%c0_80, %c0_81, %c0_82] : memref<3x384x128xbf16, #tpu.memory_space<vmem>>, vector<1x384x128xbf16>
    %46 = vector.shape_cast %45 : vector<1x384x128xbf16> to vector<384x128xbf16>
    %cst_83 = arith.constant dense<0.000000e+00> : vector<128x128xf32>
    %47 = tpu.matmul %44, %46, %cst_83 {dimension_numbers = #tpu.dot_dimension_numbers<[1], [0], [0], [1], [0, 0, 1, 1], [], []>} : vector<128x384xbf16>, vector<384x128xbf16>, vector<128x128xf32> -> vector<128x128xf32>
    %c0_84 = arith.constant 0 : index
    %c1_85 = arith.constant 1 : index
    %c0_86 = arith.constant 0 : index
    %c0_87 = arith.constant 0 : index
    %48 = vector.load %arg9[%c0_84, %c1_85, %c0_86, %c0_87] : memref<2x10x10x128xbf16, #tpu.memory_space<vmem>>, vector<2x8x8x128xbf16>
    %c0_88 = arith.constant 0 : index
    %c1_89 = arith.constant 1 : index
    %c1_90 = arith.constant 1 : index
    %c0_91 = arith.constant 0 : index
    %49 = vector.load %arg9[%c0_88, %c1_89, %c1_90, %c0_91] : memref<2x10x10x128xbf16, #tpu.memory_space<vmem>>, vector<2x8x8x128xbf16>
    %c0_92 = arith.constant 0 : index
    %c1_93 = arith.constant 1 : index
    %c2_94 = arith.constant 2 : index
    %c0_95 = arith.constant 0 : index
    %50 = vector.load %arg9[%c0_92, %c1_93, %c2_94, %c0_95] : memref<2x10x10x128xbf16, #tpu.memory_space<vmem>>, vector<2x8x8x128xbf16>
    %51 = tpu.concatenate %48, %49, %50 in 3 : vector<2x8x8x128xbf16>, vector<2x8x8x128xbf16>, vector<2x8x8x128xbf16> -> vector<2x8x8x384xbf16>
    %52 = vector.shape_cast %51 : vector<2x8x8x384xbf16> to vector<128x384xbf16>
    %c1_96 = arith.constant 1 : index
    %c0_97 = arith.constant 0 : index
    %c0_98 = arith.constant 0 : index
    %53 = vector.load %arg3[%c1_96, %c0_97, %c0_98] : memref<3x384x128xbf16, #tpu.memory_space<vmem>>, vector<1x384x128xbf16>
    %54 = vector.shape_cast %53 : vector<1x384x128xbf16> to vector<384x128xbf16>
    %cst_99 = arith.constant dense<0.000000e+00> : vector<128x128xf32>
    %55 = tpu.matmul %52, %54, %cst_99 {dimension_numbers = #tpu.dot_dimension_numbers<[1], [0], [0], [1], [0, 0, 1, 1], [], []>} : vector<128x384xbf16>, vector<384x128xbf16>, vector<128x128xf32> -> vector<128x128xf32>
    %56 = arith.addf %47, %55 : vector<128x128xf32>
    %c0_100 = arith.constant 0 : index
    %c2_101 = arith.constant 2 : index
    %c0_102 = arith.constant 0 : index
    %c0_103 = arith.constant 0 : index
    %57 = vector.load %arg9[%c0_100, %c2_101, %c0_102, %c0_103] : memref<2x10x10x128xbf16, #tpu.memory_space<vmem>>, vector<2x8x8x128xbf16>
    %c0_104 = arith.constant 0 : index
    %c2_105 = arith.constant 2 : index
    %c1_106 = arith.constant 1 : index
    %c0_107 = arith.constant 0 : index
    %58 = vector.load %arg9[%c0_104, %c2_105, %c1_106, %c0_107] : memref<2x10x10x128xbf16, #tpu.memory_space<vmem>>, vector<2x8x8x128xbf16>
    %c0_108 = arith.constant 0 : index
    %c2_109 = arith.constant 2 : index
    %c2_110 = arith.constant 2 : index
    %c0_111 = arith.constant 0 : index
    %59 = vector.load %arg9[%c0_108, %c2_109, %c2_110, %c0_111] : memref<2x10x10x128xbf16, #tpu.memory_space<vmem>>, vector<2x8x8x128xbf16>
    %60 = tpu.concatenate %57, %58, %59 in 3 : vector<2x8x8x128xbf16>, vector<2x8x8x128xbf16>, vector<2x8x8x128xbf16> -> vector<2x8x8x384xbf16>
    %61 = vector.shape_cast %60 : vector<2x8x8x384xbf16> to vector<128x384xbf16>
    %c2_112 = arith.constant 2 : index
    %c0_113 = arith.constant 0 : index
    %c0_114 = arith.constant 0 : index
    %62 = vector.load %arg3[%c2_112, %c0_113, %c0_114] : memref<3x384x128xbf16, #tpu.memory_space<vmem>>, vector<1x384x128xbf16>
    %63 = vector.shape_cast %62 : vector<1x384x128xbf16> to vector<384x128xbf16>
    %cst_115 = arith.constant dense<0.000000e+00> : vector<128x128xf32>
    %64 = tpu.matmul %61, %63, %cst_115 {dimension_numbers = #tpu.dot_dimension_numbers<[1], [0], [0], [1], [0, 0, 1, 1], [], []>} : vector<128x384xbf16>, vector<384x128xbf16>, vector<128x128xf32> -> vector<128x128xf32>
    %65 = arith.addf %56, %64 : vector<128x128xf32>
    %c0_116 = arith.constant 0 : index
    %c0_117 = arith.constant 0 : index
    %66 = vector.load %arg6[%c0_116, %c0_117] : memref<1x128xf32, #tpu.memory_space<vmem>>, vector<1x128xf32>
    %67 = vector.broadcast %66 : vector<1x128xf32> to vector<128x128xf32>
    %68 = arith.addf %65, %67 : vector<128x128xf32>
    %cst_118 = arith.constant 0.000000e+00 : f32
    %69 = vector.broadcast %cst_118 : f32 to vector<128x128xf32>
    %70 = arith.maximumf %68, %69 : vector<128x128xf32>
    %71 = vector.shape_cast %70 : vector<128x128xf32> to vector<2x8x8x128xf32>
    %72 = arith.truncf %71 : vector<2x8x8x128xf32> to vector<2x8x8x128xbf16>
    %c0_119 = arith.constant 0 : index
    %c1_120 = arith.constant 1 : index
    %c1_121 = arith.constant 1 : index
    %c0_122 = arith.constant 0 : index
    %73 = vector.load %arg9[%c0_119, %c1_120, %c1_121, %c0_122] : memref<2x10x10x128xbf16, #tpu.memory_space<vmem>>, vector<2x8x8x128xbf16>
    tpu.vector_store %arg9[%c0_119, %c1_120, %c1_121, %c0_122], %72 {strides = array<i32>} : memref<2x10x10x128xbf16, #tpu.memory_space<vmem>>, vector<2x8x8x128xbf16>,
    %c0_123 = arith.constant 0 : index
    %c0_124 = arith.constant 0 : index
    %c0_125 = arith.constant 0 : index
    %c0_126 = arith.constant 0 : index
    %74 = vector.load %arg9[%c0_123, %c0_124, %c0_125, %c0_126] : memref<2x10x10x128xbf16, #tpu.memory_space<vmem>>, vector<2x8x8x128xbf16>
    %c0_127 = arith.constant 0 : index
    %c0_128 = arith.constant 0 : index
    %c1_129 = arith.constant 1 : index
    %c0_130 = arith.constant 0 : index
    %75 = vector.load %arg9[%c0_127, %c0_128, %c1_129, %c0_130] : memref<2x10x10x128xbf16, #tpu.memory_space<vmem>>, vector<2x8x8x128xbf16>
    %c0_131 = arith.constant 0 : index
    %c0_132 = arith.constant 0 : index
    %c2_133 = arith.constant 2 : index
    %c0_134 = arith.constant 0 : index
    %76 = vector.load %arg9[%c0_131, %c0_132, %c2_133, %c0_134] : memref<2x10x10x128xbf16, #tpu.memory_space<vmem>>, vector<2x8x8x128xbf16>
    %77 = tpu.concatenate %74, %75, %76 in 3 : vector<2x8x8x128xbf16>, vector<2x8x8x128xbf16>, vector<2x8x8x128xbf16> -> vector<2x8x8x384xbf16>
    %78 = vector.shape_cast %77 : vector<2x8x8x384xbf16> to vector<128x384xbf16>
    %c0_135 = arith.constant 0 : index
    %c0_136 = arith.constant 0 : index
    %c0_137 = arith.constant 0 : index
    %79 = vector.load %arg4[%c0_135, %c0_136, %c0_137] : memref<3x384x128xbf16, #tpu.memory_space<vmem>>, vector<1x384x128xbf16>
    %80 = vector.shape_cast %79 : vector<1x384x128xbf16> to vector<384x128xbf16>
    %cst_138 = arith.constant dense<0.000000e+00> : vector<128x128xf32>
    %81 = tpu.matmul %78, %80, %cst_138 {dimension_numbers = #tpu.dot_dimension_numbers<[1], [0], [0], [1], [0, 0, 1, 1], [], []>} : vector<128x384xbf16>, vector<384x128xbf16>, vector<128x128xf32> -> vector<128x128xf32>
    %c0_139 = arith.constant 0 : index
    %c1_140 = arith.constant 1 : index
    %c0_141 = arith.constant 0 : index
    %c0_142 = arith.constant 0 : index
    %82 = vector.load %arg9[%c0_139, %c1_140, %c0_141, %c0_142] : memref<2x10x10x128xbf16, #tpu.memory_space<vmem>>, vector<2x8x8x128xbf16>
    %c0_143 = arith.constant 0 : index
    %c1_144 = arith.constant 1 : index
    %c1_145 = arith.constant 1 : index
    %c0_146 = arith.constant 0 : index
    %83 = vector.load %arg9[%c0_143, %c1_144, %c1_145, %c0_146] : memref<2x10x10x128xbf16, #tpu.memory_space<vmem>>, vector<2x8x8x128xbf16>
    %c0_147 = arith.constant 0 : index
    %c1_148 = arith.constant 1 : index
    %c2_149 = arith.constant 2 : index
    %c0_150 = arith.constant 0 : index
    %84 = vector.load %arg9[%c0_147, %c1_148, %c2_149, %c0_150] : memref<2x10x10x128xbf16, #tpu.memory_space<vmem>>, vector<2x8x8x128xbf16>
    %85 = tpu.concatenate %82, %83, %84 in 3 : vector<2x8x8x128xbf16>, vector<2x8x8x128xbf16>, vector<2x8x8x128xbf16> -> vector<2x8x8x384xbf16>
    %86 = vector.shape_cast %85 : vector<2x8x8x384xbf16> to vector<128x384xbf16>
    %c1_151 = arith.constant 1 : index
    %c0_152 = arith.constant 0 : index
    %c0_153 = arith.constant 0 : index
    %87 = vector.load %arg4[%c1_151, %c0_152, %c0_153] : memref<3x384x128xbf16, #tpu.memory_space<vmem>>, vector<1x384x128xbf16>
    %88 = vector.shape_cast %87 : vector<1x384x128xbf16> to vector<384x128xbf16>
    %cst_154 = arith.constant dense<0.000000e+00> : vector<128x128xf32>
    %89 = tpu.matmul %86, %88, %cst_154 {dimension_numbers = #tpu.dot_dimension_numbers<[1], [0], [0], [1], [0, 0, 1, 1], [], []>} : vector<128x384xbf16>, vector<384x128xbf16>, vector<128x128xf32> -> vector<128x128xf32>
    %90 = arith.addf %81, %89 : vector<128x128xf32>
    %c0_155 = arith.constant 0 : index
    %c2_156 = arith.constant 2 : index
    %c0_157 = arith.constant 0 : index
    %c0_158 = arith.constant 0 : index
    %91 = vector.load %arg9[%c0_155, %c2_156, %c0_157, %c0_158] : memref<2x10x10x128xbf16, #tpu.memory_space<vmem>>, vector<2x8x8x128xbf16>
    %c0_159 = arith.constant 0 : index
    %c2_160 = arith.constant 2 : index
    %c1_161 = arith.constant 1 : index
    %c0_162 = arith.constant 0 : index
    %92 = vector.load %arg9[%c0_159, %c2_160, %c1_161, %c0_162] : memref<2x10x10x128xbf16, #tpu.memory_space<vmem>>, vector<2x8x8x128xbf16>
    %c0_163 = arith.constant 0 : index
    %c2_164 = arith.constant 2 : index
    %c2_165 = arith.constant 2 : index
    %c0_166 = arith.constant 0 : index
    %93 = vector.load %arg9[%c0_163, %c2_164, %c2_165, %c0_166] : memref<2x10x10x128xbf16, #tpu.memory_space<vmem>>, vector<2x8x8x128xbf16>
    %94 = tpu.concatenate %91, %92, %93 in 3 : vector<2x8x8x128xbf16>, vector<2x8x8x128xbf16>, vector<2x8x8x128xbf16> -> vector<2x8x8x384xbf16>
    %95 = vector.shape_cast %94 : vector<2x8x8x384xbf16> to vector<128x384xbf16>
    %c2_167 = arith.constant 2 : index
    %c0_168 = arith.constant 0 : index
    %c0_169 = arith.constant 0 : index
    %96 = vector.load %arg4[%c2_167, %c0_168, %c0_169] : memref<3x384x128xbf16, #tpu.memory_space<vmem>>, vector<1x384x128xbf16>
    %97 = vector.shape_cast %96 : vector<1x384x128xbf16> to vector<384x128xbf16>
    %cst_170 = arith.constant dense<0.000000e+00> : vector<128x128xf32>
    %98 = tpu.matmul %95, %97, %cst_170 {dimension_numbers = #tpu.dot_dimension_numbers<[1], [0], [0], [1], [0, 0, 1, 1], [], []>} : vector<128x384xbf16>, vector<384x128xbf16>, vector<128x128xf32> -> vector<128x128xf32>
    %99 = arith.addf %90, %98 : vector<128x128xf32>
    %c0_171 = arith.constant 0 : index
    %c0_172 = arith.constant 0 : index
    %100 = vector.load %arg7[%c0_171, %c0_172] : memref<1x128xf32, #tpu.memory_space<vmem>>, vector<1x128xf32>
    %101 = vector.broadcast %100 : vector<1x128xf32> to vector<128x128xf32>
    %102 = arith.addf %99, %101 : vector<128x128xf32>
    %cst_173 = arith.constant 0.000000e+00 : f32
    %103 = vector.broadcast %cst_173 : f32 to vector<128x128xf32>
    %104 = arith.maximumf %102, %103 : vector<128x128xf32>
    %105 = vector.shape_cast %104 : vector<128x128xf32> to vector<2x8x8x128xf32>
    %c0_174 = arith.constant 0 : index
    %c0_175 = arith.constant 0 : index
    %c0_176 = arith.constant 0 : index
    %c0_177 = arith.constant 0 : index
    %106 = vector.load %arg8[%c0_174, %c0_175, %c0_176, %c0_177] : memref<2x8x8x128xf32, #tpu.memory_space<vmem>>, vector<2x8x8x128xf32>
    tpu.vector_store %arg8[%c0_174, %c0_175, %c0_176, %c0_177], %105 {strides = array<i32>} : memref<2x8x8x128xf32, #tpu.memory_space<vmem>>, vector<2x8x8x128xf32>,
    return
  }
  func.func @transform_0(%arg0: i32) -> (i32, i32, i32, i32) {
    %c0_i32 = arith.constant 0 : i32
    %c0_i32_0 = arith.constant 0 : i32
    %c0_i32_1 = arith.constant 0 : i32
    %c0_i32_2 = arith.constant 0 : i32
    return %arg0, %c0_i32, %c0_i32_0, %c0_i32_1 : i32, i32, i32, i32
  }
  func.func @transform_1(%arg0: i32) -> (i32, i32, i32) {
    %c0_i32 = arith.constant 0 : i32
    %c0_i32_0 = arith.constant 0 : i32
    %c0_i32_1 = arith.constant 0 : i32
    %c0_i32_2 = arith.constant 0 : i32
    return %c0_i32, %c0_i32_0, %c0_i32_1 : i32, i32, i32
  }
  func.func @transform_2(%arg0: i32) -> (i32, i32, i32) {
    %c0_i32 = arith.constant 0 : i32
    %c0_i32_0 = arith.constant 0 : i32
    %c0_i32_1 = arith.constant 0 : i32
    %c0_i32_2 = arith.constant 0 : i32
    return %c0_i32, %c0_i32_0, %c0_i32_1 : i32, i32, i32
  }
  func.func @transform_3(%arg0: i32) -> (i32, i32, i32) {
    %c0_i32 = arith.constant 0 : i32
    %c0_i32_0 = arith.constant 0 : i32
    %c0_i32_1 = arith.constant 0 : i32
    %c0_i32_2 = arith.constant 0 : i32
    return %c0_i32, %c0_i32_0, %c0_i32_1 : i32, i32, i32
  }
  func.func @transform_4(%arg0: i32) -> (i32, i32) {
    %c0_i32 = arith.constant 0 : i32
    %c0_i32_0 = arith.constant 0 : i32
    %c0_i32_1 = arith.constant 0 : i32
    return %c0_i32, %c0_i32_0 : i32, i32
  }
  func.func @transform_5(%arg0: i32) -> (i32, i32) {
    %c0_i32 = arith.constant 0 : i32
    %c0_i32_0 = arith.constant 0 : i32
    %c0_i32_1 = arith.constant 0 : i32
    return %c0_i32, %c0_i32_0 : i32, i32
  }
  func.func @transform_6(%arg0: i32) -> (i32, i32) {
    %c0_i32 = arith.constant 0 : i32
    %c0_i32_0 = arith.constant 0 : i32
    %c0_i32_1 = arith.constant 0 : i32
    return %c0_i32, %c0_i32_0 : i32, i32
  }
  func.func @transform_7(%arg0: i32) -> (i32, i32, i32, i32) {
    %c0_i32 = arith.constant 0 : i32
    %c0_i32_0 = arith.constant 0 : i32
    %c0_i32_1 = arith.constant 0 : i32
    %c0_i32_2 = arith.constant 0 : i32
    return %arg0, %c0_i32, %c0_i32_0, %c0_i32_1 : i32, i32, i32, i32
  }
}

</mosaic_0001>

<bundles_post_ra>
// kernel: concealment_forward.1
= control target key start
LH: loop header
LB: loop body
LE: loop exit
PB: predicated region body
PF: predicated region fallthrough
CT: control target
= control target key end

     0   :  { %vm38_vm0 = vcmask 1040384   ;;  %vm39_vm1 = vsmask.f32 256  ;;  %vm89_vm3 = vsmask.f32 7938  ;;  %s13734_s0 = inlined_call_operand.vmem [shape: bf16[2,10,10,128], index: 0, kind: input, shape index: {}]   ;;  %s13735_s1 = inlined_call_operand.vmem [shape: bf16[3,384,128], index: 1, kind: input, shape index: {}]   ;;  %s13736_s2 = inlined_call_operand.vmem [shape: bf16[3,384,128], index: 2, kind: input, shape index: {}]   ;;  %s13737_s3 = inlined_call_operand.vmem [shape: bf16[3,384,128], index: 3, kind: input, shape index: {}]   ;;  %s13738_s4 = inlined_call_operand.vmem [shape: f32[1,128], index: 4, kind: input, shape index: {}]   ;;  %s13739_s5 = inlined_call_operand.vmem [shape: f32[1,128], index: 5, kind: input, shape index: {}]   ;;  %s13740_s6 = inlined_call_operand.vmem [shape: f32[1,128], index: 6, kind: input, shape index: {}]   ;;  %s13741_s7 = inlined_call_operand.hbm [shape: f32[2,8,8,128], index: 7, kind: output, shape index: {}]  }
   0x1   :  { %v10099_v0 = vld [vmem:[%s13735_s1 + $0x138] sm:$0xff]   ;;  %v10102_v3 = vld [vmem:[%s13735_s1 + $0x130] sm:$0xff]   ;;  %v10105_v6 = vld [vmem:[%s13735_s1 + $0x128] sm:$0xff]  }
   0x2   :  { %v10100_v1 = vld [vmem:[%s13735_s1 + $0x178] sm:$0xff]   ;;  %9087 = vmatprep.subr.bf16.mxu0 %v10099_v0  ;;  %v10103_v4 = vld [vmem:[%s13735_s1 + $0x170] sm:$0xff]   ;;  %v10106_v7 = vld [vmem:[%s13735_s1 + $0x168] sm:$0xff]  }
   0x3   :  { %v10101_v2 = vld [vmem:[%s13735_s1 + $0xf8] sm:$0xff]   ;;  %9807 = vmatprep.subr.bf16.mxu1 %v10100_v1  ;;  %v10104_v5 = vld [vmem:[%s13735_s1 + $0xf0] sm:$0xff]   ;;  %v10107_v8 = vld [vmem:[%s13735_s1 + $0xe8] sm:$0xff]  }
   0x4   :  { %9088 = vmatpush3.bf16.msra.mxu0 %v10101_v2  ;;  %9808 = vmatpush3.bf16.msra.mxu1 %v10100_v1  ;;  %v10108_v9 = vld [vmem:[%s13735_s1 + $0x120] sm:$0xff]   ;;  %v10111_v12 = vld [vmem:[%s13735_s1 + $0x118] sm:$0xff]   ;;  %v10114_v15 = vld [vmem:[%s13735_s1 + $0x110] sm:$0xff]  }
   0x5   :  { %9089 = vmatprep.subr.bf16.mxu0 %v10102_v3  ;;  %9809 = vmatprep.subr.bf16.mxu1 %v10103_v4  ;;  %v10109_v10 = vld [vmem:[%s13735_s1 + $0x160] sm:$0xff]   ;;  %v10112_v13 = vld [vmem:[%s13735_s1 + $0x158] sm:$0xff]   ;;  %v10115_v16 = vld [vmem:[%s13735_s1 + $0x150] sm:$0xff]  }
   0x6   :  { %v10110_v11 = vld [vmem:[%s13735_s1 + $0xe0] sm:$0xff]   ;;  %v10113_v14 = vld [vmem:[%s13735_s1 + $0xd8] sm:$0xff]   ;;  %v10116_v17 = vld [vmem:[%s13735_s1 + $0xd0] sm:$0xff]  }
   0x7   :  { %v10117_v18 = vld [vmem:[%s13735_s1 + $0x108] sm:$0xff]   ;;  %v10120_v21 = vld [vmem:[%s13735_s1 + $0x100] sm:$0xff]   ;;  %v10824_v24 = vld [vmem:[%s13734_s0 + $0x10] sm:$0xf] }
   0x8   :  { %9090 = vmatpush3.bf16.msra.mxu0 %v10104_v5  ;;  %9810 = vmatpush3.bf16.msra.mxu1 %v10103_v4  ;;  %v10118_v19 = vld [vmem:[%s13735_s1 + $0x148] sm:$0xff]   ;;  %v10121_v22 = vld [vmem:[%s13735_s1 + $0x140] sm:$0xff]   ;;  %v7965_v26 = vld [vmem:[%s13734_s0 + $0x14] sm:$0x1] }
   0x9   :  { %9091 = vmatprep.subr.bf16.mxu0 %v10105_v6  ;;  %9811 = vmatprep.subr.bf16.mxu1 %v10106_v7  ;;  %v10119_v20 = vld [vmem:[%s13735_s1 + $0xc8] sm:$0xff]   ;;  %v7981_v29 = vld [vmem:[%s13734_s0 + $0x10] sm:$0xe]  ;;  %v10122_v30 = vld [vmem:[%s13735_s1 + $0xc0] sm:$0xff]   ;;  %v7997_v31 = vcombine.low %v10824_v24, %v7965_v26 }
   0xa   :  { %v10819_v23 = vld [vmem:[%s13734_s0 + $0x8] sm:$0xf]  ;;  %v7964_v25 = vld [vmem:[%s13734_s0 + $0xc] sm:$0x1]  ;;  %v8013_v33 = vcombine.low %v7981_v29, %v7965_v26  ;;  %v10846_v34 = vld [vmem:[%s13734_s0 + $0x18] sm:$0xf] }
   0xb   :  { %v7996_v27 = vcombine.low %v10819_v23, %v7964_v25  ;;  %v7980_v28 = vld [vmem:[%s13734_s0 + $0x8] sm:$0xe]  ;;  %v10851_v35 = vld [vmem:[%s13734_s0 + $0x20] sm:$0xf]  ;;  %v7966_v36 = vld [vmem:[%s13734_s0 + $0x1c] sm:$0x1]  ;;  %v8076_v61 = vcombine.low %v10819_v23, %v10824_v24 }
   0xc   :  { %9092 = vmatpush3.bf16.msra.mxu0 %v10107_v8  ;;  %9812 = vmatpush3.bf16.msra.mxu1 %v10106_v7  ;;  %v8012_v32 = vcombine.low %v7980_v28, %v7964_v25  ;;  %v7967_v39 = vld [vmem:[%s13734_s0 + $0x24] sm:$0x1]  ;;  %v7982_v40 = vld [vmem:[%s13734_s0 + $0x18] sm:$0xe]  ;;  %v660_v41 = vshrl.u32 %v7997_v31, 16  ;;  %v662_v42 = vshll.u32 %v7997_v31, 16  ;;  %v7998_v47 = vcombine.low %v10846_v34, %v7966_v36  ;;  %vm11711_vm2 = vmand %vm38_vm0, %vm39_vm1 }
   0xd   :  { %9093 = vmatprep.subr.bf16.mxu0 %v10108_v9  ;;  %9813 = vmatprep.subr.bf16.mxu1 %v10109_v10  ;;  %v653_v37 = vshrl.u32 %v7996_v27, 16  ;;  %v655_v38 = vshll.u32 %v7996_v27, 16  ;;  %v813_v44 = vrot.slane %v8013_v33, 1  ;;  %v7983_v45 = vld [vmem:[%s13734_s0 + $0x20] sm:$0xe]  ;;  %v8014_v48 = vcombine.low %v7982_v40, %v7966_v36  ;;  %v10132_v50 = vld [vmem:[%s13735_s1 + $0x78] sm:$0xff]   ;;  %vm11718_vm4 = vmand %vm38_vm0, %vm89_vm3 }
   0xe   :  { %v812_v43 = vrot.slane %v8012_v32, 1  ;;  %v8015_v49 = vcombine.low %v7983_v45, %v7967_v39  ;;  %v664_v51 = vrot.slane %v662_v42, 1  ;;  %v7999_v53 = vcombine.low %v10851_v35, %v7967_v39  ;;  %v10133_v54 = vld [vmem:[%s13735_s1 + $0xb8] sm:$0xff]   ;;  %v10135_v63 = vld [vmem:[%s13735_s1 + $0x70] sm:$0xff]   ;;  %v10884_v5 = vld [vmem:[%s13734_s0 + $0x28] sm:$0xf] }
   0xf   :  { %v657_v46 = vrot.slane %v655_v38, 1  ;;  %v814_v56 = vrot.slane %v8014_v48, 1  ;;  %v10134_v59 = vld [vmem:[%s13735_s1 + $0x38] sm:$0xff]   ;;  %v667_v60 = vshrl.u32 %v7998_v47, 16  ;;  %v669_v0 = vshll.u32 %v7998_v47, 16  ;;  %v10147_v7 = vld [vmem:[%s13735_s1 + $0xb0] sm:$0xff]  }
  0x10   :  { %9094 = vmatpush3.bf16.msra.mxu0 %v10110_v11  ;;  %9814 = vmatpush3.bf16.msra.mxu1 %v10109_v10  ;;  %v8078_v52 = vcombine.low %v812_v43, %v813_v44  ;;  %v815_v57 = vrot.slane %v8015_v49, 1  ;;  %v665_v58 = vor.u32 %v664_v51, %v660_v41  ;;  %v674_v2 = vshrl.u32 %v7999_v53, 16  ;;  %v7968_v6 = vld [vmem:[%s13734_s0 + $0x2c] sm:$0x1]  ;;  %v10136_v8 = vld [vmem:[%s13735_s1 + $0x30] sm:$0xff]   ;;  %v10149_v31 = vld [vmem:[%s13735_s1 + $0x60] sm:$0xff]  }
  0x11   :  { %9095 = vmatprep.subr.bf16.mxu0 %v10111_v12  ;;  %9815 = vmatprep.subr.bf16.mxu1 %v10112_v13  ;;  %v658_v55 = vor.u32 %v657_v46, %v653_v37  ;;  %v676_v3 = vshll.u32 %v7999_v53, 16  ;;  %v671_v4 = vrot.slane %v669_v0, 1  ;;  %v7969_v10 = vld [vmem:[%s13734_s0 + $0x34] sm:$0x1]  ;;  %v7984_v11 = vld [vmem:[%s13734_s0 + $0x28] sm:$0xe]  ;;  %v8079_v32 = vcombine.low %v10846_v34, %v10851_v35 }
  0x12   :  { %9823 = vmatprep.mubr.bf16.mxu1 %v8078_v52  ;;  %v8081_v62 = vcombine.low %v814_v56, %v815_v57  ;;  %v7987_v24 = vld [vmem:[%s13734_s0 + $0x40] sm:$0xe]  ;;  %v10148_v26 = vld [vmem:[%s13735_s1 + $0x28] sm:$0xff]   ;;  %v10937_v40 = vld [vmem:[%s13734_s0 + $0x38] sm:$0xf] }
  0x13   :  { %v8077_v1 = vcombine.low %v658_v55, %v665_v58  ;;  %v678_v9 = vrot.slane %v676_v3, 1  ;;  %v672_v12 = vor.u32 %v671_v4, %v667_v60  ;;  %v10150_v34 = vld [vmem:[%s13735_s1 + $0x20] sm:$0xff]   ;;  %v10945_v44 = vld [vmem:[%s13734_s0 + $0x5c] sm:$0x1]  ;;  %v7988_v49 = vld [vmem:[%s13734_s0 + $0x58] sm:$0xe] }
  0x14   :  { %9096 = vmatpush3.bf16.msra.mxu0 %v10113_v14  ;;  %9816 = vmatpush3.bf16.msra.mxu1 %v10112_v13  ;;  %v10904_v13 = vld [vmem:[%s13734_s0 + $0x30] sm:$0xf]  ;;  %v10950_v45 = vld [vmem:[%s13734_s0 + $0x64] sm:$0x1]  ;;  %v10160_v46 = vld [vmem:[%s13735_s1 + $0x58] sm:$0xff]   ;;  %v8020_v53 = vcombine.low %v7988_v49, %v10945_v44 }
  0x15   :  { %9097 = vmatprep.subr.bf16.mxu0 %v10114_v15  ;;  %9817 = vmatprep.subr.bf16.mxu1 %v10115_v16  ;;  %v7985_v14 = vld [vmem:[%s13734_s0 + $0x30] sm:$0xe]  ;;  %v8016_v15 = vcombine.low %v7984_v11, %v7968_v6  ;;  %v8001_v28 = vcombine.low %v10904_v13, %v7969_v10  ;;  %v10161_v51 = vld [vmem:[%s13735_s1 + $0xa8] sm:$0xff]   ;;  %v10967_v52 = vld [vmem:[%s13734_s0 + $0x40] sm:$0xf]  ;;  %v8082_v57 = vcombine.low %v10884_v5, %v10904_v13 }
  0x16   :  { %1133 = vmatprep.mubr.bf16.mxu0 %v8077_v1  ;;  %v10974_v55 = vld [vmem:[%s13734_s0 + $0x6c] sm:$0x1]  ;;  %v10981_v58 = vld [vmem:[%s13734_s0 + $0x74] sm:$0x1]  ;;  %v7991_v60 = vld [vmem:[%s13734_s0 + $0x70] sm:$0xe] }
  0x17   :  { %v816_v23 = vrot.slane %v8016_v15, 1  ;;  %v688_v42 = vshrl.u32 %v8001_v28, 16  ;;  %v690_v43 = vshll.u32 %v8001_v28, 16  ;;  %v8023_v3 = vcombine.low %v7991_v60, %v10981_v58  ;;  %v10178_v49 = vld [vmem:[%s13735_s1] sm:$0xff]  }
  0x18   :  { %9098 = vmatpush3.bf16.msra.mxu0 %v10116_v17  ;;  %9818 = vmatpush3.bf16.msra.mxu1 %v10115_v16  ;;  %v10146_v16 = vld [vmem:[%s13735_s1 + $0x68] sm:$0xff]   ;;  %v679_v17 = vor.u32 %v678_v9, %v674_v2  ;;  %v11002_v9 = vld [vmem:[%s13734_s0 + $0x58] sm:$0xf] }
  0x19   :  { %9099 = vmatprep.subr.bf16.mxu0 %v10117_v18  ;;  %9819 = vmatprep.subr.bf16.mxu1 %v10118_v19  ;;  %v8000_v18 = vcombine.low %v10884_v5, %v7968_v6  ;;  %v692_v48 = vrot.slane %v690_v43, 1  ;;  %v10162_v6 = vld [vmem:[%s13735_s1 + $0x18] sm:$0xff]  }
  0x1a   :  { %v8080_v27 = vcombine.low %v672_v12, %v679_v17  ;;  %v11007_v12 = vld [vmem:[%s13734_s0 + $0x60] sm:$0xf]  ;;  %v10174_v17 = vld [vmem:[%s13735_s1 + $0x48] sm:$0xff]  }
  0x1b   :  { %v681_v36 = vshrl.u32 %v8000_v18, 16  ;;  %v683_v39 = vshll.u32 %v8000_v18, 16  ;;  %v693_v56 = vor.u32 %v692_v48, %v688_v42  ;;  %v8088_v60 = vcombine.low %v11002_v9, %v11007_v12 }
  0x1c   :  { %9100 = vmatpush3.bf16.msra.mxu0 %v10119_v20  ;;  %9820 = vmatpush3.bf16.msra.mxu1 %v10118_v19  ;;  %v8017_v19 = vcombine.low %v7985_v14, %v7969_v10  ;;  %v7970_v20 = vld [vmem:[%s13734_s0 + $0x3c] sm:$0x1]  ;;  %v10164_v14 = vld [vmem:[%s13735_s1 + $0x10] sm:$0xff]  }
  0x1d   :  { %9101 = vmatprep.subr.bf16.mxu0 %v10120_v21  ;;  %9821 = vmatprep.subr.bf16.mxu1 %v10121_v22  ;;  %v7971_v21 = vld [vmem:[%s13734_s0 + $0x44] sm:$0x1]  ;;  %v685_v35 = vrot.slane %v683_v39, 1  ;;  %v8005_v39 = vcombine.low %v11007_v12, %v10950_v45  ;;  %v11127_v12 = vld [vmem:[%s13734_s0 + $0x10] sm:$0xf] }
  0x1e   :  { %v817_v29 = vrot.slane %v8017_v19, 1  ;;  %v8003_v1 = vcombine.low %v10967_v52, %v7971_v21  ;;  %v11018_v19 = vld [vmem:[%s13734_s0 + $0x7c] sm:$0x1] }
  0x1f   :  { %v686_v47 = vor.u32 %v685_v35, %v681_v36  ;;  %v11056_v36 = vld [vmem:[%s13734_s0 + $0x94] sm:$0x1] }
  0x20   :  { %9102 = vmatpush3.bf16.msra.mxu0 %v10122_v30  ;;  %9822 = vmatpush3.bf16.msra.mxu1 %v10121_v22  ;;  %v7986_v22 = vld [vmem:[%s13734_s0 + $0x38] sm:$0xe]  ;;  %v8019_v30 = vcombine.low %v7987_v24, %v7971_v21  ;;  %v8084_v37 = vcombine.low %v816_v23, %v817_v29  ;;  %v702_v15 = vshrl.u32 %v8003_v1, 16  ;;  %v10175_v21 = vld [vmem:[%s13735_s1 + $0xa0] sm:$0xff]   ;;  %v11044_v29 = vld [vmem:[%s13734_s0 + $0x8c] sm:$0x1] }
  0x21   :  { %9167 = vmatprep.subr.bf16.mxu1 %v10132_v50  ;;  %9839 = vmatprep.subr.bf16.mxu0 %v10133_v54  ;;  %v8018_v25 = vcombine.low %v7986_v22, %v7970_v20  ;;  %v7989_v50 = vld [vmem:[%s13734_s0 + $0x60] sm:$0xe]  ;;  %v8083_v2 = vcombine.low %v686_v47, %v693_v56  ;;  %v7992_v23 = vld [vmem:[%s13734_s0 + $0x78] sm:$0xe] }
  0x22   :  { %v819_v38 = vrot.slane %v8019_v30, 1  ;;  %v7993_v24 = vld [vmem:[%s13734_s0 + $0x80] sm:$0xe]  ;;  %v10176_v30 = vld [vmem:[%s13735_s1 + $0x8] sm:$0xff]  }
  0x23   :  { %9824 = vmatmul.mubr.bf16.vlgmr.msra.gmra.mxu1 %v8081_v62  ;;  %1134 = vmatmul.mubr.bf16.vlgmr.msra.gmra.mxu0 %v8076_v61  ;;  %v818_v33 = vrot.slane %v8018_v25, 1  ;;  %v8002_v61 = vcombine.low %v10937_v40, %v7970_v20  ;;  %v820_v62 = vrot.slane %v8020_v53, 1  ;;  %v11023_v20 = vld [vmem:[%s13734_s0 + $0x84] sm:$0x1]  ;;  %v11037_v25 = vld [vmem:[%s13734_s0 + $0x68] sm:$0xf] }
  0x24   :  { %9168 = vmatpush3.bf16.msra.mxu1 %v10134_v59  ;;  %9840 = vmatpush3.bf16.msra.mxu0 %v10133_v54  ;;  %v8021_v54 = vcombine.low %v7989_v50, %v10950_v45  ;;  %v7990_v59 = vld [vmem:[%s13734_s0 + $0x68] sm:$0xe]  ;;  %v8025_v28 = vcombine.low %v7993_v24, %v11023_v20  ;;  %v10177_v47 = vld [vmem:[%s13735_s1 + $0x40] sm:$0xff]   ;;  %v8006_v45 = vcombine.low %v11037_v25, %v10974_v55  ;;  %v718_v53 = vshll.u32 %v8005_v39, 16 }
  0x25   :  { %9169 = vmatprep.subr.bf16.mxu1 %v10135_v63  ;;  %9841 = vmatprep.subr.bf16.mxu0 %v10147_v7  ;;  %v8087_v41 = vcombine.low %v818_v33, %v819_v38  ;;  %v8022_v0 = vcombine.low %v7990_v59, %v10974_v55  ;;  %v695_v10 = vshrl.u32 %v8002_v61, 16  ;;  %v697_v11 = vshll.u32 %v8002_v61, 16  ;;  %v7995_v38 = vld [vmem:[%s13734_s0 + $0x90] sm:$0xe]  ;;  %v11086_v55 = vld [vmem:[%s13734_s0 + $0x78] sm:$0xf] }
  0x26   :  { %1141 = vmatprep.mubr.bf16.mxu0 %v8080_v27  ;;  %9827 = vmatprep.mubr.bf16.mxu1 %v8084_v37  ;;  %v821_v63 = vrot.slane %v8021_v54, 1  ;;  %v8024_v27 = vcombine.low %v7992_v23, %v11018_v19  ;;  %v8085_v33 = vcombine.low %v10937_v40, %v10967_v52  ;;  %v7994_v37 = vld [vmem:[%s13734_s0 + $0x88] sm:$0xe]  ;;  %v11069_v40 = vld [vmem:[%s13734_s0 + $0x70] sm:$0xf]  ;;  %v8027_v43 = vcombine.low %v7995_v38, %v11056_v36 }
  0x27   :  { %v822_v5 = vrot.slane %v8022_v0, 1  ;;  %v699_v18 = vrot.slane %v697_v11, 1  ;;  %v8026_v35 = vcombine.low %v7994_v37, %v11044_v29  ;;  %v716_v52 = vshrl.u32 %v8005_v39, 16  ;;  %v11096_v59 = vld [vmem:[%s13734_s0 + $0x8] sm:$0xf] }
  0x28   :  { %9170 = vmatpush3.bf16.msra.mxu1 %v10136_v8  ;;  %9842 = vmatpush3.bf16.msra.mxu0 %v10147_v7  ;;  %v8090_v4 = vcombine.low %v820_v62, %v821_v63  ;;  %v823_v7 = vrot.slane %v8023_v3, 1  ;;  %v10163_v8 = vld [vmem:[%s13735_s1 + $0x50] sm:$0xff]   ;;  %v827_v48 = vrot.slane %v8027_v43, 1  ;;  %v8007_v54 = vcombine.low %v11069_v40, %v10981_v58  ;;  %v11101_v58 = vld [vmem:[%s13734_s0 + $0x4] sm:$0x1] }
  0x29   :  { %9171 = vmatprep.subr.bf16.mxu1 %v10146_v16  ;;  %9843 = vmatprep.subr.bf16.mxu0 %v10161_v51  ;;  %v704_v16 = vshll.u32 %v8003_v1, 16  ;;  %v720_v62 = vrot.slane %v718_v53, 1  ;;  %v11108_v63 = vld [vmem:[%s13734_s0 + $0xc] sm:$0x1]  ;;  %v8091_v1 = vcombine.low %v11037_v25, %v11069_v40  ;;  %v11250_v25 = vld [vmem:[%s13734_s0 + $0x50] sm:$0xf] }
  0x2a   :  { %v8093_v13 = vcombine.low %v822_v5, %v823_v7  ;;  %v7917_v3 = vcombine.low %v11096_v59, %v11108_v63  ;;  %v723_v5 = vshrl.u32 %v8006_v45, 16  ;;  %v730_v7 = vshrl.u32 %v8007_v54, 16  ;;  %v11255_v40 = vld [vmem:[%s13734_s0 + $0x58] sm:$0xf] }
  0x2b   :  { %1142 = vmatmul.mubr.bf16.gmra.mxu0 %v8079_v32  ;;  %9828 = vmatmul.mubr.bf16.gmra.mxu1 %v8087_v41  ;;  %v706_v22 = vrot.slane %v704_v16, 1  ;;  %v824_v41 = vrot.slane %v8024_v27, 1 }
  0x2c   :  { %9172 = vmatpush3.bf16.msra.mxu1 %v10148_v26  ;;  %9844 = vmatpush3.bf16.msra.mxu0 %v10161_v51  ;;  %v700_v26 = vor.u32 %v699_v18, %v695_v10  ;;  %v11137_v18 = vld [vmem:[%s13734_s0 + $0x14] sm:$0x1] }
  0x2d   :  { %9173 = vmatprep.subr.bf16.mxu1 %v10149_v31  ;;  %1149 = vmatprep.mubr.bf16.mxu0 %v8083_v2  ;;  %v8004_v31 = vcombine.low %v11002_v9, %v10945_v44  ;;  %v707_v32 = vor.u32 %v706_v22, %v702_v15  ;;  %v11117_v2 = vld [vmem:[%s13734_s0 + $0x80] sm:$0xf]  ;;  %v721_v9 = vor.u32 %v720_v62, %v716_v52  ;;  %v277_v15 = vshll.u32 %v7917_v3, 16  ;;  %v11146_v22 = vld [vmem:[%s13734_s0 + $0x88] sm:$0xf] }
  0x2e   :  { %9831 = vmatprep.mubr.bf16.mxu1 %v8090_v4  ;;  %9845 = vmatprep.subr.bf16.mxu0 %v10175_v21  ;;  %v10183_v4 = vld [vmem:[%s13735_s1 + $0x98] sm:$0xff]   ;;  %v7918_v27 = vcombine.low %v11127_v12, %v11137_v18  ;;  %v8009_v37 = vcombine.low %v11117_v2, %v11023_v20  ;;  %v11180_v20 = vld [vmem:[%s13734_s0 + $0x24] sm:$0x1] }
  0x2f   :  { %v8086_v42 = vcombine.low %v700_v26, %v707_v32  ;;  %v709_v50 = vshrl.u32 %v8004_v31, 16  ;;  %v711_v51 = vshll.u32 %v8004_v31, 16  ;;  %v11151_v26 = vld [vmem:[%s13734_s0 + $0x1c] sm:$0x1]  ;;  %v10200_v62 = vld [vmem:[%s13735_s1 + $0x80] sm:$0xff]  }
  0x30   :  { %9174 = vmatpush3.bf16.msra.mxu1 %v10150_v34  ;;  %9846 = vmatpush3.bf16.msra.mxu0 %v10175_v21  ;;  %v825_v34 = vrot.slane %v8025_v28, 1  ;;  %v11141_v21 = vcombine.low %v11086_v55, %v11018_v19  ;;  %v10190_v19 = vld [vmem:[%s13735_s1 + $0x90] sm:$0xff]   ;;  %v282_v39 = vshrl.u32 %v7918_v27, 16 }
  0x31   :  { %9175 = vmatprep.subr.bf16.mxu1 %v10160_v46  ;;  %v826_v46 = vrot.slane %v8026_v35, 1  ;;  %v713_v61 = vrot.slane %v711_v51, 1  ;;  %9847 = vmatprep.subr.bf16.mxu0 %v10183_v4  ;;  %v11161_v28 = vld [vmem:[%s13734_s0 + $0x90] sm:$0xf]  ;;  %v10195_v51 = vld [vmem:[%s13735_s1 + $0x88] sm:$0xff]  }
  0x32   :  { %v8096_v44 = vcombine.low %v824_v41, %v825_v34  ;;  %v284_v41 = vshll.u32 %v7918_v27, 16  ;;  %v11170_v34 = vld [vmem:[%s13734_s0 + $0x20] sm:$0xf] }
  0x33   :  { %1150 = vmatmul.mubr.bf16.gmra.mxu0 %v8082_v57  ;;  %9832 = vmatmul.mubr.bf16.gmra.mxu1 %v8093_v13  ;;  %v8099_v56 = vcombine.low %v826_v46, %v827_v48  ;;  %v11091_v57 = vld [vmem:[%s13734_s0] sm:$0xf]  ;;  %v11132_v13 = vld [vmem:[%s13734_s0 + $0x18] sm:$0xf]  ;;  %v11175_v46 = vld [vmem:[%s13734_s0 + $0x28] sm:$0xf] }
  0x34   :  { %9176 = vmatpush3.bf16.msra.mxu1 %v10162_v6  ;;  %1157 = vmatprep.mubr.bf16.mxu0 %v8086_v42  ;;  %v7916_v0 = vcombine.low %v11091_v57, %v11101_v58  ;;  %v725_v6 = vshll.u32 %v8006_v45, 16  ;;  %v8124_v45 = vcombine.low %v11091_v57, %v11096_v59  ;;  %v286_v48 = vrot.slane %v284_v41, 1 }
  0x35   :  { %9177 = vmatprep.subr.bf16.mxu1 %v10163_v8  ;;  %9835 = vmatprep.mubr.bf16.mxu1 %v8096_v44  ;;  %v714_v8 = vor.u32 %v713_v61, %v709_v50  ;;  %v11190_v50 = vld [vmem:[%s13734_s0 + $0x2c] sm:$0x1]  ;;  %v744_v59 = vshrl.u32 %v8009_v37, 16  ;;  %v11203_v61 = vld [vmem:[%s13734_s0 + $0x30] sm:$0xf] }
  0x36   :  { %v268_v10 = vshrl.u32 %v7916_v0, 16  ;;  %v270_v11 = vshll.u32 %v7916_v0, 16  ;;  %v727_v16 = vrot.slane %v725_v6, 1  ;;  %9848 = vmatpush3.bf16.msra.mxu0 %v10183_v4  ;;  %v287_v57 = vor.u32 %v286_v48, %v282_v39  ;;  %v11220_v6 = vld [vmem:[%s13734_s0 + $0x34] sm:$0x1] }
  0x37   :  { %v8089_v23 = vcombine.low %v714_v8, %v721_v9  ;;  %9849 = vmatprep.subr.bf16.mxu0 %v10190_v19  ;;  %v7921_v4 = vcombine.low %v11175_v46, %v11190_v50  ;;  %v8127_v8 = vcombine.low %v11127_v12, %v11132_v13  ;;  %v8094_v48 = vcombine.low %v11086_v55, %v11117_v2 }
  0x38   :  { %9178 = vmatpush3.bf16.msra.mxu1 %v10164_v14  ;;  %v275_v14 = vshrl.u32 %v7917_v3, 16  ;;  %v272_v24 = vrot.slane %v270_v11, 1  ;;  %v728_v31 = vor.u32 %v727_v16, %v723_v5  ;;  %v11215_v5 = vld [vmem:[%s13734_s0 + $0x38] sm:$0xf] }
  0x39   :  { %9179 = vmatprep.subr.bf16.mxu1 %v10174_v17  ;;  %v732_v17 = vshll.u32 %v8007_v54, 16 }
  0x3a   :  { %v273_v38 = vor.u32 %v272_v24, %v268_v10  ;;  %9850 = vmatpush3.bf16.msra.mxu0 %v10190_v19  ;;  %v305_v24 = vshll.u32 %v7921_v4, 16 }
  0x3b   :  { %1158 = vmatmul.mubr.bf16.gmra.mxu0 %v8085_v33  ;;  %9836 = vmatmul.mubr.bf16.gmra.mxu1 %v8099_v56  ;;  %v734_v32 = vrot.slane %v732_v17, 1  ;;  %v7919_v33 = vcombine.low %v11132_v13, %v11151_v26  ;;  %v11198_v56 = vcombine.low %v11161_v28, %v11056_v36  ;;  %v7920_v36 = vcombine.low %v11170_v34, %v11180_v20 }
  0x3c   :  { %9180 = vmatpush3.bf16.msra.mxu1 %v10176_v30  ;;  %v279_v30 = vrot.slane %v277_v15, 1  ;;  %1165 = vmatprep.mubr.bf16.mxu0 %v8089_v23  ;;  %v10207_v15 = vld [vmem:[%s13735_s1 + $0x1f8] sm:$0xff]   ;;  %v303_v13 = vshrl.u32 %v7921_v4, 16 }
  0x3d   :  { %9181 = vmatprep.subr.bf16.mxu1 %v10177_v47  ;;  %v735_v42 = vor.u32 %v734_v32, %v730_v7  ;;  %v289_v43 = vshrl.u32 %v7919_v33, 16  ;;  %v291_v44 = vshll.u32 %v7919_v33, 16  ;;  %v8010_v47 = vcombine.low %v11146_v22, %v11044_v29  ;;  %9851 = vmatprep.subr.bf16.mxu0 %v10195_v51  ;;  %v10201_v7 = vld [vmem:[%s13735_s1 + $0x238] sm:$0xff]   ;;  %v10209_v33 = vld [vmem:[%s13735_s1 + $0x230] sm:$0xff]  }
  0x3e   :  { %v280_v35 = vor.u32 %v279_v30, %v275_v14  ;;  %v739_v29 = vshll.u32 %v11141_v21, 16  ;;  %9852 = vmatpush3.bf16.msra.mxu0 %v10195_v51  ;;  %v11230_v14 = vld [vmem:[%s13734_s0 + $0x3c] sm:$0x1]  ;;  %v298_v23 = vshll.u32 %v7920_v36, 16  ;;  %v758_v30 = vshrl.u32 %v11198_v56, 16 }
  0x3f   :  { %v8092_v53 = vcombine.low %v728_v31, %v735_v42  ;;  %v293_v54 = vrot.slane %v291_v44, 1  ;;  %v751_v10 = vshrl.u32 %v8010_v47, 16  ;;  %v753_v11 = vshll.u32 %v8010_v47, 16  ;;  %9853 = vmatprep.subr.bf16.mxu0 %v10200_v62  ;;  %v11260_v44 = vld [vmem:[%s13734_s0 + $0x54] sm:$0x1] }
  0x40   :  { %9182 = vmatpush3.bf16.msra.mxu1 %v10178_v49  ;;  %v737_v49 = vshrl.u32 %v11141_v21, 16  ;;  %v8125_v52 = vcombine.low %v273_v38, %v280_v35  ;;  %v741_v3 = vrot.slane %v739_v29, 1  ;;  %v296_v21 = vshrl.u32 %v7920_v36, 16  ;;  %v173_v47 = vld [vmem:[%s13734_s0 + $0x10] sm:$0xe] }
  0x41   :  { %v294_v0 = vor.u32 %v293_v54, %v289_v43  ;;  %9871 = vmatprep.subr.bf16.mxu1 %v10201_v7  ;;  %v755_v27 = vrot.slane %v753_v11, 1  ;;  %v300_v19 = vrot.slane %v298_v23, 1  ;;  %v760_v31 = vshll.u32 %v11198_v56, 16  ;;  %v174_v54 = vld [vmem:[%s13734_s0 + $0x18] sm:$0xe] }
  0x42   :  { %1519 = vmatprep.mubr.bf16.mxu1 %v8125_v52  ;;  %v742_v17 = vor.u32 %v741_v3, %v737_v49  ;;  %v7922_v32 = vcombine.low %v11203_v61, %v11220_v6  ;;  %v307_v38 = vrot.slane %v305_v24, 1  ;;  %v7923_v41 = vcombine.low %v11215_v5, %v11230_v14  ;;  %9854 = vmatpush3.bf16.msra.mxu0 %v10200_v62  ;;  %v11270_v52 = vld [vmem:[%s13734_s0 + $0x5c] sm:$0x1] }
  0x43   :  { %1166 = vmatmul.mubr.bf16.gmra.mxu0 %v8088_v60  ;;  %v746_v60 = vshll.u32 %v8009_v37, 16  ;;  %1520 = vmatmul.mubr.bf16.vlgmr.msra.gmra.mxu1 %v8124_v45  ;;  %v8128_v16 = vcombine.low %v287_v57, %v294_v0  ;;  %v756_v39 = vor.u32 %v755_v27, %v751_v10  ;;  %v762_v35 = vrot.slane %v760_v31, 1  ;;  %v172_v57 = vld [vmem:[%s13734_s0 + $0x8] sm:$0xe]  ;;  %v175_v27 = vld [vmem:[%s13734_s0 + $0x20] sm:$0xe] }
  0x44   :  { %1173 = vmatprep.mubr.bf16.mxu0 %v8092_v53  ;;  %9872 = vmatpush3.bf16.msra.mxu1 %v10201_v7  ;;  %v310_v42 = vshrl.u32 %v7922_v32, 16  ;;  %v312_v43 = vshll.u32 %v7922_v32, 16  ;;  %v308_v45 = vor.u32 %v307_v38, %v303_v13  ;;  %v317_v49 = vshrl.u32 %v7923_v41, 16  ;;  %v171_v53 = vld [vmem:[%s13734_s0] sm:$0xe] }
  0x45   :  { %v748_v9 = vrot.slane %v746_v60, 1  ;;  %1527 = vmatprep.mubr.bf16.mxu1 %v8128_v16  ;;  %9247 = vmatprep.subr.bf16.mxu0 %v10207_v15  ;;  %v319_v51 = vshll.u32 %v7923_v41, 16  ;;  %v763_v29 = vor.u32 %v762_v35, %v758_v30  ;;  %v7924_v55 = vcombine.low %v11250_v25, %v11260_v44  ;;  %v10221_v15 = vld [vmem:[%s13735_s1 + $0x228] sm:$0xff]   ;;  %v11297_v13 = vld [vmem:[%s13734_s0 + $0x60] sm:$0xf] }
  0x46   :  { %9873 = vmatprep.subr.bf16.mxu1 %v10209_v33  ;;  %v314_v56 = vrot.slane %v312_v43, 1  ;;  %v7925_v2 = vcombine.low %v11255_v40, %v11270_v52  ;;  %v7932_v62 = vcombine.low %v171_v53, %v11101_v58  ;;  %v7933_v0 = vcombine.low %v172_v57, %v11108_v63  ;;  %v177_v32 = vld [vmem:[%s13734_s0 + $0x30] sm:$0xe]  ;;  %v180_v57 = vld [vmem:[%s13734_s0 + $0x58] sm:$0xe] }
  0x47   :  { %v749_v12 = vor.u32 %v748_v9, %v744_v59  ;;  %v321_v60 = vrot.slane %v319_v51, 1  ;;  %v8098_v3 = vcombine.low %v756_v39, %v763_v29  ;;  %v326_v4 = vshll.u32 %v7924_v55, 16  ;;  %v10224_v51 = vld [vmem:[%s13735_s1 + $0x220] sm:$0xff]  }
  0x48   :  { %9874 = vmatpush3.bf16.msra.mxu1 %v10209_v33  ;;  %v315_v36 = vor.u32 %v314_v56, %v310_v42  ;;  %v324_v9 = vshrl.u32 %v7924_v55, 16  ;;  %v331_v10 = vshrl.u32 %v7925_v2, 16  ;;  %v333_v11 = vshll.u32 %v7925_v2, 16  ;;  %v178_v42 = vld [vmem:[%s13734_s0 + $0x38] sm:$0xe] }
  0x49   :  { %v8095_v37 = vcombine.low %v742_v17, %v749_v12  ;;  %v322_v7 = vor.u32 %v321_v60, %v317_v49  ;;  %v328_v16 = vrot.slane %v326_v4, 1  ;;  %v427_v17 = vrot.slane %v7932_v62, 1  ;;  %9875 = vmatprep.subr.bf16.mxu1 %v10221_v15  ;;  %v179_v2 = vld [vmem:[%s13734_s0 + $0x50] sm:$0xe] }
  0x4a   :  { %v7935_v58 = vcombine.low %v174_v54, %v11151_v26  ;;  %v8130_v63 = vcombine.low %v11170_v34, %v11175_v46  ;;  %v428_v23 = vrot.slane %v7933_v0, 1  ;;  %v11307_v26 = vld [vmem:[%s13734_s0 + $0x64] sm:$0x1]  ;;  %v8097_v34 = vcombine.low %v11146_v22, %v11161_v28  ;;  %v11314_v46 = vld [vmem:[%s13734_s0 + $0x6c] sm:$0x1] }
  0x4b   :  { %1174 = vmatmul.mubr.bf16.gmra.mxu0 %v8091_v1  ;;  %v301_v1 = vor.u32 %v300_v19, %v296_v21  ;;  %1528 = vmatmul.mubr.bf16.gmra.mxu1 %v8127_v8  ;;  %v7934_v8 = vcombine.low %v173_v47, %v11137_v18  ;;  %v335_v21 = vrot.slane %v333_v11, 1  ;;  %v8134_v12 = vcombine.low %v315_v36, %v322_v7  ;;  %v11302_v18 = vld [vmem:[%s13734_s0 + $0x68] sm:$0xf]  ;;  %v11343_v54 = vld [vmem:[%s13734_s0 + $0x70] sm:$0xf] }
  0x4c   :  { %1181 = vmatprep.mubr.bf16.mxu0 %v8095_v37  ;;  %9876 = vmatpush3.bf16.msra.mxu1 %v10221_v15  ;;  %v7926_v24 = vcombine.low %v11297_v13, %v11307_v26  ;;  %v176_v19 = vld [vmem:[%s13734_s0 + $0x28] sm:$0xe]  ;;  %v7927_v22 = vcombine.low %v11302_v18, %v11314_v46  ;;  %v7936_v28 = vcombine.low %v175_v27, %v11180_v20  ;;  %v430_v33 = vrot.slane %v7935_v58, 1  ;;  %v10210_v36 = vld [vmem:[%s13735_s1 + $0x1f0] sm:$0xff]   ;;  %v181_v11 = vld [vmem:[%s13734_s0 + $0x60] sm:$0xe] }
  0x4d   :  { %v8131_v59 = vcombine.low %v301_v1, %v308_v45  ;;  %v429_v30 = vrot.slane %v7934_v8, 1  ;;  %v7937_v31 = vcombine.low %v176_v19, %v11190_v50  ;;  %v8126_v37 = vcombine.low %v427_v17, %v428_v23  ;;  %9877 = vmatprep.subr.bf16.mxu1 %v10224_v51  ;;  %v10211_v15 = vld [vmem:[%s13735_s1 + $0x1b0] sm:$0xff]   ;;  %v10234_v17 = vld [vmem:[%s13735_s1 + $0x218] sm:$0xff]   ;;  %v10219_v58 = vld [vmem:[%s13735_s1 + $0x1e8] sm:$0xff]  }
  0x4e   :  { %v340_v38 = vshll.u32 %v7926_v24, 16  ;;  %v329_v39 = vor.u32 %v328_v16, %v324_v9  ;;  %v336_v41 = vor.u32 %v335_v21, %v331_v10  ;;  %v338_v1 = vshrl.u32 %v7926_v24, 16  ;;  %v182_v16 = vld [vmem:[%s13734_s0 + $0x68] sm:$0xe] }
  0x4f   :  { %1535 = vmatprep.mubr.bf16.mxu1 %v8131_v59  ;;  %v347_v35 = vshll.u32 %v7927_v22, 16  ;;  %v345_v20 = vshrl.u32 %v7927_v22, 16  ;;  %v431_v43 = vrot.slane %v7936_v28, 1  ;;  %v432_v47 = vrot.slane %v7937_v31, 1  ;;  %v10208_v59 = vld [vmem:[%s13735_s1 + $0x1b8] sm:$0xff]   ;;  %v10220_v19 = vld [vmem:[%s13735_s1 + $0x1a8] sm:$0xff]  }
  0x50   :  { %v342_v50 = vrot.slane %v340_v38, 1  ;;  %v8133_v45 = vcombine.low %v11203_v61, %v11215_v5  ;;  %v7938_v49 = vcombine.low %v177_v32, %v11220_v6  ;;  %v8137_v53 = vcombine.low %v329_v39, %v336_v41  ;;  %v11349_v61 = vld [vmem:[%s13734_s0 + $0x78] sm:$0xf]  ;;  %v11354_v5 = vld [vmem:[%s13734_s0 + $0x74] sm:$0x1]  ;;  %9878 = vmatpush3.bf16.msra.mxu1 %v10224_v51  ;;  %v10222_v38 = vld [vmem:[%s13735_s1 + $0x1e0] sm:$0xff]  }
  0x51   :  { %v7939_v29 = vcombine.low %v178_v42, %v11230_v14  ;;  %v11359_v6 = vld [vmem:[%s13734_s0 + $0x7c] sm:$0x1]  ;;  %v8129_v56 = vcombine.low %v429_v30, %v430_v33  ;;  %v7928_v14 = vcombine.low %v11343_v54, %v11354_v5  ;;  %v8132_v60 = vcombine.low %v431_v43, %v432_v47  ;;  %9879 = vmatprep.subr.bf16.mxu1 %v10234_v17  ;;  %v170_v33 = vld [vmem:[%s13734_s0 + $0x8c] sm:$0x1]  ;;  %v186_v47 = vld [vmem:[%s13734_s0 + $0x88] sm:$0xe] }
  0x52   :  { %v7929_v55 = vcombine.low %v11349_v61, %v11359_v6  ;;  %v433_v62 = vrot.slane %v7938_v49, 1  ;;  %v7940_v0 = vcombine.low %v179_v2, %v11260_v44  ;;  %v343_v4 = vor.u32 %v342_v50, %v338_v1 }
  0x53   :  { %1182 = vmatmul.mubr.bf16.gmra.mxu0 %v8094_v48  ;;  %1536 = vmatmul.mubr.bf16.gmra.mxu1 %v8130_v63  ;;  %v349_v48 = vrot.slane %v347_v35, 1  ;;  %v354_v9 = vshll.u32 %v7928_v14, 16  ;;  %v434_v44 = vrot.slane %v7939_v29, 1  ;;  %v352_v8 = vshrl.u32 %v7928_v14, 16  ;;  %v184_v35 = vld [vmem:[%s13734_s0 + $0x78] sm:$0xe] }
  0x54   :  { %1189 = vmatprep.mubr.bf16.mxu0 %v8098_v3  ;;  %1543 = vmatprep.mubr.bf16.mxu1 %v8134_v12  ;;  %v7941_v3 = vcombine.low %v180_v57, %v11270_v52  ;;  %v361_v10 = vshll.u32 %v7929_v55, 16  ;;  %v359_v52 = vshrl.u32 %v7929_v55, 16  ;;  %v435_v63 = vrot.slane %v7940_v0, 1  ;;  %v10247_v57 = vld [vmem:[%s13735_s1 + $0x208] sm:$0xff]  }
  0x55   :  { %v350_v7 = vor.u32 %v349_v48, %v345_v20  ;;  %v8136_v23 = vcombine.low %v11250_v25, %v11255_v40  ;;  %v356_v12 = vrot.slane %v354_v9, 1  ;;  %v7942_v27 = vcombine.low %v181_v11, %v11307_v26  ;;  %9880 = vmatpush3.bf16.msra.mxu1 %v10234_v17  ;;  %v10237_v25 = vld [vmem:[%s13735_s1 + $0x210] sm:$0xff]   ;;  %v11407_v40 = vld [vmem:[%s13734_s0 + $0x80] sm:$0xf]  ;;  %v11412_v26 = vld [vmem:[%s13734_s0 + $0x88] sm:$0xf] }
  0x56   :  { %v436_v21 = vrot.slane %v7941_v3, 1  ;;  %v8135_v30 = vcombine.low %v433_v62, %v434_v44  ;;  %v7943_v22 = vcombine.low %v182_v16, %v11314_v46  ;;  %v169_v46 = vld [vmem:[%s13734_s0 + $0x84] sm:$0x1]  ;;  %v7931_v1 = vcombine.low %v11412_v26, %v170_v33  ;;  %v185_v20 = vld [vmem:[%s13734_s0 + $0x80] sm:$0xe]  ;;  %9881 = vmatprep.subr.bf16.mxu1 %v10237_v25  ;;  %v10235_v62 = vld [vmem:[%s13735_s1 + $0x1d0] sm:$0xff]  }
  0x57   :  { %v8140_v24 = vcombine.low %v343_v4, %v350_v7  ;;  %v357_v28 = vor.u32 %v356_v12, %v352_v8  ;;  %v437_v39 = vrot.slane %v7942_v27, 1  ;;  %v7930_v41 = vcombine.low %v11407_v40, %v169_v46  ;;  %v10250_v9 = vld [vmem:[%s13735_s1 + $0x200] sm:$0xff]   ;;  %v11471_v11 = vld [vmem:[%s13734_s0 + $0x18] sm:$0xf]  ;;  %v8188_v44 = vld [vmem:[%s13734_s0 + $0x14] sm:$0x1] }
  0x58   :  { %v8138_v32 = vcombine.low %v435_v63, %v436_v21  ;;  %v8139_v43 = vcombine.low %v11297_v13, %v11302_v18  ;;  %v7945_v50 = vcombine.low %v184_v35, %v11359_v6  ;;  %v438_v48 = vrot.slane %v7943_v22, 1  ;;  %v8189_v8 = vld [vmem:[%s13734_s0 + $0x1c] sm:$0x1]  ;;  %v10245_v17 = vld [vmem:[%s13735_s1 + $0x1c8] sm:$0xff]   ;;  %v8205_v21 = vld [vmem:[%s13734_s0 + $0x18] sm:$0xe] }
  0x59   :  { %v368_v49 = vshll.u32 %v7930_v41, 16  ;;  %v375_v51 = vshll.u32 %v7931_v1, 16  ;;  %9882 = vmatpush3.bf16.msra.mxu1 %v10237_v25  ;;  %v366_v13 = vshrl.u32 %v7930_v41, 16  ;;  %v373_v18 = vshrl.u32 %v7931_v1, 16  ;;  %v11507_v27 = vld [vmem:[%s13734_s0 + $0x20] sm:$0xf] }
  0x5a   :  { %v7947_v2 = vcombine.low %v186_v47, %v170_v33  ;;  %9883 = vmatprep.subr.bf16.mxu1 %v10247_v57  ;;  %v8142_v16 = vcombine.low %v11343_v54, %v11349_v61  ;;  %v8221_v63 = vcombine.low %v11471_v11, %v8189_v8  ;;  %v8237_v12 = vcombine.low %v8205_v21, %v8189_v8  ;;  %v11527_v1 = vld [vmem:[%s13734_s0 + $0x30] sm:$0xf]  ;;  %v8192_v35 = vld [vmem:[%s13734_s0 + $0x34] sm:$0x1]  ;;  %v8193_v47 = vld [vmem:[%s13734_s0 + $0x3c] sm:$0x1] }
  0x5b   :  { %1190 = vmatmul.mubr.bf16.gmra.mxu0 %v8097_v34  ;;  %1544 = vmatmul.mubr.bf16.gmra.mxu1 %v8133_v45  ;;  %v363_v34 = vrot.slane %v361_v10, 1  ;;  %v10223_v45 = vld [vmem:[%s13735_s1 + $0x1a0] sm:$0xff]   ;;  %v370_v14 = vrot.slane %v368_v49, 1  ;;  %v377_v55 = vrot.slane %v375_v51, 1  ;;  %v11466_v10 = vld [vmem:[%s13734_s0 + $0x10] sm:$0xf] }
  0x5c   :  { %9855 = vmatprep.mubr.bf16.mxu0 %v8126_v37  ;;  %1551 = vmatprep.mubr.bf16.mxu1 %v8137_v53  ;;  %v183_v37 = vld [vmem:[%s13734_s0 + $0x70] sm:$0xe]  ;;  %v7946_v53 = vcombine.low %v185_v20, %v169_v46  ;;  %v11458_v7 = vrot.slane %v7947_v2, 1  ;;  %v1818_v22 = vshrl.u32 %v8221_v63, 16  ;;  %v1820_v25 = vshll.u32 %v8221_v63, 16  ;;  %v10249_v51 = vld [vmem:[%s13735_s1 + $0x180] sm:$0xff]  }
  0x5d   :  { %v364_v31 = vor.u32 %v363_v34, %v359_v52  ;;  %v7944_v42 = vcombine.low %v183_v37, %v11354_v5  ;;  %v440_v5 = vrot.slane %v7945_v50, 1  ;;  %v371_v0 = vor.u32 %v370_v14, %v366_v13  ;;  %9884 = vmatpush3.bf16.msra.mxu1 %v10247_v57  ;;  %v8204_v52 = vld [vmem:[%s13734_s0 + $0x10] sm:$0xe]  ;;  %v8191_v34 = vld [vmem:[%s13734_s0 + $0x2c] sm:$0x1] }
  0x5e   :  { %v378_v3 = vor.u32 %v377_v55, %v373_v18  ;;  %v11456_v4 = vrot.slane %v7946_v53, 1  ;;  %9885 = vmatprep.subr.bf16.mxu1 %v10250_v9  ;;  %v8236_v61 = vcombine.low %v8204_v52, %v8188_v44  ;;  %v8207_v46 = vld [vmem:[%s13734_s0 + $0x28] sm:$0xe]  ;;  %v11537_v50 = vld [vmem:[%s13734_s0 + $0x38] sm:$0xf] }
  0x5f   :  { %v439_v29 = vrot.slane %v7944_v42, 1  ;;  %v8143_v6 = vcombine.low %v357_v28, %v364_v31  ;;  %v11512_v28 = vld [vmem:[%s13734_s0 + $0x28] sm:$0xf]  ;;  %v8145_v42 = vcombine.low %v11407_v40, %v11412_v26  ;;  %v8239_v53 = vcombine.low %v8207_v46, %v8191_v34  ;;  %v11561_v57 = vld [vmem:[%s13734_s0 + $0x40] sm:$0xf] }
  0x60   :  { %v8146_v54 = vcombine.low %v371_v0, %v378_v3  ;;  %v8147_v31 = vcombine.low %v11456_v4, %v11458_v7  ;;  %v8223_v41 = vcombine.low %v11512_v28, %v8191_v34  ;;  %v1970_v20 = vrot.slane %v8236_v61, 1  ;;  %v8195_v4 = vld [vmem:[%s13734_s0 + $0x4c] sm:$0x1]  ;;  %v8210_v52 = vld [vmem:[%s13734_s0 + $0x40] sm:$0xe] }
  0x61   :  { %9886 = vmatpush3.bf16.msra.mxu1 %v10250_v9  ;;  %v8225_v2 = vcombine.low %v11537_v50, %v8193_v47  ;;  %v1973_v8 = vrot.slane %v8239_v53, 1  ;;  %v8196_v34 = vld [vmem:[%s13734_s0 + $0x64] sm:$0x1] }
  0x62   :  { %v1832_v13 = vshrl.u32 %v8223_v41, 16  ;;  %v1834_v18 = vshll.u32 %v8223_v41, 16 }
  0x63   :  { %9856 = vmatmul.mubr.bf16.vlgmr.msra.gmra.mxu0 %v8129_v56  ;;  %1552 = vmatmul.mubr.bf16.gmra.mxu1 %v8136_v23  ;;  %v10232_v56 = vld [vmem:[%s13735_s1 + $0x1d8] sm:$0xff]   ;;  %v8190_v23 = vld [vmem:[%s13734_s0 + $0x24] sm:$0x1]  ;;  %v1848_v9 = vshll.u32 %v8225_v2, 16  ;;  %v1846_v63 = vshrl.u32 %v8225_v2, 16 }
  0x64   :  { %9248 = vmatpush3.bf16.msra.mxu0 %v10208_v59  ;;  %9859 = vmatprep.mubr.bf16.mxu0 %v8132_v60  ;;  %v8141_v59 = vcombine.low %v437_v39, %v438_v48  ;;  %v10233_v60 = vld [vmem:[%s13735_s1 + $0x198] sm:$0xff]   ;;  %v8222_v39 = vcombine.low %v11507_v27, %v8190_v23  ;;  %v1836_v0 = vrot.slane %v1834_v18, 1 }
  0x65   :  { %9249 = vmatprep.subr.bf16.mxu0 %v10210_v36  ;;  %1559 = vmatprep.mubr.bf16.mxu1 %v8140_v24  ;;  %v8144_v36 = vcombine.low %v439_v29, %v440_v5  ;;  %v8206_v24 = vld [vmem:[%s13734_s0 + $0x20] sm:$0xe]  ;;  %v8224_v29 = vcombine.low %v11527_v1, %v8192_v35  ;;  %v8208_v5 = vld [vmem:[%s13734_s0 + $0x30] sm:$0xe]  ;;  %v1850_v21 = vrot.slane %v1848_v9, 1 }
  0x66   :  { %v8238_v33 = vcombine.low %v8206_v24, %v8190_v23  ;;  %v1825_v40 = vshrl.u32 %v8222_v39, 16  ;;  %v1827_v26 = vshll.u32 %v8222_v39, 16  ;;  %v8197_v24 = vld [vmem:[%s13734_s0 + $0x6c] sm:$0x1] }
  0x67   :  { %v1841_v3 = vshll.u32 %v8224_v29, 16  ;;  %v1851_v41 = vor.u32 %v1850_v21, %v1846_v63  ;;  %v8201_v9 = vld [vmem:[%s13734_s0 + $0x8c] sm:$0x1]  ;;  %v11677_v63 = vld [vmem:[%s13734_s0 + $0x98] sm:$0xf] }
  0x68   :  { %9250 = vmatpush3.bf16.msra.mxu0 %v10211_v15  ;;  %v10236_v15 = vld [vmem:[%s13735_s1 + $0x190] sm:$0xff]   ;;  %v11555_v14 = vrot.slane %v8238_v33, 1  ;;  %v1829_v55 = vrot.slane %v1827_v26, 1 }
  0x69   :  { %9251 = vmatprep.subr.bf16.mxu0 %v10219_v58  ;;  %v8220_v58 = vcombine.low %v11466_v10, %v8188_v44  ;;  %v8214_v26 = vld [vmem:[%s13734_s0 + $0x70] sm:$0xe]  ;;  %v8202_v21 = vld [vmem:[%s13734_s0 + $0x94] sm:$0x1] }
  0x6a   :  { %v1830_v7 = vor.u32 %v1829_v55, %v1825_v40 }
  0x6b   :  { %9860 = vmatmul.mubr.bf16.gmra.mxu0 %v8135_v30  ;;  %1560 = vmatmul.mubr.bf16.gmra.mxu1 %v8139_v43  ;;  %v1813_v30 = vshll.u32 %v8220_v58, 16  ;;  %v1971_v43 = vrot.slane %v8237_v12, 1  ;;  %v11592_v12 = vld [vmem:[%s13734_s0 + $0x68] sm:$0xf] }
  0x6c   :  { %9252 = vmatpush3.bf16.msra.mxu0 %v10220_v19  ;;  %9863 = vmatprep.mubr.bf16.mxu0 %v8138_v32  ;;  %v1811_v19 = vshrl.u32 %v8220_v58, 16  ;;  %v10246_v32 = vld [vmem:[%s13735_s1 + $0x188] sm:$0xff]   ;;  %v1843_v58 = vrot.slane %v1841_v3, 1 }
  0x6d   :  { %9253 = vmatprep.subr.bf16.mxu0 %v10222_v38  ;;  %1567 = vmatprep.mubr.bf16.mxu1 %v8143_v6  ;;  %v1815_v37 = vrot.slane %v1813_v30, 1  ;;  %v1822_v38 = vrot.slane %v1820_v25, 1  ;;  %v8209_v6 = vld [vmem:[%s13734_s0 + $0x38] sm:$0xe]  ;;  %v8212_v25 = vld [vmem:[%s13734_s0 + $0x60] sm:$0xe] }
  0x6e   :  { %v8241_v44 = vcombine.low %v8209_v6, %v8193_v47  ;;  %v8199_v47 = vld [vmem:[%s13734_s0 + $0x7c] sm:$0x1]  ;;  %v8244_v18 = vcombine.low %v8212_v25, %v8196_v34 }
  0x6f   :  { %v1816_v48 = vor.u32 %v1815_v37, %v1811_v19  ;;  %v1823_v49 = vor.u32 %v1822_v38, %v1818_v22  ;;  %v8213_v37 = vld [vmem:[%s13734_s0 + $0x68] sm:$0xe]  ;;  %v11610_v38 = vld [vmem:[%s13734_s0 + $0x70] sm:$0xf] }
  0x70   :  { %9254 = vmatpush3.bf16.msra.mxu0 %v10223_v45  ;;  %v10248_v45 = vld [vmem:[%s13735_s1 + $0x1c0] sm:$0xff]   ;;  %v1975_v30 = vrot.slane %v8241_v44, 1  ;;  %v1978_v44 = vrot.slane %v8244_v18, 1 }
  0x71   :  { %9255 = vmatprep.subr.bf16.mxu0 %v10232_v56  ;;  %v8301_v56 = vcombine.low %v1816_v48, %v1823_v49 }
  0x73   :  { %9864 = vmatmul.mubr.bf16.gmra.mxu0 %v8141_v59  ;;  %1568 = vmatmul.mubr.bf16.gmra.mxu1 %v8142_v16  ;;  %v8194_v59 = vld [vmem:[%s13734_s0 + $0x44] sm:$0x1]  ;;  %v8211_v16 = vld [vmem:[%s13734_s0 + $0x48] sm:$0xe] }
  0x74   :  { %9256 = vmatpush3.bf16.msra.mxu0 %v10233_v60  ;;  %9867 = vmatprep.mubr.bf16.mxu0 %v8144_v36  ;;  %v8300_v60 = vcombine.low %v11466_v10, %v11471_v11  ;;  %v11571_v36 = vld [vmem:[%s13734_s0 + $0x48] sm:$0xf]  ;;  %v1837_v10 = vor.u32 %v1836_v0, %v1832_v13  ;;  %v1839_v11 = vshrl.u32 %v8224_v29, 16  ;;  %v8243_v46 = vcombine.low %v8211_v16, %v8195_v4 }
  0x75   :  { %9257 = vmatprep.subr.bf16.mxu0 %v10235_v62  ;;  %1575 = vmatprep.mubr.bf16.mxu1 %v8146_v54  ;;  %v8302_v62 = vcombine.low %v1970_v20, %v1971_v43  ;;  %v8227_v23 = vcombine.low %v11571_v36, %v8195_v4  ;;  %v11587_v54 = vld [vmem:[%s13734_s0 + $0x60] sm:$0xf]  ;;  %v11621_v20 = vld [vmem:[%s13734_s0 + $0x78] sm:$0xf]  ;;  %v8198_v43 = vld [vmem:[%s13734_s0 + $0x74] sm:$0x1] }
  0x76   :  { %v8304_v61 = vcombine.low %v1830_v7, %v1837_v10  ;;  %v1844_v39 = vor.u32 %v1843_v58, %v1839_v11  ;;  %v11640_v2 = vcombine.low %v11610_v38, %v8198_v43  ;;  %v8200_v7 = vld [vmem:[%s13734_s0 + $0x84] sm:$0x1]  ;;  %v8216_v11 = vld [vmem:[%s13734_s0 + $0x80] sm:$0xe]  ;;  %v11672_v58 = vld [vmem:[%s13734_s0 + $0x90] sm:$0xf] }
  0x77   :  { %v1862_v33 = vshll.u32 %v8227_v23, 16  ;;  %v1860_v49 = vshrl.u32 %v8227_v23, 16  ;;  %v8203_v23 = vld [vmem:[%s13734_s0 + $0x9c] sm:$0x1] }
  0x78   :  { %9258 = vmatpush3.bf16.msra.mxu0 %v10236_v15  ;;  %v8240_v15 = vcombine.low %v8208_v5, %v8192_v35  ;;  %v11613_v35 = vcombine.low %v11587_v54, %v8196_v34  ;;  %v1977_v5 = vrot.slane %v8243_v46, 1  ;;  %v8307_v55 = vcombine.low %v1844_v39, %v1851_v41 }
  0x79   :  { %9259 = vmatprep.subr.bf16.mxu0 %v10245_v17  ;;  %v8226_v17 = vcombine.low %v11561_v57, %v8194_v59  ;;  %v1864_v40 = vrot.slane %v1862_v33, 1  ;;  %v1881_v33 = vshrl.u32 %v11640_v2, 16 }
  0x7a   :  { %v1974_v19 = vrot.slane %v8240_v15, 1  ;;  %v1869_v13 = vshll.u32 %v11613_v35, 16  ;;  %v1867_v3 = vshrl.u32 %v11613_v35, 16  ;;  %v8248_v35 = vcombine.low %v8216_v11, %v8200_v7 }
  0x7b   :  { %9868 = vmatmul.mubr.bf16.gmra.mxu0 %v8147_v31  ;;  %1576 = vmatmul.mubr.bf16.gmra.mxu1 %v8145_v42  ;;  %v1855_v22 = vshll.u32 %v8226_v17, 16  ;;  %v8305_v31 = vcombine.low %v11555_v14, %v1973_v8  ;;  %v11616_v42 = vcombine.low %v11592_v12, %v8197_v24  ;;  %v8215_v14 = vld [vmem:[%s13734_s0 + $0x78] sm:$0xe]  ;;  %v1865_v0 = vor.u32 %v1864_v40, %v1860_v49 }
  0x7c   :  { %9260 = vmatpush3.bf16.msra.mxu0 %v10246_v32  ;;  %2291 = vmatprep.mubr.bf16.mxu0 %v8301_v56  ;;  %v8242_v32 = vcombine.low %v8210_v52, %v8194_v59  ;;  %v8308_v53 = vcombine.low %v1974_v19, %v1975_v30  ;;  %v8245_v56 = vcombine.low %v8213_v37, %v8197_v24  ;;  %v1871_v15 = vrot.slane %v1869_v13, 1  ;;  %v8217_v52 = vld [vmem:[%s13734_s0 + $0x88] sm:$0xe]  ;;  %v8218_v19 = vld [vmem:[%s13734_s0 + $0x90] sm:$0xe] }
  0x7d   :  { %9261 = vmatprep.subr.bf16.mxu0 %v10248_v45  ;;  %9887 = vmatprep.mubr.bf16.mxu1 %v8302_v62  ;;  %v1853_v45 = vshrl.u32 %v8226_v17, 16  ;;  %v1857_v48 = vrot.slane %v1855_v22, 1  ;;  %v1876_v6 = vshll.u32 %v11616_v42, 16  ;;  %v11643_v59 = vcombine.low %v11621_v20, %v8199_v47  ;;  %v8219_v37 = vld [vmem:[%s13734_s0 + $0x98] sm:$0xe] }
  0x7e   :  { %v1976_v29 = vrot.slane %v8242_v32, 1  ;;  %v1874_v4 = vshrl.u32 %v11616_v42, 16  ;;  %v1979_v8 = vrot.slane %v8245_v56, 1  ;;  %v8247_v10 = vcombine.low %v8215_v14, %v8199_v47 }
  0x7f   :  { %v1858_v62 = vor.u32 %v1857_v48, %v1853_v45  ;;  %v1878_v16 = vrot.slane %v1876_v6, 1  ;;  %v1890_v34 = vshll.u32 %v11643_v59, 16  ;;  %v8306_v30 = vcombine.low %v11527_v1, %v11537_v50 }
  0x80   :  { %9262 = vmatpush3.bf16.msra.mxu0 %v10249_v51  ;;  %v8303_v51 = vcombine.low %v11507_v27, %v11512_v28  ;;  %v8246_v27 = vcombine.low %v8214_v26, %v8198_v43  ;;  %v11648_v28 = vld [vmem:[%s13734_s0 + $0x80] sm:$0xf]  ;;  %v8311_v22 = vcombine.low %v1976_v29, %v1977_v5  ;;  %v8314_v32 = vcombine.low %v1978_v44, %v1979_v8 }
  0x81   :  { %v8232_v24 = vcombine.low %v11648_v28, %v8200_v7  ;;  %v1981_v46 = vrot.slane %v8247_v10, 1  ;;  %v1888_v39 = vshrl.u32 %v11643_v59, 16  ;;  %v8249_v42 = vcombine.low %v8217_v52, %v8201_v9 }
  0x82   :  { %v1980_v17 = vrot.slane %v8246_v27, 1  ;;  %v8234_v1 = vcombine.low %v11672_v58, %v8202_v21  ;;  %v8235_v50 = vcombine.low %v11677_v63, %v8203_v23  ;;  %v1892_v45 = vrot.slane %v1890_v34, 1  ;;  %v10291_v34 = vld [vmem:[%s13736_s2 + $0x178] sm:$0xff]  }
  0x83   :  { %2292 = vmatmul.mubr.bf16.vlgmr.msra.gmra.mxu0 %v8300_v60  ;;  %v11653_v60 = vld [vmem:[%s13734_s0 + $0x88] sm:$0xf]  ;;  %9888 = vmatmul.mubr.bf16.vlgmr.msra.gmra.mxu1 %v8305_v31  ;;  %v8310_v31 = vcombine.low %v1858_v62, %v1865_v0  ;;  %v1897_v41 = vshll.u32 %v8232_v24, 16  ;;  %v1895_v48 = vshrl.u32 %v8232_v24, 16  ;;  %v8250_v40 = vcombine.low %v8218_v19, %v8202_v21  ;;  %v44_v24 = vld [vmem:[#allocation2 + $0x10] sm:$0x1] }
  0x84   :  { %2299 = vmatprep.mubr.bf16.mxu0 %v8304_v61  ;;  %9891 = vmatprep.mubr.bf16.mxu1 %v8308_v53  ;;  %v1883_v61 = vshll.u32 %v11640_v2, 16  ;;  %v8233_v25 = vcombine.low %v11653_v60, %v8201_v9  ;;  %v1982_v26 = vrot.slane %v8248_v35, 1  ;;  %v8251_v53 = vcombine.low %v8219_v37, %v8203_v23  ;;  %v94_v19 = vld [vmem:[#allocation2 + $0x14] sm:$0x1]  ;;  %v10297_v37 = vld [vmem:[%s13736_s2 + $0x128] sm:$0xff]  }
  0x85   :  { %v1872_v13 = vor.u32 %v1871_v15, %v1867_v3  ;;  %v1899_v18 = vrot.slane %v1897_v41, 1  ;;  %v1911_v29 = vshll.u32 %v8234_v1, 16  ;;  %v1984_v6 = vrot.slane %v8250_v40, 1  ;;  %9903 = vmatprep.subr.bf16.mxu0 %v10291_v34  ;;  %v10298_v35 = vld [vmem:[%s13736_s2 + $0xe8] sm:$0xff]  }
  0x86   :  { %v1885_v43 = vrot.slane %v1883_v61, 1  ;;  %v1904_v47 = vshll.u32 %v8233_v25, 16  ;;  %v1902_v49 = vshrl.u32 %v8233_v25, 16  ;;  %v1909_v56 = vshrl.u32 %v8234_v1, 16  ;;  %9904 = vmatpush3.bf16.msra.mxu0 %v10291_v34  ;;  %v100_v1 = vld [vmem:[#allocation2 + $0x24] sm:$0x1] }
  0x87   :  { %v1918_v14 = vshll.u32 %v8235_v50, 16  ;;  %v8317_v2 = vcombine.low %v1980_v17, %v1981_v46  ;;  %v1985_v59 = vrot.slane %v8251_v53, 1  ;;  %v1916_v27 = vshrl.u32 %v8235_v50, 16  ;;  %v47_v46 = vld [vmem:[#allocation2 + $0x18] sm:$0x1]  ;;  %v10300_v50 = vld [vmem:[%s13736_s2 + $0x120] sm:$0xff]  }
  0x88   :  { %v1906_v5 = vrot.slane %v1904_v47, 1  ;;  %v1913_v0 = vrot.slane %v1911_v29, 1  ;;  %v8309_v9 = vcombine.low %v11561_v57, %v11571_v36  ;;  %v1886_v3 = vor.u32 %v1885_v43, %v1881_v33  ;;  %v97_v33 = vld [vmem:[#allocation2 + $0x1c] sm:$0x1]  ;;  %v10299_v43 = vld [vmem:[%s13736_s2 + $0x168] sm:$0xff]  }
  0x89   :  { %v1920_v7 = vrot.slane %v1918_v14, 1  ;;  %v1893_v15 = vor.u32 %v1892_v45, %v1888_v39  ;;  %v8323_v8 = vcombine.low %v1984_v6, %v1985_v59  ;;  %v1900_v11 = vor.u32 %v1899_v18, %v1895_v48  ;;  %v50_v47 = vld [vmem:[#allocation2 + $0x20] sm:$0x1]  ;;  %v53_v29 = vld [vmem:[#allocation2 + $0x28] sm:$0x1]  ;;  %v10303_v6 = vld [vmem:[%s13736_s2 + $0x118] sm:$0xff]  }
  0x8a   :  { %v1907_v52 = vor.u32 %v1906_v5, %v1902_v49  ;;  %v8315_v57 = vcombine.low %v11610_v38, %v11621_v20  ;;  %v8318_v21 = vcombine.low %v11648_v28, %v11653_v60  ;;  %v13748_v38 = vmov 0  ;;  %v91_v20 = vld [vmem:[#allocation2 + $0xc] sm:$0x1] }
  0x8b   :  { %2300 = vmatmul.mubr.bf16.gmra.mxu0 %v8303_v51  ;;  %9892 = vmatmul.mubr.bf16.gmra.mxu1 %v8311_v22  ;;  %v1983_v51 = vrot.slane %v8249_v42, 1  ;;  %v8316_v10 = vcombine.low %v1886_v3, %v1893_v15  ;;  %v1921_v17 = vor.u32 %v1920_v7, %v1916_v27  ;;  %v13749_v38 = vsel %vm11711_vm2, 4294967295, %v13748_v38  ;;  %v103_v5 = vld [vmem:[#allocation2 + $0x2c] sm:$0x1]  ;;  %v10304_v27 = vld [vmem:[%s13736_s2 + $0xd8] sm:$0xff]  }
  0x8c   :  { %2307 = vmatprep.mubr.bf16.mxu0 %v8307_v55  ;;  %9895 = vmatprep.mubr.bf16.mxu1 %v8314_v32  ;;  %v1879_v55 = vor.u32 %v1878_v16, %v1874_v4  ;;  %v8312_v4 = vcombine.low %v11587_v54, %v11592_v12  ;;  %v8319_v36 = vcombine.low %v1900_v11, %v1907_v52  ;;  %v41_v12 = vld [vmem:[#allocation2 + $0x8] sm:$0x1]  ;;  %v92_v60 = vsel %vm11718_vm4, 0, %v91_v20  ;;  %v10294_v32 = vld [vmem:[%s13736_s2 + $0x170] sm:$0xff]  }
  0x8d   :  { %v8320_v62 = vcombine.low %v1982_v26, %v1983_v51  ;;  %v1914_v16 = vor.u32 %v1913_v0, %v1909_v56  ;;  %v8321_v54 = vcombine.low %v11672_v58, %v11677_v63  ;;  %13750 = vst [vmem:[#allocation6_spill] sm:$0xff] %v13749_v38  ;;  %v42_v61 = vsel %vm11711_vm2, 0, %v41_v12  ;;  %93 = vst [vmem:[#allocation2 + $0xc] sm:$0x1] %v92_v60  ;;  %v10292_v58 = vld [vmem:[%s13736_s2 + $0x138] sm:$0xff]   ;;  %v10301_v26 = vld [vmem:[%s13736_s2 + $0xe0] sm:$0xff]  }
  0x8e   :  { %v8313_v44 = vcombine.low %v1872_v13, %v1879_v55  ;;  %43 = vst [vmem:[#allocation2 + $0x8] sm:$0x1] %v42_v61  ;;  %v10293_v63 = vld [vmem:[%s13736_s2 + $0xf8] sm:$0xff]   ;;  %9327 = vmatprep.subr.bf16.mxu1 %v10292_v58  ;;  %v45_v22 = vsel %vm11711_vm2, 0, %v44_v24  ;;  %v95_v25 = vsel %vm11718_vm4, 0, %v94_v19  ;;  %v48_v39 = vsel %vm11711_vm2, 0, %v47_v46  ;;  %9905 = vmatprep.subr.bf16.mxu0 %v10294_v32 }
  0x8f   :  { %v8322_v23 = vcombine.low %v1914_v16, %v1921_v17  ;;  %9328 = vmatpush3.bf16.msra.mxu1 %v10293_v63  ;;  %46 = vst [vmem:[#allocation2 + $0x10] sm:$0x1] %v45_v22  ;;  %96 = vst [vmem:[#allocation2 + $0x14] sm:$0x1] %v95_v25  ;;  %v98_v41 = vsel %vm11718_vm4, 0, %v97_v33  ;;  %9906 = vmatpush3.bf16.msra.mxu0 %v10294_v32  ;;  %v51_v49 = vsel %vm11711_vm2, 0, %v50_v47 }
  0x90   :  { %49 = vst [vmem:[#allocation2 + $0x18] sm:$0x1] %v48_v39  ;;  %99 = vst [vmem:[#allocation2 + $0x1c] sm:$0x1] %v98_v41  ;;  %v101_v40 = vsel %vm11718_vm4, 0, %v100_v1  ;;  %9907 = vmatprep.subr.bf16.mxu0 %v10299_v43  ;;  %v10302_v13 = vld [vmem:[%s13736_s2 + $0x160] sm:$0xff]  }
  0x91   :  { %52 = vst [vmem:[#allocation2 + $0x20] sm:$0x1] %v51_v49  ;;  %102 = vst [vmem:[#allocation2 + $0x24] sm:$0x1] %v101_v40  ;;  %v54_v14 = vsel %vm11711_vm2, 0, %v53_v29  ;;  %v104_v55 = vsel %vm11718_vm4, 0, %v103_v5 }
  0x92   :  { %55 = vst [vmem:[#allocation2 + $0x28] sm:$0x1] %v54_v14  ;;  %105 = vst [vmem:[#allocation2 + $0x2c] sm:$0x1] %v104_v55  ;;  %v10305_v0 = vld [vmem:[%s13736_s2 + $0x158] sm:$0xff]   ;;  %v10308_v52 = vld [vmem:[%s13736_s2 + $0x150] sm:$0xff]  }
  0x93   :  { %2308 = vmatmul.mubr.bf16.gmra.mxu0 %v8306_v30  ;;  %9896 = vmatmul.mubr.bf16.gmra.mxu1 %v8317_v2  ;;  %v10295_v30 = vld [vmem:[%s13736_s2 + $0x130] sm:$0xff]   ;;  %v59_v16 = vld [vmem:[#allocation2 + $0x38] sm:$0x1]  ;;  %v109_v17 = vld [vmem:[#allocation2 + $0x3c] sm:$0x1]  ;;  %v10703_v39 = vmov 0  }
  0x94   :  { %2315 = vmatprep.mubr.bf16.mxu0 %v8310_v31  ;;  %9899 = vmatprep.mubr.bf16.mxu1 %v8320_v62  ;;  %v10296_v31 = vld [vmem:[%s13736_s2 + $0xf0] sm:$0xff]   ;;  %v110_v12 = vsel %vm11718_vm4, 0, %v109_v17  ;;  %v10310_v60 = vld [vmem:[%s13736_s2 + $0xc8] sm:$0xff]   ;;  %v62_v19 = vld [vmem:[#allocation2 + $0x40] sm:$0x1] }
  0x95   :  { %9329 = vmatprep.subr.bf16.mxu1 %v10295_v30  ;;  %9908 = vmatpush3.bf16.msra.mxu0 %v10299_v43  ;;  %v56_v7 = vld [vmem:[#allocation2 + $0x30] sm:$0x1]  ;;  %111 = vst [vmem:[#allocation2 + $0x3c] sm:$0x1] %v110_v12  ;;  %v10311_v63 = vld [vmem:[%s13736_s2 + $0x148] sm:$0xff]   ;;  %v10314_v22 = vld [vmem:[%s13736_s2 + $0x100] sm:$0xff]  }
  0x96   :  { %9330 = vmatpush3.bf16.msra.mxu1 %v10296_v31  ;;  %9909 = vmatprep.subr.bf16.mxu0 %v10302_v13  ;;  %v57_v15 = vsel %vm11711_vm2, 0, %v56_v7  ;;  %v112_v30 = vld [vmem:[#allocation2 + $0x44] sm:$0x1]  ;;  %v63_v31 = vsel %vm11711_vm2, 0, %v62_v19  ;;  %28 = vst [vmem:[#allocation2] sm:$0xf] %v10703_v39 }
  0x97   :  { %9331 = vmatprep.subr.bf16.mxu1 %v10297_v37  ;;  %58 = vst [vmem:[#allocation2 + $0x30] sm:$0x1] %v57_v15  ;;  %v113_v32 = vsel %vm11718_vm4, 0, %v112_v30  ;;  %64 = vst [vmem:[#allocation2 + $0x40] sm:$0x1] %v63_v31  ;;  %v10315_v33 = vld [vmem:[%s13736_s2 + $0xc0] sm:$0xff]  }
  0x98   :  { %114 = vst [vmem:[#allocation2 + $0x44] sm:$0x1] %v113_v32  ;;  %29 = vst [vmem:[#allocation2 + $0x4] sm:$0x1] %v10703_v39  ;;  %v115_v43 = vld [vmem:[#allocation2 + $0x5c] sm:$0x1] }
  0x99   :  { %9910 = vmatpush3.bf16.msra.mxu0 %v10302_v13  ;;  %30 = vst [vmem:[#allocation2 + $0x50] sm:$0xf] %v10703_v39  ;;  %31 = vst [vmem:[#allocation2 + $0x54] sm:$0x1] %v10703_v39  ;;  %v10318_v5 = vld [vmem:[%s13736_s2 + $0x140] sm:$0xff]  }
  0x9a   :  { %9332 = vmatpush3.bf16.msra.mxu1 %v10298_v35  ;;  %9911 = vmatprep.subr.bf16.mxu0 %v10305_v0  ;;  %33 = vst [vmem:[#allocation2 + $0x48] sm:$0xf] %v10703_v39  ;;  %34 = vst [vmem:[#allocation2 + $0x4c] sm:$0x1] %v10703_v39  ;;  %v121_v14 = vld [vmem:[#allocation2 + $0x6c] sm:$0x1] }
  0x9b   :  { %2316 = vmatmul.mubr.bf16.gmra.mxu0 %v8309_v9  ;;  %9900 = vmatmul.mubr.bf16.gmra.mxu1 %v8323_v8  ;;  %v106_v9 = vld [vmem:[#allocation2 + $0x34] sm:$0x1]  ;;  %35 = vst [vmem:[#allocation2 + $0x98] sm:$0xf] %v10703_v39  ;;  %36 = vst [vmem:[#allocation2 + $0x9c] sm:$0x1] %v10703_v39 }
  0x9c   :  { %2323 = vmatprep.mubr.bf16.mxu0 %v8313_v44  ;;  %9333 = vmatprep.subr.bf16.mxu1 %v10300_v50  ;;  %v10306_v44 = vld [vmem:[%s13736_s2 + $0x110] sm:$0xff]   ;;  %v107_v8 = vsel %vm11718_vm4, 0, %v106_v9  ;;  %v116_v50 = vsel %vm11718_vm4, 0, %v115_v43  ;;  %v80_v39 = vld [vmem:[#allocation2 + $0x80] sm:$0x1] }
  0x9d   :  { %108 = vst [vmem:[#allocation2 + $0x34] sm:$0x1] %v107_v8  ;;  %9912 = vmatpush3.bf16.msra.mxu0 %v10305_v0  ;;  %117 = vst [vmem:[#allocation2 + $0x5c] sm:$0x1] %v116_v50  ;;  %v122_v0 = vsel %vm11718_vm4, 0, %v121_v14  ;;  %v81_v43 = vsel %vm11711_vm2, 0, %v80_v39 }
  0x9e   :  { %9334 = vmatpush3.bf16.msra.mxu1 %v10301_v26  ;;  %9913 = vmatprep.subr.bf16.mxu0 %v10308_v52  ;;  %v68_v26 = vld [vmem:[#allocation2 + $0x60] sm:$0x1]  ;;  %123 = vst [vmem:[#allocation2 + $0x6c] sm:$0x1] %v122_v0  ;;  %82 = vst [vmem:[#allocation2 + $0x80] sm:$0x1] %v81_v43 }
  0x9f   :  { %9335 = vmatprep.subr.bf16.mxu1 %v10303_v6  ;;  %v71_v6 = vld [vmem:[#allocation2 + $0x68] sm:$0x1] }
  0xa1   :  { %9914 = vmatpush3.bf16.msra.mxu0 %v10308_v52 }
  0xa2   :  { %9336 = vmatpush3.bf16.msra.mxu1 %v10304_v27  ;;  %9915 = vmatprep.subr.bf16.mxu0 %v10311_v63  ;;  %v72_v27 = vsel %vm11711_vm2, 0, %v71_v6 }
  0xa3   :  { %2324 = vmatmul.mubr.bf16.gmra.mxu0 %v8312_v4  ;;  %9337 = vmatprep.subr.bf16.mxu1 %v10306_v44  ;;  %73 = vst [vmem:[#allocation2 + $0x68] sm:$0x1] %v72_v27 }
  0xa4   :  { %2331 = vmatprep.mubr.bf16.mxu0 %v8316_v10  ;;  %v10307_v10 = vld [vmem:[%s13736_s2 + $0xd0] sm:$0xff]  }
  0xa5   :  { %9916 = vmatpush3.bf16.msra.mxu0 %v10311_v63  ;;  %v77_v63 = vld [vmem:[#allocation2 + $0x78] sm:$0x1] }
  0xa6   :  { %9338 = vmatpush3.bf16.msra.mxu1 %v10307_v10  ;;  %9917 = vmatprep.subr.bf16.mxu0 %v10318_v5  ;;  %v78_v30 = vsel %vm11711_vm2, 0, %v77_v63 }
  0xa7   :  { %79 = vst [vmem:[#allocation2 + $0x78] sm:$0x1] %v78_v30 }
  0xa9   :  { %9918 = vmatpush3.bf16.msra.mxu0 %v10318_v5 }
  0xab   :  { %2332 = vmatmul.mubr.bf16.gmra.mxu0 %v8315_v57 }
  0xac   :  { %2339 = vmatprep.mubr.bf16.mxu0 %v8319_v36 }
  0xb3   :  { %2340 = vmatmul.mubr.bf16.gmra.mxu0 %v8318_v21  ;;  %v10309_v21 = vld [vmem:[%s13736_s2 + $0x108] sm:$0xff]  }
  0xb4   :  { %2347 = vmatprep.mubr.bf16.mxu0 %v8322_v23  ;;  %9339 = vmatprep.subr.bf16.mxu1 %v10309_v21 }
  0xb5   :  { %9340 = vmatpush3.bf16.msra.mxu1 %v10310_v60 }
  0xb6   :  { %9341 = vmatprep.subr.bf16.mxu1 %v10314_v22 }
  0xb9   :  { %9342 = vmatpush3.bf16.msra.mxu1 %v10315_v33 }
  0xbb   :  { %2348 = vmatmul.mubr.bf16.gmra.mxu0 %v8321_v54  ;;  %v60_v54 = vsel %vm11711_vm2, 0, %v59_v16  ;;  %v124_v16 = vld [vmem:[#allocation2 + $0x74] sm:$0x1] }
  0xbc   :  { %61 = vst [vmem:[#allocation2 + $0x38] sm:$0x1] %v60_v54 }
  0xe3   :  { %v11756_v42 = vpop.f32.mrf.mxu1  ;;  %v9103_v45 = vpop.f32.mrf.mxu0 }
  0xe5   :  { %v1232_v48 = vpop.f32.mrf.mxu1  ;;  %v9104_v51 = vpop.f32.mrf.mxu0 }
  0xe6   :  { %v9105_v18 = vadd.f32 %v9104_v51, %v9103_v45  ;;  %v118_v51 = vld [vmem:[#allocation2 + $0x64] sm:$0x1] }
  0xe7   :  { %v11771_v53 = vpop.f32.mrf.mxu1  ;;  %v11779_v56 = vpop.f32.mrf.mxu0  ;;  %v119_v13 = vsel %vm11718_vm4, 0, %v118_v51 }
  0xe8   :  { %v11785_v2 = vadd.f32 %v9105_v18, %v1232_v48  ;;  %120 = vst [vmem:[#allocation2 + $0x64] sm:$0x1] %v119_v13 }
  0xe9   :  { %v11787_v59 = vpop.f32.mrf.mxu1  ;;  %v11792_v62 = vpop.f32.mrf.mxu0 }
  0xeb   :  { %v9109_v3 = vpop.f32.mrf.mxu0  ;;  %v11804_v4 = vpop.f32.mrf.mxu1 }
  0xed   :  { %v9110_v11 = vpop.f32.mrf.mxu0  ;;  %v1248_v36 = vpop.f32.mrf.mxu1 }
  0xee   :  { %v9111_v57 = vadd.f32 %v9110_v11, %v9109_v3 }
  0xef   :  { %v9112_v23 = vpop.f32.mrf.mxu0  ;;  %v11822_v61 = vpop.f32.mrf.mxu1 }
  0xf0   :  { %v11820_v20 = vadd.f32 %v11756_v42, %v9111_v57  ;;  %v65_v42 = vld [vmem:[#allocation2 + $0x58] sm:$0x1] }
  0xf1   :  { %v9113_v58 = vpop.f32.mrf.mxu0  ;;  %v11830_v24 = vpop.f32.mrf.mxu1  ;;  %v66_v1 = vsel %vm11711_vm2, 0, %v65_v42 }
  0xf2   :  { %v9114_v34 = vadd.f32 %v9113_v58, %v9112_v23  ;;  %67 = vst [vmem:[#allocation2 + $0x58] sm:$0x1] %v66_v1 }
  0xf3   :  { %v9115_v25 = vpop.f32.mrf.mxu0  ;;  %v11845_v41 = vpop.f32.mrf.mxu1 }
  0xf4   :  { %v11840_v46 = vadd.f32 %v11771_v53, %v9114_v34  ;;  %v69_v53 = vsel %vm11711_vm2, 0, %v68_v26  ;;  %v127_v34 = vld [vmem:[#allocation2 + $0x7c] sm:$0x1] }
  0xf5   :  { %v9116_v37 = vpop.f32.mrf.mxu0  ;;  %v1264_v48 = vpop.f32.mrf.mxu1  ;;  %70 = vst [vmem:[#allocation2 + $0x60] sm:$0x1] %v69_v53  ;;  %v128_v22 = vsel %vm11718_vm4, 0, %v127_v34 }
  0xf6   :  { %v9117_v35 = vadd.f32 %v9116_v37, %v9115_v25  ;;  %129 = vst [vmem:[#allocation2 + $0x7c] sm:$0x1] %v128_v22 }
  0xf7   :  { %v11847_v47 = vpop.f32.mrf.mxu0  ;;  %v11857_v40 = vpop.f32.mrf.mxu1 }
  0xf8   :  { %v11853_v45 = vadd.f32 %v9117_v35, %v1248_v36  ;;  %v74_v36 = vld [vmem:[#allocation2 + $0x70] sm:$0x1]  ;;  %v130_v35 = vld [vmem:[#allocation2 + $0x84] sm:$0x1] }
  0xf9   :  { %v11855_v49 = vpop.f32.mrf.mxu0  ;;  %v11863_v18 = vpop.f32.mrf.mxu1  ;;  %v75_v21 = vsel %vm11711_vm2, 0, %v74_v36  ;;  %v131_v1 = vsel %vm11718_vm4, 0, %v130_v35 }
  0xfa   :  { %76 = vst [vmem:[#allocation2 + $0x70] sm:$0x1] %v75_v21  ;;  %132 = vst [vmem:[#allocation2 + $0x84] sm:$0x1] %v131_v1 }
  0xfb   :  { %v9121_v29 = vpop.f32.mrf.mxu0  ;;  %v11872_v7 = vpop.f32.mrf.mxu1 }
  0xfd   :  { %v9122_v55 = vpop.f32.mrf.mxu0  ;;  %v1280_v15 = vpop.f32.mrf.mxu1 }
  0xfe   :  { %v9123_v9 = vadd.f32 %v9122_v55, %v9121_v29 }
  0xff   :  { %v9124_v44 = vpop.f32.mrf.mxu0  ;;  %v11877_v10 = vpop.f32.mrf.mxu1 }
 0x100   :  { %v11875_v3 = vadd.f32 %v11804_v4, %v9123_v9  ;;  %v125_v4 = vsel %vm11718_vm4, 0, %v124_v16 }
 0x101   :  { %v9125_v8 = vpop.f32.mrf.mxu0  ;;  %v11882_v17 = vpop.f32.mrf.mxu1  ;;  %126 = vst [vmem:[#allocation2 + $0x74] sm:$0x1] %v125_v4 }
 0x102   :  { %v9126_v11 = vadd.f32 %v9125_v8, %v9124_v44 }
 0x103   :  { %v9127_v57 = vpop.f32.mrf.mxu0  ;;  %v11890_v60 = vpop.f32.mrf.mxu1 }
 0x104   :  { %v11880_v52 = vadd.f32 %v11822_v61, %v9126_v11 }
 0x105   :  { %v9128_v23 = vpop.f32.mrf.mxu0  ;;  %v11896_v19 = vpop.f32.mrf.mxu1 }
 0x106   :  { %v9129_v54 = vadd.f32 %v9128_v23, %v9127_v57 }
 0x107   :  { %v11888_v12 = vpop.f32.mrf.mxu0  ;;  %v11902_v31 = vpop.f32.mrf.mxu1 }
 0x108   :  { %v11892_v61 = vadd.f32 %v9129_v54, %v1264_v48 }
 0x109   :  { %v11894_v58 = vpop.f32.mrf.mxu0  ;;  %v11904_v33 = vpop.f32.mrf.mxu1 }
 0x10a   :  { %13753 = vst [vmem:[#allocation7_spill] sm:$0xff] %v11892_v61 }
 0x10b   :  { %v9133_v25 = vpop.f32.mrf.mxu0  ;;  %v11910_v50 = vpop.f32.mrf.mxu1 }
 0x10d   :  { %v9134_v32 = vpop.f32.mrf.mxu0 }
 0x10e   :  { %v9135_v37 = vadd.f32 %v9134_v32, %v9133_v25 }
 0x10f   :  { %v9136_v42 = vpop.f32.mrf.mxu0 }
 0x110   :  { %v11913_v48 = vadd.f32 %v11845_v41, %v9135_v37 }
 0x112   :  { %13754 = vst [vmem:[#allocation8_spill] sm:$0xff] %v11913_v48 }
 0x113   :  { %12 = vsyncpa [#allocation4], 0  ;;  %v9137_v26 = vpop.f32.mrf.mxu0  ;;  %v11915_v51 = vpop.f32.mrf.mxu1  ;;  %v83_v13 = vld [vmem:[#allocation2 + $0x88] sm:$0x1]  ;;  %v133_v6 = vld [vmem:[#allocation2 + $0x8c] sm:$0x1] }
 0x114   :  { %v9138_v53 = vadd.f32 %v9137_v26, %v9136_v42  ;;  %v84_v5 = vsel %vm11711_vm2, 0, %v83_v13  ;;  %v134_v41 = vsel %vm11718_vm4, 0, %v133_v6  ;;  %v86_v8 = vld [vmem:[#allocation2 + $0x90] sm:$0x1]  ;;  %v136_v16 = vld [vmem:[#allocation2 + $0x94] sm:$0x1] }
 0x115   :  { %v9139_v29 = vpop.f32.mrf.mxu0  ;;  %v11919_v14 = vpop.f32.mrf.mxu1  ;;  %85 = vst [vmem:[#allocation2 + $0x88] sm:$0x1] %v84_v5  ;;  %135 = vst [vmem:[#allocation2 + $0x8c] sm:$0x1] %v134_v41  ;;  %v87_v36 = vsel %vm11711_vm2, 0, %v86_v8  ;;  %v11941_v22 = vld [vmem:[%s13736_s2 + $0xb8] sm:$0xff]  }
 0x116   :  { %v1276_v55 = vadd.f32 %v11857_v40, %v9138_v53  ;;  %88 = vst [vmem:[#allocation2 + $0x90] sm:$0x1] %v87_v36  ;;  %v137_v40 = vsel %vm11718_vm4, 0, %v136_v16  ;;  %13755 = vst [vmem:[#allocation9_spill] sm:$0xff] %v11941_v22  ;;  %v10338_v28 = vld [vmem:[%s13736_s2 + $0x78] sm:$0xff]   ;;  %9935 = vmatprep.subr.bf16.mxu1 %v11941_v22  ;;  %vm2732_vm5 = vcmask 1043456  }
 0x117   :  { %v9140_v27 = vpop.f32.mrf.mxu0  ;;  %v11924_v0 = vpop.f32.mrf.mxu1  ;;  %138 = vst [vmem:[#allocation2 + $0x94] sm:$0x1] %v137_v40  ;;  %9407 = vmatprep.subr.bf16.mxu0 %v10338_v28  ;;  %vm12073_vm6 = vmand %vm2732_vm5, %vm89_vm3 }
 0x118   :  { %v9141_v9 = vadd.f32 %v9140_v27, %v9139_v29 }
 0x119   :  { %v9142_v44 = vpop.f32.mrf.mxu0  ;;  %v11926_v11 = vpop.f32.mrf.mxu1 }
 0x11a   :  { %v1281_v57 = vadd.f32 %v9141_v9, %v1280_v15 }
 0x11b   :  { %v9143_v21 = vpop.f32.mrf.mxu0  ;;  %v11932_v4 = vpop.f32.mrf.mxu1 }
 0x11c   :  { %v9144_v48 = vadd.f32 %v9143_v21, %v9142_v44 }
 0x11d   :  { %v9145_v23 = vpop.f32.mrf.mxu0  ;;  %v11934_v54 = vpop.f32.mrf.mxu1 }
 0x11f   :  { %v9146_v63 = vpop.f32.mrf.mxu0  ;;  %v11936_v34 = vpop.f32.mrf.mxu1 }
 0x120   :  { %v9147_v30 = vadd.f32 %v9146_v63, %v9145_v23 }
 0x121   :  { %v9148_v15 = vpop.f32.mrf.mxu0  ;;  %v11946_v25 = vpop.f32.mrf.mxu1 }
 0x122   :  { %v1289_v32 = vadd.f32 %v11872_v7, %v9147_v30 }
 0x123   :  { %v9149_v37 = vpop.f32.mrf.mxu0  ;;  %v11950_v39 = vpop.f32.mrf.mxu1 }
 0x124   :  { %v9150_v35 = vadd.f32 %v9149_v37, %v9148_v15 }
 0x125   :  { %v11952_v42 = vpop.f32.mrf.mxu0  ;;  %v11954_v43 = vpop.f32.mrf.mxu1 }
 0x126   :  { %v1292_v1 = vadd.f32 %v11877_v10, %v9150_v35 }
 0x127   :  { %v11957_v26 = vpop.f32.mrf.mxu0  ;;  %v11959_v53 = vpop.f32.mrf.mxu1 }
 0x129   :  { %v11961_v13 = vpop.f32.mrf.mxu0  ;;  %v11963_v7 = vpop.f32.mrf.mxu1 }
 0x12b   :  { %v11965_v29 = vpop.f32.mrf.mxu0  ;;  %v11967_v5 = vpop.f32.mrf.mxu1 }
 0x12d   :  { %v11969_v6 = vpop.f32.mrf.mxu0  ;;  %v11971_v41 = vpop.f32.mrf.mxu1 }
 0x12e   :  { %13756 = vst [vmem:[#allocation10_spill] sm:$0xff] %v11969_v6 }
 0x12f   :  { %v11973_v27 = vpop.f32.mrf.mxu0  ;;  %v11975_v9 = vpop.f32.mrf.mxu1 }
 0x130   :  { %13757 = vst [vmem:[#allocation11_spill] sm:$0xff] %v11973_v27 }
 0x131   :  { %v11977_v10 = vpop.f32.mrf.mxu0  ;;  %v11979_v8 = vpop.f32.mrf.mxu1 }
 0x132   :  { %13758 = vst [vmem:[#allocation12_spill] sm:$0xff] %v11977_v10  ;;  %13759 = vst [vmem:[#allocation13_spill] sm:$0xff] %v11979_v8 }
 0x133   :  { %v11981_v36 = vpop.f32.mrf.mxu0  ;;  %v11983_v16 = vpop.f32.mrf.mxu1 }
 0x134   :  { %13760 = vst [vmem:[#allocation14_spill] sm:$0xff] %v11981_v36  ;;  %13761 = vst [vmem:[#allocation15_spill] sm:$0xff] %v11983_v16 }
 0x135   :  { %v11985_v40 = vpop.f32.mrf.mxu0  ;;  %v9216_v23 = vpop.f32.mrf.mxu1 }
 0x136   :  { %13762 = vst [vmem:[#allocation16_spill] sm:$0xff] %v11985_v40 }
 0x137   :  { %v11987_v63 = vpop.f32.mrf.mxu0  ;;  %v9217_v30 = vpop.f32.mrf.mxu1 }
 0x138   :  { %13763 = vst [vmem:[#allocation17_spill] sm:$0xff] %v11987_v63  ;;  %v9218_v15 = vadd.f32 %v9217_v30, %v9216_v23  ;;  %v1284_v63 = vadd.f32 %v9144_v48, %v11882_v17 }
 0x139   :  { %v9866_v28 = vpop.f32.mrf.mxu0  ;;  %v9219_v37 = vpop.f32.mrf.mxu1 }
 0x13a   :  { %v1565_v35 = vadd.f32 %v9218_v15, %v1276_v55 }
 0x13b   :  { %v11989_v22 = vpop.f32.mrf.mxu0  ;;  %v9220_v38 = vpop.f32.mrf.mxu1 }
 0x13c   :  { %v9221_v10 = vadd.f32 %v9220_v38, %v9219_v37  ;;  %v11991_v27 = vadd.f32 %v9866_v28, %v1565_v35  ;;  %v9108_v35 = vadd.f32 %v11792_v62, %v11779_v56  ;;  %v9132_v62 = vadd.f32 %v11894_v58, %v11888_v12  ;;  %v12029_v12 = vld [vmem:[%s13738_s4] ss:$0 sm:$0xff] }
 0x13d   :  { %v9869_v36 = vpop.f32.mrf.mxu0  ;;  %v9222_v8 = vpop.f32.mrf.mxu1 }
 0x13e   :  { %13764 = vst [vmem:[#allocation18_spill] sm:$0xff] %v11991_v27  ;;  %v11993_v16 = vadd.f32 %v9221_v10, %v1281_v57  ;;  %v9185_v57 = vadd.f32 %v11896_v19, %v11890_v60  ;;  %v2846_v27 = vld [vmem:[#allocation2 + $0x4] sm:$0x1]  ;;  %v9188_v60 = vadd.f32 %v11904_v33, %v11902_v31  ;;  %v1236_v56 = vadd.f32 %v9108_v35, %v11787_v59 }
 0x13f   :  { %v11995_v40 = vpop.f32.mrf.mxu0  ;;  %v9223_v61 = vpop.f32.mrf.mxu1  ;;  %v9194_v59 = vadd.f32 %v11924_v0, %v11919_v14  ;;  %v1268_v14 = vadd.f32 %v9132_v62, %v11863_v18  ;;  %v9203_v0 = vadd.f32 %v11950_v39, %v11946_v25  ;;  %v9206_v35 = vadd.f32 %v11959_v53, %v11954_v43  ;;  %v13767_v62 = vld [vmem:[#allocation13_spill] sm:$0xff] }
 0x140   :  { %v9224_v23 = vadd.f32 %v9223_v61, %v9222_v8  ;;  %v1522_v19 = vadd.f32 %v9185_v57, %v11785_v2  ;;  %v9209_v18 = vadd.f32 %v11967_v5, %v11963_v7  ;;  %v9212_v7 = vadd.f32 %v11975_v9, %v11971_v41 }
 0x141   :  { %v9870_v30 = vpop.f32.mrf.mxu0  ;;  %v9225_v6 = vpop.f32.mrf.mxu1  ;;  %v1533_v25 = vadd.f32 %v9194_v59, %v11840_v46  ;;  %v1549_v46 = vadd.f32 %v9206_v35, %v11880_v52  ;;  %v2734_v35 = vld [vmem:[#allocation2 + $0x8] sm:$0xf] }
 0x142   :  { %v11998_v55 = vadd.f32 %v9224_v23, %v1284_v63  ;;  %v2830_v23 = vld [vmem:[#allocation2] sm:$0xf] }
 0x143   :  { %v12000_v15 = vpop.f32.mrf.mxu0  ;;  %v9226_v44 = vpop.f32.mrf.mxu1 }
 0x144   :  { %v9227_v38 = vadd.f32 %v9226_v44, %v9225_v6  ;;  %v9120_v6 = vadd.f32 %v11855_v49, %v11847_v47  ;;  %v1619_v47 = vadd.f32 %v11957_v26, %v1522_v19  ;;  %v9200_v26 = vadd.f32 %v11936_v34, %v11934_v54  ;;  %v13765_v19 = vld [vmem:[#allocation10_spill] sm:$0xff] }
 0x145   :  { %v9263_v21 = vpop.f32.mrf.mxu0  ;;  %v9228_v28 = vpop.f32.mrf.mxu1 }
 0x146   :  { %v1578_v10 = vadd.f32 %v9227_v38, %v1289_v32 }
 0x147   :  { %v9264_v37 = vpop.f32.mrf.mxu0  ;;  %v9229_v17 = vpop.f32.mrf.mxu1 }
 0x148   :  { %v12006_v61 = vadd.f32 %v9869_v36, %v1578_v10  ;;  %v9230_v48 = vadd.f32 %v9229_v17, %v9228_v28  ;;  %v9265_v8 = vadd.f32 %v9264_v37, %v9263_v21  ;;  %v9191_v36 = vadd.f32 %v11915_v51, %v11910_v50 }
 0x149   :  { %v9266_v63 = vpop.f32.mrf.mxu0  ;;  %v9889_v44 = vpop.f32.mrf.mxu1  ;;  %v12018_v28 = vcombine.low %v2830_v23, %v2846_v27  ;;  %v9197_v51 = vadd.f32 %v11932_v4, %v11926_v11  ;;  %v1525_v27 = vadd.f32 %v9188_v60, %v1236_v56  ;;  %v1546_v23 = vadd.f32 %v9203_v0, %v11875_v3 }
 0x14a   :  { %v1581_v32 = vadd.f32 %v9230_v48, %v1292_v1  ;;  %v1252_v1 = vadd.f32 %v9120_v6, %v11830_v24  ;;  %v1530_v57 = vadd.f32 %v9191_v36, %v11820_v20  ;;  %v13768_v36 = vld [vmem:[#allocation15_spill] sm:$0xff] }
 0x14b   :  { %v9267_v38 = vpop.f32.mrf.mxu0  ;;  %v2390_v21 = vpop.f32.mrf.mxu1  ;;  %v2959_v50 = vshrl.u32 %v12018_v28, 16  ;;  %v1622_v11 = vadd.f32 %v11965_v29, %v1525_v27  ;;  %v1538_v48 = vadd.f32 %v9197_v51, %v11853_v45  ;;  %v1557_v27 = vadd.f32 %v9212_v7, %v1268_v14 }
 0x14c   :  { %v12021_v49 = vadd.f32 %v9870_v30, %v1581_v32  ;;  %v2391_v31 = vadd.f32 %v9265_v8, %v2390_v21  ;;  %v9268_v33 = vadd.f32 %v9267_v38, %v9266_v63  ;;  %v1627_v17 = vadd.f32 %v11952_v42, %v1530_v57  ;;  %v13766_v38 = vld [vmem:[#allocation7_spill] sm:$0xff]  ;;  %v13771_v57 = vld [vmem:[#allocation14_spill] sm:$0xff] }
 0x14d   :  { %v9269_v2 = vpop.f32.mrf.mxu0  ;;  %v9890_v58 = vpop.f32.mrf.mxu1  ;;  %v1541_v8 = vadd.f32 %v9200_v26, %v1252_v1  ;;  %v1630_v63 = vadd.f32 %v11961_v13, %v1533_v25  ;;  %v12058_v32 = vadd.f32 %v13765_v19, %v1546_v23  ;;  %v1554_v56 = vadd.f32 %v9209_v18, %v13766_v38 }
 0x14e   :  { %v2453_v30 = vadd.f32 %v2391_v31, %v1619_v47  ;;  %v9215_v21 = vadd.f32 %v13768_v36, %v13767_v62  ;;  %v13769_v47 = vld [vmem:[#allocation11_spill] sm:$0xff] }
 0x14f   :  { %v9270_v24 = vpop.f32.mrf.mxu0  ;;  %v2393_v10 = vpop.f32.mrf.mxu1  ;;  %v1635_v31 = vadd.f32 %v13769_v47, %v1538_v48  ;;  %v2746_v47 = vld [vmem:[#allocation2 + $0x18] sm:$0xf] }
 0x150   :  { %v9271_v37 = vadd.f32 %v9270_v24, %v9269_v2  ;;  %v2476_v4 = vadd.f32 %v12029_v12, %v2453_v30  ;;  %v2394_v54 = vadd.f32 %v9268_v33, %v2393_v10  ;;  %v13770_v33 = vld [vmem:[#allocation12_spill] sm:$0xff]  ;;  %v1638_v10 = vadd.f32 %v13771_v57, %v1541_v8 }
 0x151   :  { %v9272_v34 = vpop.f32.mrf.mxu0  ;;  %v12048_v20 = vpop.f32.mrf.mxu1  ;;  %v12066_v2 = vadd.f32 %v13770_v33, %v1549_v46 }
 0x152   :  { %v2399_v39 = vadd.f32 %v9889_v44, %v9271_v37  ;;  %v2492_v43 = vmax.f32 %v2476_v4, 0.0  ;;  %v2454_v53 = vadd.f32 %v2394_v54, %v1622_v11  ;;  %v13772_v37 = vmov 0  ;;  %v2737_v11 = vld [vmem:[#allocation2 + $0xc] sm:$0x1] }
 0x153   :  { %v9273_v29 = vpop.f32.mrf.mxu0  ;;  %v2406_v60 = vpop.f32.mrf.mxu1  ;;  %v13773_v37 = vsel %vm12073_vm6, 4294967295, %v13772_v37 }
 0x154   :  { %v2455_v6 = vadd.f32 %v2399_v39, %v1627_v17  ;;  %v9274_v42 = vadd.f32 %v9273_v29, %v9272_v34  ;;  %v9055_v5 = vpack.c.bf16 %v2492_v43, %v2492_v43  ;;  %v2477_v44 = vadd.f32 %v12029_v12, %v2454_v53  ;;  %13774 = vst [vmem:[#allocation10_spill] sm:$0xff] %v13773_v37  ;;  %v13775_v17 = vld [vmem:[#allocation8_spill] sm:$0xff] }
 0x155   :  { %v9275_v45 = vpop.f32.mrf.mxu0  ;;  %v12068_v26 = vpop.f32.mrf.mxu1  ;;  %v1562_v14 = vadd.f32 %v9215_v21, %v13775_v17  ;;  %v12101_v17 = vadd.f32 %v11989_v22, %v1557_v27  ;;  %v12111_v22 = vadd.f32 %v12000_v15, %v11998_v55 }
 0x156   :  { %v2478_v13 = vadd.f32 %v12029_v12, %v2455_v6  ;;  %v2402_v3 = vadd.f32 %v9890_v58, %v9274_v42  ;;  %v2573_v41 = vshrl.u32 %v9055_v5, 16  ;;  %v2493_v9 = vmax.f32 %v2477_v44, 0.0  ;;  %v2743_v44 = vld [vmem:[#allocation2 + $0x14] sm:$0x1] }
 0x157   :  { %v9276_v52 = vpop.f32.mrf.mxu0  ;;  %v2576_v24 = vshll.u32 %v9055_v5, 16  ;;  %v2740_v5 = vld [vmem:[#allocation2 + $0x10] sm:$0xf] }
 0x158   :  { %v2494_v1 = vmax.f32 %v2478_v13, 0.0  ;;  %v2456_v59 = vadd.f32 %v2402_v3, %v1630_v63  ;;  %v9277_v51 = vadd.f32 %v9276_v52, %v9275_v45  ;;  %v2575_v30 = vrot.slane %v2573_v41, 7  ;;  %v2409_v63 = vpop.f32.mrf.mxu1  ;;  %v13777_v3 = vld [vmem:[#allocation17_spill] sm:$0xff] }
 0x159   :  { %v9056_v58 = vpack.c.bf16 %v2493_v9, %v2493_v9  ;;  %v9278_v0 = vpop.f32.mrf.mxu0  ;;  %v12085_v62 = vadd.f32 %v13777_v3, %v1554_v56 }
 0x15a   :  { %v9057_v4 = vpack.c.bf16 %v2494_v1, %v2494_v1  ;;  %v2479_v54 = vadd.f32 %v12029_v12, %v2456_v59  ;;  %v2407_v34 = vadd.f32 %v9277_v51, %v2406_v60  ;;  %v2578_v18 = vor.u32 %v2576_v24, %v2575_v30  ;;  %v12087_v51 = vpop.f32.mrf.mxu1 }
 0x15b   :  { %v2579_v25 = vrot.slane %v2575_v30, 4  ;;  %v2581_v39 = vshrl.u32 %v9056_v58, 16  ;;  %v9279_v48 = vpop.f32.mrf.mxu0  ;;  %v2584_v43 = vshll.u32 %v9056_v58, 16 }
 0x15c   :  { %v2589_v8 = vshrl.u32 %v9057_v4, 16  ;;  %v2495_v53 = vmax.f32 %v2479_v54, 0.0  ;;  %v2457_v29 = vadd.f32 %v2407_v34, %v1635_v31  ;;  %v2735_v23 = vsel %vm12073_vm6, %v2578_v18, %v2734_v35  ;;  %v2749_v31 = vld [vmem:[#allocation2 + $0x1c] sm:$0x1]  ;;  %v13778_v54 = vld [vmem:[#allocation16_spill] sm:$0xff] }
 0x15d   :  { %v2738_v42 = vsel %vm11711_vm2, %v2579_v25, %v2737_v11  ;;  %v2583_v7 = vrot.slane %v2581_v39, 7  ;;  %v9280_v46 = vadd.f32 %v9279_v48, %v9278_v0  ;;  %v9281_v60 = vpop.f32.mrf.mxu0  ;;  %2736 = vst [vmem:[#allocation2 + $0x8] sm:$0xf] %v2735_v23  ;;  %v2592_v19 = vshll.u32 %v9057_v4, 16  ;;  %v2755_v18 = vld [vmem:[#allocation2 + $0x24] sm:$0x1] }
 0x15e   :  { %2739 = vst [vmem:[#allocation2 + $0xc] sm:$0x1] %v2738_v42  ;;  %v2591_v45 = vrot.slane %v2589_v8, 7  ;;  %v9058_v38 = vpack.c.bf16 %v2495_v53, %v2495_v53  ;;  %v2480_v13 = vadd.f32 %v12029_v12, %v2457_v29  ;;  %v12098_v34 = vadd.f32 %v13778_v54, %v1562_v14  ;;  %v2767_v54 = vld [vmem:[#allocation2 + $0x34] sm:$0x1] }
 0x15f   :  { %v2586_v36 = vor.u32 %v2584_v43, %v2583_v7  ;;  %v2587_v21 = vrot.slane %v2583_v7, 4  ;;  %v2410_v41 = vadd.f32 %v9280_v46, %v2409_v63  ;;  %v9282_v9 = vpop.f32.mrf.mxu0  ;;  %v2422_v63 = vpop.f32.mrf.mxu1  ;;  %v12107_v14 = vadd.f32 %v11995_v40, %v11993_v16 }
 0x160   :  { %v2594_v52 = vor.u32 %v2592_v19, %v2591_v45  ;;  %v2595_v33 = vrot.slane %v2591_v45, 4  ;;  %v2597_v1 = vshrl.u32 %v9058_v38, 16  ;;  %v2600_v59 = vshll.u32 %v9058_v38, 16  ;;  %v2758_v38 = vld [vmem:[#allocation2 + $0x28] sm:$0xf] }
 0x161   :  { %v2741_v30 = vsel %vm12073_vm6, %v2586_v36, %v2740_v5  ;;  %v2744_v24 = vsel %vm11711_vm2, %v2587_v21, %v2743_v44  ;;  %v2496_v56 = vmax.f32 %v2480_v13, 0.0  ;;  %v2458_v58 = vadd.f32 %v2410_v41, %v1638_v10  ;;  %v9284_v0 = vpop.f32.mrf.mxu0  ;;  %v2752_v10 = vld [vmem:[#allocation2 + $0x20] sm:$0xf]  ;;  %v2761_v13 = vld [vmem:[#allocation2 + $0x2c] sm:$0x1] }
 0x162   :  { %2742 = vst [vmem:[#allocation2 + $0x10] sm:$0xf] %v2741_v30  ;;  %2745 = vst [vmem:[#allocation2 + $0x14] sm:$0x1] %v2744_v24  ;;  %v2747_v57 = vsel %vm12073_vm6, %v2594_v52, %v2746_v47  ;;  %v2750_v35 = vsel %vm11711_vm2, %v2595_v33, %v2749_v31  ;;  %v2599_v11 = vrot.slane %v2597_v1, 7  ;;  %v9283_v4 = vadd.f32 %v9282_v9, %v9281_v60 }
 0x163   :  { %2748 = vst [vmem:[#allocation2 + $0x18] sm:$0xf] %v2747_v57  ;;  %2751 = vst [vmem:[#allocation2 + $0x1c] sm:$0x1] %v2750_v35  ;;  %v9059_v25 = vpack.c.bf16 %v2496_v56, %v2496_v56  ;;  %v2481_v39 = vadd.f32 %v12029_v12, %v2458_v58  ;;  %v9285_v48 = vpop.f32.mrf.mxu0 }
 0x164   :  { %v2602_v43 = vor.u32 %v2600_v59, %v2599_v11  ;;  %v2603_v8 = vrot.slane %v2599_v11, 4  ;;  %v2415_v53 = vadd.f32 %v12048_v20, %v9283_v4  ;;  %v9286_v29 = vadd.f32 %v9285_v48, %v9284_v0  ;;  %v3246_v16 = vld [vmem:[#allocation2 + $0x8] sm:$0xe]  ;;  %v2764_v4 = vld [vmem:[#allocation2 + $0x30] sm:$0xf] }
 0x165   :  { %v2605_v27 = vshrl.u32 %v9059_v25, 16  ;;  %v2497_v23 = vmax.f32 %v2481_v39, 0.0  ;;  %v9287_v42 = vpop.f32.mrf.mxu0  ;;  %v3230_v7 = vld [vmem:[#allocation2 + $0xc] sm:$0x1]  ;;  %v12119_v40 = vld [vmem:[#allocation2 + $0x8] sm:$0xf] }
 0x166   :  { %v2753_v46 = vsel %vm12073_vm6, %v2602_v43, %v2752_v10  ;;  %v2756_v20 = vsel %vm11711_vm2, %v2603_v8, %v2755_v18  ;;  %v2459_v60 = vadd.f32 %v2415_v53, %v12058_v32  ;;  %v2418_v5 = vadd.f32 %v12068_v26, %v9286_v29  ;;  %v12123_v32 = vpop.f32.mrf.mxu1 }
 0x167   :  { %2754 = vst [vmem:[#allocation2 + $0x20] sm:$0xf] %v2753_v46  ;;  %2757 = vst [vmem:[#allocation2 + $0x24] sm:$0x1] %v2756_v20  ;;  %v2607_v55 = vrot.slane %v2605_v27, 7  ;;  %v2608_v15 = vshll.u32 %v9059_v25, 16  ;;  %v9060_v44 = vpack.c.bf16 %v2497_v23, %v2497_v23  ;;  %v9288_v45 = vpop.f32.mrf.mxu0  ;;  %v8413_v19 = vcombine.low %v3246_v16, %v3230_v7 }
 0x168   :  { %v2482_v3 = vadd.f32 %v12029_v12, %v2459_v60  ;;  %v2460_v36 = vadd.f32 %v2418_v5, %v12066_v2  ;;  %v9289_v21 = vadd.f32 %v9288_v45, %v9287_v42  ;;  %v12126_v26 = vcombine.low %v12119_v40, %v3230_v7  ;;  %v2425_v48 = vpop.f32.mrf.mxu1  ;;  %v2770_v45 = vld [vmem:[#allocation2 + $0x38] sm:$0xf] }
 0x169   :  { %v2610_v47 = vor.u32 %v2608_v15, %v2607_v55  ;;  %v2611_v31 = vrot.slane %v2607_v55, 4  ;;  %v2613_v41 = vshrl.u32 %v9060_v44, 16  ;;  %v2616_v9 = vshll.u32 %v9060_v44, 16  ;;  %v9290_v52 = vpop.f32.mrf.mxu0  ;;  %v3231_v33 = vld [vmem:[#allocation2 + $0x14] sm:$0x1] }
 0x16a   :  { %v2498_v1 = vmax.f32 %v2482_v3, 0.0  ;;  %v2483_v59 = vadd.f32 %v12029_v12, %v2460_v36  ;;  %v2423_v30 = vadd.f32 %v9289_v21, %v2422_v63  ;;  %v3247_v24 = vld [vmem:[#allocation2 + $0x10] sm:$0xe]  ;;  %v3502_v56 = vrot.slane %v8413_v19, 1  ;;  %v2773_v19 = vld [vmem:[#allocation2 + $0x3c] sm:$0x1] }
 0x16b   :  { %v12129_v58 = vld [vmem:[#allocation2 + $0x10] sm:$0xf]  ;;  %v2759_v2 = vsel %vm12073_vm6, %v2610_v47, %v2758_v38  ;;  %v2762_v0 = vsel %vm11711_vm2, %v2611_v31, %v2761_v13  ;;  %v2615_v57 = vrot.slane %v2613_v41, 7  ;;  %v9291_v35 = vpop.f32.mrf.mxu0  ;;  %v8414_v11 = vcombine.low %v3247_v24, %v3231_v33 }
 0x16c   :  { %2760 = vst [vmem:[#allocation2 + $0x28] sm:$0xf] %v2759_v2  ;;  %2763 = vst [vmem:[#allocation2 + $0x2c] sm:$0x1] %v2762_v0  ;;  %v9061_v10 = vpack.c.bf16 %v2498_v1, %v2498_v1  ;;  %v2499_v18 = vmax.f32 %v2483_v59, 0.0  ;;  %v2461_v25 = vadd.f32 %v2423_v30, %v12085_v62  ;;  %v9292_v39 = vadd.f32 %v9291_v35, %v9290_v52 }
 0x16d   :  { %v2618_v43 = vor.u32 %v2616_v9, %v2615_v57  ;;  %v2619_v8 = vrot.slane %v2615_v57, 4  ;;  %v9293_v53 = vpop.f32.mrf.mxu0  ;;  %v3503_v29 = vrot.slane %v8414_v11, 1  ;;  %v12137_v63 = vcombine.low %v12129_v58, %v3231_v33  ;;  %v2776_v9 = vld [vmem:[#allocation2 + $0x40] sm:$0xf]  ;;  %v2779_v33 = vld [vmem:[#allocation2 + $0x44] sm:$0x1] }
 0x16e   :  { %v2621_v27 = vshrl.u32 %v9061_v10, 16  ;;  %v2624_v23 = vshll.u32 %v9061_v10, 16  ;;  %v9062_v42 = vpack.c.bf16 %v2499_v18, %v2499_v18  ;;  %v2484_v7 = vadd.f32 %v12029_v12, %v2461_v25  ;;  %v12156_v35 = vld [vmem:[#allocation2 + $0x24] sm:$0x1]  ;;  %v3248_v11 = vld [vmem:[#allocation2 + $0x18] sm:$0xe] }
 0x16f   :  { %v2765_v46 = vsel %vm12073_vm6, %v2618_v43, %v2764_v4  ;;  %v2768_v62 = vsel %vm11711_vm2, %v2619_v8, %v2767_v54  ;;  %v2426_v20 = vadd.f32 %v9292_v39, %v2425_v48  ;;  %v8479_v60 = vcombine.low %v3502_v56, %v3503_v29  ;;  %v9294_v5 = vpop.f32.mrf.mxu0  ;;  %v12150_v56 = vld [vmem:[#allocation2 + $0x1c] sm:$0x1]  ;;  %v12158_v4 = vpop.f32.mrf.mxu1  ;;  %v3249_v39 = vld [vmem:[#allocation2 + $0x20] sm:$0xe] }
 0x170   :  { %2766 = vst [vmem:[#allocation2 + $0x30] sm:$0xf] %v2765_v46  ;;  %2769 = vst [vmem:[#allocation2 + $0x34] sm:$0x1] %v2768_v62  ;;  %v2623_v16 = vrot.slane %v2621_v27, 7  ;;  %v2629_v55 = vshrl.u32 %v9062_v42, 16  ;;  %v9295_v13 = vadd.f32 %v9294_v5, %v9293_v53  ;;  %v8416_v5 = vcombine.low %v3249_v39, %v12156_v35 }
 0x171   :  { %v2632_v15 = vshll.u32 %v9062_v42, 16  ;;  %v2500_v44 = vmax.f32 %v2484_v7, 0.0  ;;  %v2462_v38 = vadd.f32 %v2426_v20, %v12101_v17  ;;  %9919 = vmatprep.mubr.bf16.mxu0 %v8479_v60  ;;  %v9296_v3 = vpop.f32.mrf.mxu0  ;;  %v3343_v36 = vshrl.u32 %v12126_v26, 16  ;;  %v2782_v7 = vld [vmem:[#allocation2 + $0x58] sm:$0xf] }
 0x172   :  { %v3345_v21 = vshll.u32 %v12126_v26, 16  ;;  %v2626_v47 = vor.u32 %v2624_v23, %v2623_v16  ;;  %v2627_v31 = vrot.slane %v2623_v16, 4  ;;  %v2631_v41 = vrot.slane %v2629_v55, 7  ;;  %v2785_v46 = vld [vmem:[#allocation2 + $0x5c] sm:$0x1]  ;;  %v2438_v16 = vpop.f32.mrf.mxu1 }
 0x173   :  { %v9063_v52 = vpack.c.bf16 %v2500_v44, %v2500_v44  ;;  %v2485_v1 = vadd.f32 %v12029_v12, %v2462_v38  ;;  %v2431_v59 = vadd.f32 %v12087_v51, %v9295_v13  ;;  %v3350_v17 = vshrl.u32 %v12137_v63, 16  ;;  %v9297_v24 = vpop.f32.mrf.mxu0 }
 0x174   :  { %v3347_v30 = vrot.slane %v3345_v21, 1  ;;  %v2771_v2 = vsel %vm12073_vm6, %v2626_v47, %v2770_v45  ;;  %v2774_v26 = vsel %vm11711_vm2, %v2627_v31, %v2773_v19  ;;  %v2634_v0 = vor.u32 %v2632_v15, %v2631_v41  ;;  %v2788_v47 = vld [vmem:[#allocation2 + $0x60] sm:$0xf] }
 0x175   :  { %v2635_v57 = vrot.slane %v2631_v41, 4  ;;  %2772 = vst [vmem:[#allocation2 + $0x38] sm:$0xf] %v2771_v2  ;;  %2775 = vst [vmem:[#allocation2 + $0x3c] sm:$0x1] %v2774_v26  ;;  %v2637_v51 = vshrl.u32 %v9063_v52, 16  ;;  %v2463_v18 = vadd.f32 %v2431_v59, %v12098_v34  ;;  %v9299_v25 = vpop.f32.mrf.mxu0  ;;  %v8477_v34 = vcombine.low %v12119_v40, %v12129_v58 }
 0x176   :  { %v2640_v54 = vshll.u32 %v9063_v52, 16  ;;  %v2501_v10 = vmax.f32 %v2485_v1, 0.0  ;;  %v2777_v48 = vsel %vm12073_vm6, %v2634_v0, %v2776_v9  ;;  %v3348_v8 = vor.u32 %v3347_v30, %v3343_v36  ;;  %v12172_v58 = vld [vmem:[#allocation2 + $0x18] sm:$0xf]  ;;  %v2791_v9 = vld [vmem:[#allocation2 + $0x64] sm:$0x1] }
 0x177   :  { %v2780_v43 = vsel %vm11711_vm2, %v2635_v57, %v2779_v33  ;;  %v3352_v53 = vshll.u32 %v12137_v63, 16  ;;  %2778 = vst [vmem:[#allocation2 + $0x40] sm:$0xf] %v2777_v48  ;;  %v2639_v29 = vrot.slane %v2637_v51, 7  ;;  %v2486_v23 = vadd.f32 %v12029_v12, %v2463_v18  ;;  %v9300_v42 = vpop.f32.mrf.mxu0  ;;  %v13779_v1 = vld [vmem:[#allocation18_spill] sm:$0xff]  ;;  %v10345_v51 = vld [vmem:[%s13736_s2 + $0xb0] sm:$0xff]  }
 0x178   :  { %2781 = vst [vmem:[#allocation2 + $0x44] sm:$0x1] %v2780_v43  ;;  %v9064_v27 = vpack.c.bf16 %v2501_v10, %v2501_v10  ;;  %v9298_v20 = vadd.f32 %v9297_v24, %v9296_v3  ;;  %v8415_v60 = vcombine.low %v3248_v11, %v12150_v56  ;;  %v3505_v31 = vrot.slane %v8416_v5, 1  ;;  %v12179_v30 = vld [vmem:[#allocation2 + $0x20] sm:$0xf]  ;;  %v10339_v24 = vld [vmem:[%s13736_s2 + $0x38] sm:$0xff]  }
 0x179   :  { %v3354_v62 = vrot.slane %v3352_v53, 1  ;;  %v2642_v63 = vor.u32 %v2640_v54, %v2639_v29  ;;  %v2643_v55 = vrot.slane %v2639_v29, 4  ;;  %v9302_v45 = vpop.f32.mrf.mxu0  ;;  %v2502_v19 = vmax.f32 %v2486_v23, 0.0  ;;  %v10342_v11 = vld [vmem:[%s13736_s2 + $0x70] sm:$0xff]   ;;  %v2794_v48 = vld [vmem:[#allocation2 + $0x68] sm:$0xf] }
 0x17a   :  { %v2645_v15 = vshrl.u32 %v9064_v27, 16  ;;  %v2648_v44 = vshll.u32 %v9064_v27, 16  ;;  %v2434_v13 = vadd.f32 %v12123_v32, %v9298_v20  ;;  %v3504_v40 = vrot.slane %v8415_v60, 1  ;;  %v3234_v29 = vld [vmem:[#allocation2 + $0x2c] sm:$0x1]  ;;  %v13780_v20 = vld [vmem:[#allocation9_spill] sm:$0xff] }
 0x17b   :  { %v3355_v38 = vor.u32 %v3354_v62, %v3350_v17  ;;  %v2783_v3 = vsel %vm12073_vm6, %v2642_v63, %v2782_v7  ;;  %v2786_v36 = vsel %vm11711_vm2, %v2643_v55, %v2785_v46  ;;  %v9303_v41 = vpop.f32.mrf.mxu0  ;;  %v9065_v52 = vpack.c.bf16 %v2502_v19, %v2502_v19  ;;  %v12181_v17 = vpop.f32.mrf.mxu1  ;;  %v3250_v62 = vld [vmem:[#allocation2 + $0x28] sm:$0xe] }
 0x17c   :  { %v2647_v21 = vrot.slane %v2645_v15, 7  ;;  %2784 = vst [vmem:[#allocation2 + $0x58] sm:$0xf] %v2783_v3  ;;  %2787 = vst [vmem:[#allocation2 + $0x5c] sm:$0x1] %v2786_v36  ;;  %v2464_v32 = vadd.f32 %v2434_v13, %v13779_v1  ;;  %v9301_v59 = vadd.f32 %v9300_v42, %v9299_v25  ;;  %v8482_v0 = vcombine.low %v3504_v40, %v3505_v31  ;;  %v10355_v55 = vld [vmem:[%s13736_s2 + $0xa8] sm:$0xff]  }
 0x17d   :  { %v8478_v33 = vcombine.low %v3348_v8, %v3355_v38  ;;  %v8399_v57 = vcombine.low %v12172_v58, %v12150_v56  ;;  %v2653_v54 = vshrl.u32 %v9065_v52, 16  ;;  %v2656_v10 = vshll.u32 %v9065_v52, 16  ;;  %v9305_v53 = vpop.f32.mrf.mxu0  ;;  %v2441_v46 = vpop.f32.mrf.mxu1  ;;  %v3235_v36 = vld [vmem:[#allocation2 + $0x34] sm:$0x1]  ;;  %v10349_v1 = vld [vmem:[%s13736_s2 + $0x28] sm:$0xff]  }
 0x17e   :  { %v2650_v2 = vor.u32 %v2648_v44, %v2647_v21  ;;  %v2651_v26 = vrot.slane %v2647_v21, 4  ;;  %v2487_v18 = vadd.f32 %v12029_v12, %v2464_v32  ;;  %v2439_v25 = vadd.f32 %v9301_v59, %v2438_v16  ;;  %9920 = vmatmul.mubr.bf16.vlgmr.msra.gmra.mxu0 %v8482_v0 }
 0x17f   :  { %3823 = vmatprep.mubr.bf16.mxu1 %v8478_v33  ;;  %v8400_v43 = vcombine.low %v12179_v30, %v12156_v35  ;;  %v3357_v8 = vshrl.u32 %v8399_v57, 16  ;;  %v2655_v27 = vrot.slane %v2653_v54, 7  ;;  %v3359_v7 = vshll.u32 %v8399_v57, 16  ;;  %9408 = vmatpush3.bf16.msra.mxu0 %v10339_v24  ;;  %v2797_v35 = vld [vmem:[#allocation2 + $0x6c] sm:$0x1] }
 0x180   :  { %v2789_v39 = vsel %vm12073_vm6, %v2650_v2, %v2788_v47  ;;  %v2792_v56 = vsel %vm11711_vm2, %v2651_v26, %v2791_v9  ;;  %3824 = vmatmul.mubr.bf16.vlgmr.msra.gmra.mxu1 %v8477_v34  ;;  %v2503_v23 = vmax.f32 %v2487_v18, 0.0  ;;  %v2465_v42 = vadd.f32 %v2439_v25, %v12107_v14  ;;  %v10344_v34 = vld [vmem:[%s13736_s2 + $0x30] sm:$0xff]   ;;  %9409 = vmatprep.subr.bf16.mxu0 %v10342_v11  ;;  %v10348_v14 = vld [vmem:[%s13736_s2 + $0x68] sm:$0xff]   ;;  %v9306_v47 = vpop.f32.mrf.mxu0  ;;  %v10352_v26 = vld [vmem:[%s13736_s2 + $0x60] sm:$0xff]  }
 0x181   :  { %2790 = vst [vmem:[#allocation2 + $0x60] sm:$0xf] %v2789_v39  ;;  %2793 = vst [vmem:[#allocation2 + $0x64] sm:$0x1] %v2792_v56  ;;  %9936 = vmatpush3.bf16.msra.mxu1 %v13780_v20  ;;  %v3364_v60 = vshrl.u32 %v8400_v43, 16  ;;  %v3366_v5 = vshll.u32 %v8400_v43, 16  ;;  %v8480_v16 = vcombine.low %v12172_v58, %v12179_v30  ;;  %v9304_v63 = vadd.f32 %v9303_v41, %v9302_v45 }
 0x182   :  { %9937 = vmatprep.subr.bf16.mxu1 %v10345_v51  ;;  %v2658_v15 = vor.u32 %v2656_v10, %v2655_v27  ;;  %v2659_v44 = vrot.slane %v2655_v27, 4  ;;  %v9066_v19 = vpack.c.bf16 %v2503_v23, %v2503_v23  ;;  %v2488_v38 = vadd.f32 %v12029_v12, %v2465_v42  ;;  %v3251_v45 = vld [vmem:[#allocation2 + $0x30] sm:$0xe]  ;;  %v12219_v33 = vld [vmem:[#allocation2 + $0x28] sm:$0xf]  ;;  %v10360_v43 = vld [vmem:[%s13736_s2 + $0xa0] sm:$0xff]  }
 0x183   :  { %v3361_v13 = vrot.slane %v3359_v7, 1  ;;  %v3368_v40 = vrot.slane %v3366_v5, 1  ;;  %v2442_v3 = vadd.f32 %v9304_v63, %v2441_v46  ;;  %v8417_v21 = vcombine.low %v3250_v62, %v3234_v29  ;;  %9410 = vmatpush3.bf16.msra.mxu0 %v10344_v34  ;;  %v12228_v54 = vld [vmem:[#allocation2 + $0x30] sm:$0xf]  ;;  %v2803_v18 = vld [vmem:[#allocation2 + $0x74] sm:$0x1] }
 0x184   :  { %v2795_v31 = vsel %vm12073_vm6, %v2658_v15, %v2794_v48  ;;  %v2798_v41 = vsel %vm11711_vm2, %v2659_v44, %v2797_v35  ;;  %v2661_v9 = vshrl.u32 %v9066_v19, 16  ;;  %v2664_v52 = vshll.u32 %v9066_v19, 16  ;;  %9411 = vmatprep.subr.bf16.mxu0 %v10348_v14  ;;  %v2800_v10 = vld [vmem:[#allocation2 + $0x70] sm:$0xf]  ;;  %v9308_v48 = vpop.f32.mrf.mxu0  ;;  %v10354_v42 = vld [vmem:[%s13736_s2 + $0x20] sm:$0xff]   ;;  %v10358_v62 = vld [vmem:[%s13736_s2 + $0x58] sm:$0xff]  }
 0x185   :  { %9938 = vmatpush3.bf16.msra.mxu1 %v10345_v51  ;;  %2796 = vst [vmem:[#allocation2 + $0x68] sm:$0xf] %v2795_v31  ;;  %2799 = vst [vmem:[#allocation2 + $0x6c] sm:$0x1] %v2798_v41  ;;  %v2504_v32 = vmax.f32 %v2488_v38, 0.0  ;;  %v3362_v59 = vor.u32 %v3361_v13, %v3357_v8  ;;  %v3369_v24 = vor.u32 %v3368_v40, %v3364_v60  ;;  %v3506_v11 = vrot.slane %v8417_v21, 1 }
 0x186   :  { %v2466_v2 = vadd.f32 %v2442_v3, %v12111_v22  ;;  %9939 = vmatprep.subr.bf16.mxu1 %v10355_v55  ;;  %v2663_v0 = vrot.slane %v2661_v9, 7  ;;  %v8418_v57 = vcombine.low %v3251_v45, %v3235_v36  ;;  %v9307_v51 = vadd.f32 %v9306_v47, %v9305_v53  ;;  %v2806_v35 = vld [vmem:[#allocation2 + $0x78] sm:$0xf]  ;;  %v2809_v60 = vld [vmem:[#allocation2 + $0x7c] sm:$0x1]  ;;  %v9309_v38 = vpop.f32.mrf.mxu0  ;;  %v10363_v41 = vld [vmem:[%s13736_s2 + $0x50] sm:$0xff]  }
 0x187   :  { %v9067_v25 = vpack.c.bf16 %v2504_v32, %v2504_v32  ;;  %v8481_v39 = vcombine.low %v3362_v59, %v3369_v24  ;;  %v12232_v22 = vcombine.low %v12219_v33, %v3234_v29  ;;  %9412 = vmatpush3.bf16.msra.mxu0 %v10349_v1  ;;  %v8402_v29 = vcombine.low %v12228_v54, %v3235_v36  ;;  %v10366_v14 = vld [vmem:[%s13736_s2 + $0x98] sm:$0xff]   ;;  %v3237_v31 = vld [vmem:[#allocation2 + $0x44] sm:$0x1]  ;;  %v3253_v59 = vld [vmem:[#allocation2 + $0x40] sm:$0xe] }
 0x188   :  { %v2489_v56 = vadd.f32 %v12029_v12, %v2466_v2  ;;  %v2666_v8 = vor.u32 %v2664_v52, %v2663_v0  ;;  %v2667_v27 = vrot.slane %v2663_v0, 4  ;;  %v3507_v23 = vrot.slane %v8418_v57, 1  ;;  %9413 = vmatprep.subr.bf16.mxu0 %v10352_v26  ;;  %v3236_v13 = vld [vmem:[#allocation2 + $0x3c] sm:$0x1]  ;;  %v3252_v40 = vld [vmem:[#allocation2 + $0x38] sm:$0xe] }
 0x189   :  { %v2447_v53 = vadd.f32 %v12158_v4, %v9307_v51  ;;  %9940 = vmatpush3.bf16.msra.mxu1 %v10355_v55  ;;  %v2669_v7 = vshrl.u32 %v9067_v25, 16  ;;  %3831 = vmatprep.mubr.bf16.mxu1 %v8481_v39  ;;  %v2961_v20 = vshll.u32 %v12018_v28, 16  ;;  %v2672_v15 = vshll.u32 %v9067_v25, 16  ;;  %v10359_v3 = vld [vmem:[%s13736_s2 + $0x18] sm:$0xff]   ;;  %v10373_v24 = vld [vmem:[%s13736_s2 + $0x90] sm:$0xff]  }
 0x18a   :  { %v2505_v46 = vmax.f32 %v2489_v56, 0.0  ;;  %v2801_v4 = vsel %vm12073_vm6, %v2666_v8, %v2800_v10  ;;  %v2804_v34 = vsel %vm11711_vm2, %v2667_v27, %v2803_v18  ;;  %3832 = vmatmul.mubr.bf16.gmra.mxu1 %v8480_v16  ;;  %v8485_v5 = vcombine.low %v3506_v11, %v3507_v23  ;;  %9941 = vmatprep.subr.bf16.mxu1 %v10360_v43  ;;  %v2812_v57 = vld [vmem:[#allocation2 + $0x80] sm:$0xf]  ;;  %v2815_v51 = vld [vmem:[#allocation2 + $0x84] sm:$0x1] }
 0x18b   :  { %v2467_v63 = vadd.f32 %v2447_v53, %v12006_v61  ;;  %2802 = vst [vmem:[#allocation2 + $0x70] sm:$0xf] %v2801_v4  ;;  %2805 = vst [vmem:[#allocation2 + $0x74] sm:$0x1] %v2804_v34  ;;  %v2671_v55 = vrot.slane %v2669_v7, 7  ;;  %v3373_v19 = vshll.u32 %v12232_v22, 16  ;;  %9414 = vmatpush3.bf16.msra.mxu0 %v10354_v42  ;;  %v9310_v32 = vadd.f32 %v9309_v38, %v9308_v48 }
 0x18c   :  { %v9068_v44 = vpack.c.bf16 %v2505_v46, %v2505_v46  ;;  %9923 = vmatprep.mubr.bf16.mxu0 %v8485_v5  ;;  %v3371_v30 = vshrl.u32 %v12232_v22, 16  ;;  %v3378_v61 = vshrl.u32 %v8402_v29, 16  ;;  %v3380_v16 = vshll.u32 %v8402_v29, 16  ;;  %9415 = vmatprep.subr.bf16.mxu0 %v10358_v62  ;;  %v12274_v56 = vld [vmem:[#allocation2 + $0x38] sm:$0xf]  ;;  %v10365_v48 = vld [vmem:[%s13736_s2 + $0x10] sm:$0xff]  }
 0x18d   :  { %v2490_v58 = vadd.f32 %v12029_v12, %v2467_v63  ;;  %v2674_v36 = vor.u32 %v2672_v15, %v2671_v55  ;;  %v2675_v45 = vrot.slane %v2671_v55, 4  ;;  %9942 = vmatpush3.bf16.msra.mxu1 %v10360_v43  ;;  %v3375_v52 = vrot.slane %v3373_v19, 1  ;;  %v12281_v23 = vld [vmem:[#allocation2 + $0x40] sm:$0xf]  ;;  %v3238_v29 = vld [vmem:[#allocation2 + $0x5c] sm:$0x1] }
 0x18e   :  { %v2677_v21 = vshrl.u32 %v9068_v44, 16  ;;  %v2680_v47 = vshll.u32 %v9068_v44, 16  ;;  %v3382_v1 = vrot.slane %v3380_v16, 1  ;;  %9943 = vmatprep.subr.bf16.mxu1 %v10366_v14  ;;  %v8419_v11 = vcombine.low %v3252_v40, %v3236_v13  ;;  %v3254_v62 = vld [vmem:[#allocation2 + $0x58] sm:$0xe] }
 0x18f   :  { %v2506_v9 = vmax.f32 %v2490_v58, 0.0  ;;  %v2807_v2 = vsel %vm12073_vm6, %v2674_v36, %v2806_v35  ;;  %v2810_v26 = vsel %vm11711_vm2, %v2675_v45, %v2809_v60  ;;  %v3376_v18 = vor.u32 %v3375_v52, %v3371_v30  ;;  %9416 = vmatpush3.bf16.msra.mxu0 %v10359_v3  ;;  %v2818_v4 = vld [vmem:[#allocation2 + $0x88] sm:$0xf]  ;;  %v3239_v15 = vld [vmem:[#allocation2 + $0x64] sm:$0x1] }
 0x190   :  { %v2679_v0 = vrot.slane %v2677_v21, 7  ;;  %2808 = vst [vmem:[#allocation2 + $0x78] sm:$0xf] %v2807_v2  ;;  %2811 = vst [vmem:[#allocation2 + $0x7c] sm:$0x1] %v2810_v26  ;;  %v3383_v25 = vor.u32 %v3382_v1, %v3378_v61  ;;  %v2450_v39 = vadd.f32 %v12181_v17, %v9310_v32  ;;  %v8483_v8 = vcombine.low %v12219_v33, %v12228_v54  ;;  %v10369_v17 = vld [vmem:[%s13736_s2 + $0x48] sm:$0xff]  }
 0x191   :  { %v9069_v10 = vpack.c.bf16 %v2506_v9, %v2506_v9  ;;  %v8420_v27 = vcombine.low %v3253_v59, %v3237_v31  ;;  %9417 = vmatprep.subr.bf16.mxu0 %v10363_v41  ;;  %9944 = vmatpush3.bf16.msra.mxu1 %v10366_v14  ;;  %v3508_v46 = vrot.slane %v8419_v11, 1  ;;  %v8403_v35 = vcombine.low %v12274_v56, %v3236_v13  ;;  %v10370_v60 = vld [vmem:[%s13736_s2 + $0x8] sm:$0xff]   ;;  %v3255_v44 = vld [vmem:[#allocation2 + $0x60] sm:$0xe]  ;;  %v12300_v30 = vld [vmem:[#allocation2 + $0x58] sm:$0xf] }
 0x192   :  { %v2682_v22 = vor.u32 %v2680_v47, %v2679_v0  ;;  %v2683_v43 = vrot.slane %v2679_v0, 4  ;;  %v8484_v42 = vcombine.low %v3376_v18, %v3383_v25  ;;  %v2468_v7 = vadd.f32 %v2450_v39, %v12021_v49  ;;  %9945 = vmatprep.subr.bf16.mxu1 %v10373_v24  ;;  %v10379_v49 = vld [vmem:[%s13736_s2 + $0x88] sm:$0xff]   ;;  %v10376_v61 = vld [vmem:[%s13736_s2 + $0x40] sm:$0xff]   ;;  %v12324_v18 = vld [vmem:[%s13736_s2 + $0x238] sm:$0xff]  }
 0x193   :  { %v2685_v53 = vshrl.u32 %v9069_v10, 16  ;;  %v3509_v34 = vrot.slane %v8420_v27, 1  ;;  %v2688_v63 = vshll.u32 %v9069_v10, 16  ;;  %v8404_v55 = vcombine.low %v12281_v23, %v3237_v31  ;;  %9418 = vmatpush3.bf16.msra.mxu0 %v10365_v48  ;;  %v2821_v19 = vld [vmem:[#allocation2 + $0x8c] sm:$0x1]  ;;  %v10378_v41 = vld [vmem:[%s13736_s2] sm:$0xff]  }
 0x194   :  { %v2813_v33 = vsel %vm12073_vm6, %v2682_v22, %v2812_v57  ;;  %v2816_v54 = vsel %vm11711_vm2, %v2683_v43, %v2815_v51  ;;  %3839 = vmatprep.mubr.bf16.mxu1 %v8484_v42  ;;  %v2491_v14 = vadd.f32 %v12029_v12, %v2468_v7  ;;  %v3387_v13 = vshll.u32 %v8403_v35, 16  ;;  %9419 = vmatprep.subr.bf16.mxu0 %v10369_v17  ;;  %v12305_v36 = vld [vmem:[#allocation2 + $0x60] sm:$0xf]  ;;  %v3256_v2 = vld [vmem:[#allocation2 + $0x68] sm:$0xe] }
 0x195   :  { %2814 = vst [vmem:[#allocation2 + $0x80] sm:$0xf] %v2813_v33  ;;  %2817 = vst [vmem:[#allocation2 + $0x84] sm:$0x1] %v2816_v54  ;;  %v2687_v5 = vrot.slane %v2685_v53, 7  ;;  %3840 = vmatmul.mubr.bf16.gmra.mxu1 %v8483_v8  ;;  %v8488_v38 = vcombine.low %v3508_v46, %v3509_v34  ;;  %v8421_v58 = vcombine.low %v3254_v62, %v3238_v29  ;;  %v3385_v3 = vshrl.u32 %v8403_v35, 16 }
 0x196   :  { %v2507_v12 = vmax.f32 %v2491_v14, 0.0  ;;  %9946 = vmatpush3.bf16.msra.mxu1 %v10373_v24  ;;  %v3389_v45 = vrot.slane %v3387_v13, 1  ;;  %v3392_v21 = vshrl.u32 %v8404_v55, 16  ;;  %v3394_v47 = vshll.u32 %v8404_v55, 16  ;;  %v10386_v9 = vld [vmem:[%s13736_s2 + $0x80] sm:$0xff]  }
 0x197   :  { %v2690_v16 = vor.u32 %v2688_v63, %v2687_v5  ;;  %v2691_v40 = vrot.slane %v2687_v5, 4  ;;  %9924 = vmatmul.mubr.bf16.gmra.mxu0 %v8488_v38  ;;  %v8422_v31 = vcombine.low %v3255_v44, %v3239_v15  ;;  %9947 = vmatprep.subr.bf16.mxu1 %v10379_v49  ;;  %v8405_v59 = vcombine.low %v12300_v30, %v3238_v29  ;;  %v3240_v24 = vld [vmem:[#allocation2 + $0x6c] sm:$0x1]  ;;  %v12318_v26 = vld [vmem:[#allocation2 + $0x68] sm:$0xf]  ;;  %v10389_v29 = vld [vmem:[%s13736_s2 + $0x1f8] sm:$0xff]  }
 0x198   :  { %v9070_v32 = vpack.c.bf16 %v2507_v12, %v2507_v12  ;;  %9420 = vmatpush3.bf16.msra.mxu0 %v10370_v60  ;;  %v3396_v0 = vrot.slane %v3394_v47, 1  ;;  %v3510_v57 = vrot.slane %v8421_v58, 1  ;;  %v8406_v51 = vcombine.low %v12305_v36, %v3239_v15  ;;  %v3241_v10 = vld [vmem:[#allocation2 + $0x74] sm:$0x1]  ;;  %v3257_v43 = vld [vmem:[#allocation2 + $0x70] sm:$0xe] }
 0x199   :  { %v2819_v52 = vsel %vm12073_vm6, %v2690_v16, %v2818_v4  ;;  %v2822_v1 = vsel %vm11711_vm2, %v2691_v40, %v2821_v19  ;;  %v3511_v11 = vrot.slane %v8422_v31, 1  ;;  %9421 = vmatprep.subr.bf16.mxu0 %v10376_v61  ;;  %v3390_v48 = vor.u32 %v3389_v45, %v3385_v3  ;;  %v2824_v8 = vld [vmem:[#allocation2 + $0x90] sm:$0xf]  ;;  %v2827_v27 = vld [vmem:[#allocation2 + $0x94] sm:$0x1] }
 0x19a   :  { %2820 = vst [vmem:[#allocation2 + $0x88] sm:$0xf] %v2819_v52  ;;  %2823 = vst [vmem:[#allocation2 + $0x8c] sm:$0x1] %v2822_v1  ;;  %v2693_v25 = vshrl.u32 %v9070_v32, 16  ;;  %v2696_v39 = vshll.u32 %v9070_v32, 16  ;;  %9948 = vmatpush3.bf16.msra.mxu1 %v10379_v49  ;;  %v3397_v17 = vor.u32 %v3396_v0, %v3392_v21  ;;  %v8423_v4 = vcombine.low %v3256_v2, %v3240_v24 }
 0x19b   :  { %v3401_v22 = vshll.u32 %v8405_v59, 16  ;;  %v8491_v53 = vcombine.low %v3510_v57, %v3511_v11  ;;  %v3399_v42 = vshrl.u32 %v8405_v59, 16  ;;  %v3408_v7 = vshll.u32 %v8406_v51, 16  ;;  %v12326_v46 = vld [vmem:[#allocation2 + $0x8] sm:$0xf]  ;;  %9949 = vmatprep.subr.bf16.mxu1 %v10386_v9 }
 0x19c   :  { %v2695_v62 = vrot.slane %v2693_v25, 7  ;;  %v3406_v54 = vshrl.u32 %v8406_v51, 16  ;;  %v12331_v34 = vld [vmem:[#allocation2 + $0x70] sm:$0xf]  ;;  %9422 = vmatpush3.bf16.msra.mxu0 %v10378_v41  ;;  %v8487_v35 = vcombine.low %v3390_v48, %v3397_v17  ;;  %v8424_v49 = vcombine.low %v3257_v43, %v3241_v10  ;;  %v3242_v63 = vld [vmem:[#allocation2 + $0x7c] sm:$0x1] }
 0x19d   :  { %v3403_v33 = vrot.slane %v3401_v22, 1  ;;  %9927 = vmatprep.mubr.bf16.mxu0 %v8491_v53  ;;  %v3410_v60 = vrot.slane %v3408_v7, 1  ;;  %v8407_v5 = vcombine.low %v12318_v26, %v3240_v24  ;;  %v12334_v14 = vld [vmem:[#allocation2 + $0xc] sm:$0x1]  ;;  %9967 = vmatprep.subr.bf16.mxu0 %v12324_v18  ;;  %v8486_v44 = vcombine.low %v12274_v56, %v12281_v23  ;;  %v3258_v38 = vld [vmem:[#allocation2 + $0x78] sm:$0xe] }
 0x19e   :  { %v2698_v55 = vor.u32 %v2696_v39, %v2695_v62  ;;  %v2699_v15 = vrot.slane %v2695_v62, 4  ;;  %v12339_v13 = vld [vmem:[#allocation2 + $0x78] sm:$0xf]  ;;  %9950 = vmatpush3.bf16.msra.mxu1 %v10386_v9  ;;  %3847 = vmatprep.mubr.bf16.mxu1 %v8487_v35  ;;  %v3512_v61 = vrot.slane %v8423_v4, 1  ;;  %v3513_v16 = vrot.slane %v8424_v49, 1 }
 0x19f   :  { %v3404_v19 = vor.u32 %v3403_v33, %v3399_v42  ;;  %v3411_v58 = vor.u32 %v3410_v60, %v3406_v54  ;;  %v8408_v40 = vcombine.low %v12331_v34, %v3241_v10  ;;  %v3243_v12 = vld [vmem:[#allocation2 + $0x84] sm:$0x1]  ;;  %v3259_v3 = vld [vmem:[#allocation2 + $0x80] sm:$0xe]  ;;  %9487 = vmatprep.subr.bf16.mxu1 %v10389_v29  ;;  %3848 = vmatmul.mubr.bf16.gmra.mxu1 %v8486_v44  ;;  %v3415_v23 = vshll.u32 %v8407_v5, 16 }
 0x1a0   :  { %v2825_v45 = vsel %vm12073_vm6, %v2698_v55, %v2824_v8  ;;  %v2828_v56 = vsel %vm11711_vm2, %v2699_v15, %v2827_v27  ;;  %v12346_v21 = vld [vmem:[#allocation2 + $0x80] sm:$0xf]  ;;  %v8366_v47 = vcombine.low %v12326_v46, %v12334_v14  ;;  %v8494_v41 = vcombine.low %v3512_v61, %v3513_v16  ;;  %v12358_v62 = vld [vmem:[#allocation2 + $0x10] sm:$0xf]  ;;  %v12360_v33 = vld [vmem:[#allocation2 + $0x14] sm:$0x1] }
 0x1a1   :  { %2826 = vst [vmem:[#allocation2 + $0x90] sm:$0xf] %v2825_v45  ;;  %2829 = vst [vmem:[#allocation2 + $0x94] sm:$0x1] %v2828_v56  ;;  %v8490_v31 = vcombine.low %v3404_v19, %v3411_v58  ;;  %v3413_v9 = vshrl.u32 %v8407_v5, 16  ;;  %v3422_v52 = vshll.u32 %v8408_v40, 16  ;;  %v8425_v32 = vcombine.low %v3258_v38, %v3242_v63 }
 0x1a2   :  { %v3417_v1 = vrot.slane %v3415_v23, 1  ;;  %v8426_v59 = vcombine.low %v3259_v3, %v3243_v12  ;;  %v8409_v24 = vcombine.low %v12339_v13, %v3242_v63  ;;  %9928 = vmatmul.mubr.bf16.gmra.mxu0 %v8494_v41  ;;  %v3420_v2 = vshrl.u32 %v8408_v40, 16  ;;  %v3244_v11 = vld [vmem:[#allocation2 + $0x8c] sm:$0x1]  ;;  %v3260_v51 = vld [vmem:[#allocation2 + $0x88] sm:$0xe] }
 0x1a3   :  { %3855 = vmatprep.mubr.bf16.mxu1 %v8490_v31  ;;  %v3424_v0 = vrot.slane %v3422_v52, 1  ;;  %v8410_v57 = vcombine.low %v12346_v21, %v3243_v12  ;;  %v8489_v10 = vcombine.low %v12300_v30, %v12305_v36  ;;  %v3514_v25 = vrot.slane %v8425_v32, 1  ;;  %v12356_v22 = vld [vmem:[#allocation2 + $0x88] sm:$0xf]  ;;  %v12365_v35 = vld [vmem:[#allocation2 + $0x1c] sm:$0x1] }
 0x1a4   :  { %v3515_v39 = vrot.slane %v8426_v59, 1  ;;  %v2963_v48 = vrot.slane %v2961_v20, 1  ;;  %v3418_v43 = vor.u32 %v3417_v1, %v3413_v9  ;;  %v3429_v27 = vshll.u32 %v8409_v24, 16  ;;  %v12363_v20 = vld [vmem:[#allocation2 + $0x18] sm:$0xf] }
 0x1a5   :  { %v3425_v8 = vor.u32 %v3424_v0, %v3420_v2  ;;  %v3436_v17 = vshll.u32 %v8410_v57, 16  ;;  %v3434_v42 = vshrl.u32 %v8410_v57, 16  ;;  %v8427_v7 = vcombine.low %v3260_v51, %v3244_v11  ;;  %v12382_v2 = vld [vmem:[#allocation2 + $0x20] sm:$0xf]  ;;  %v12384_v51 = vld [vmem:[#allocation2 + $0x28] sm:$0xf] }
 0x1a6   :  { %v8497_v53 = vcombine.low %v3514_v25, %v3515_v39  ;;  %v2968_v29 = vshll.u32 %v8366_v47, 16  ;;  %v3431_v36 = vrot.slane %v3429_v27, 1  ;;  %v8411_v4 = vcombine.low %v12356_v22, %v3244_v11 }
 0x1a7   :  { %v8493_v30 = vcombine.low %v3418_v43, %v3425_v8  ;;  %v3438_v54 = vrot.slane %v3436_v17, 1  ;;  %3856 = vmatmul.mubr.bf16.gmra.mxu1 %v8489_v10  ;;  %v2966_v5 = vshrl.u32 %v8366_v47, 16  ;;  %v3427_v55 = vshrl.u32 %v8409_v24, 16  ;;  %v12380_v24 = vld [vmem:[#allocation2 + $0x2c] sm:$0x1] }
 0x1a8   :  { %9931 = vmatprep.mubr.bf16.mxu0 %v8497_v53  ;;  %v3245_v60 = vld [vmem:[#allocation2 + $0x94] sm:$0x1]  ;;  %v3261_v49 = vld [vmem:[#allocation2 + $0x90] sm:$0xe]  ;;  %v2970_v63 = vrot.slane %v2968_v29, 1  ;;  %v8367_v38 = vcombine.low %v12358_v62, %v12360_v33  ;;  %v3516_v58 = vrot.slane %v8427_v7, 1  ;;  %v2964_v61 = vor.u32 %v2963_v48, %v2959_v50 }
 0x1a9   :  { %3863 = vmatprep.mubr.bf16.mxu1 %v8493_v30  ;;  %v3439_v15 = vor.u32 %v3438_v54, %v3434_v42  ;;  %v8428_v44 = vcombine.low %v3261_v49, %v3245_v60  ;;  %v12367_v19 = vld [vmem:[#allocation2 + $0x90] sm:$0xf]  ;;  %v3432_v12 = vor.u32 %v3431_v36, %v3427_v55  ;;  %v3443_v45 = vshll.u32 %v8411_v4, 16  ;;  %v12378_v50 = vld [vmem:[#allocation2 + $0x24] sm:$0x1] }
 0x1aa   :  { %v2971_v16 = vor.u32 %v2970_v63, %v2966_v5  ;;  %v8412_v40 = vcombine.low %v12367_v19, %v3245_v60  ;;  %v8368_v56 = vcombine.low %v12363_v20, %v12365_v35  ;;  %v2975_v41 = vshll.u32 %v8367_v38, 16  ;;  %v2862_v43 = vld [vmem:[#allocation2] sm:$0xe]  ;;  %v2863_v8 = vld [vmem:[#allocation2 + $0x8] sm:$0xe]  ;;  %v10394_v63 = vld [vmem:[%s13736_s2 + $0x230] sm:$0xff]  }
 0x1ab   :  { %v3517_v3 = vrot.slane %v8428_v44, 1  ;;  %v8496_v47 = vcombine.low %v3432_v12, %v3439_v15  ;;  %v8492_v9 = vcombine.low %v12318_v26, %v12331_v34  ;;  %v3445_v32 = vrot.slane %v3443_v45, 1  ;;  %v12390_v42 = vld [vmem:[#allocation2 + $0x3c] sm:$0x1]  ;;  %v12392_v7 = vld [vmem:[#allocation2 + $0x38] sm:$0xf] }
 0x1ac   :  { %v3450_v23 = vshll.u32 %v8412_v40, 16  ;;  %v8526_v52 = vcombine.low %v2964_v61, %v2971_v16  ;;  %v2982_v28 = vshll.u32 %v8368_v56, 16  ;;  %v3448_v59 = vshrl.u32 %v8412_v40, 16  ;;  %v10675_v30 = vld [vmem:[#allocation2] sm:$0xf] }
 0x1ad   :  { %v8500_v31 = vcombine.low %v3516_v58, %v3517_v3  ;;  %v2977_v0 = vrot.slane %v2975_v41, 1  ;;  %v2980_v57 = vshrl.u32 %v8368_v56, 16  ;;  %v3441_v26 = vshrl.u32 %v8411_v4, 16  ;;  %v12395_v4 = vld [vmem:[#allocation2 + $0x34] sm:$0x1]  ;;  %v10407_v3 = vld [vmem:[%s13736_s2 + $0x228] sm:$0xff]  }
 0x1ae   :  { %v3452_v1 = vrot.slane %v3450_v23, 1  ;;  %v2984_v11 = vrot.slane %v2982_v28, 1  ;;  %v2973_v10 = vshrl.u32 %v8367_v38, 16  ;;  %v8369_v39 = vcombine.low %v12382_v2, %v12378_v50  ;;  %v12397_v60 = vld [vmem:[#allocation2 + $0x30] sm:$0xf] }
 0x1af   :  { %9932 = vmatmul.mubr.bf16.gmra.mxu0 %v8500_v31  ;;  %3864 = vmatmul.mubr.bf16.gmra.mxu1 %v8492_v9  ;;  %v3446_v48 = vor.u32 %v3445_v32, %v3441_v26  ;;  %v8370_v27 = vcombine.low %v12384_v51, %v12380_v24  ;;  %v8525_v36 = vcombine.low %v10675_v30, %v12326_v46  ;;  %v10676_v55 = vld [vmem:[#allocation2 + $0x4] sm:$0x1]  ;;  %v12412_v16 = vld [vmem:[#allocation2 + $0x54] sm:$0x1]  ;;  %v12419_v31 = vld [vmem:[#allocation2 + $0x58] sm:$0xf] }
 0x1b0   :  { %4209 = vmatprep.mubr.bf16.mxu0 %v8526_v52  ;;  %3871 = vmatprep.mubr.bf16.mxu1 %v8496_v47  ;;  %v3453_v34 = vor.u32 %v3452_v1, %v3448_v59  ;;  %v2985_v25 = vor.u32 %v2984_v11, %v2980_v57  ;;  %v2978_v17 = vor.u32 %v2977_v0, %v2973_v10  ;;  %v2989_v53 = vshll.u32 %v8369_v39, 16  ;;  %v12417_v47 = vld [vmem:[#allocation2 + $0x5c] sm:$0x1]  ;;  %v2864_v1 = vld [vmem:[#allocation2 + $0x10] sm:$0xe]  ;;  %v10419_v26 = vld [vmem:[%s13736_s2 + $0x220] sm:$0xff]  }
 0x1b1   :  { %v2996_v54 = vshll.u32 %v8370_v27, 16  ;;  %v8495_v49 = vcombine.low %v12339_v13, %v12346_v21  ;;  %v8381_v15 = vcombine.low %v2862_v43, %v10676_v55  ;;  %v8382_v44 = vcombine.low %v2863_v8, %v12334_v14  ;;  %v12410_v21 = vld [vmem:[#allocation2 + $0x50] sm:$0xf]  ;;  %v2865_v14 = vld [vmem:[#allocation2 + $0x18] sm:$0xe] }
 0x1b2   :  { %v8499_v29 = vcombine.low %v3446_v48, %v3453_v34  ;;  %v8529_v5 = vcombine.low %v2978_v17, %v2985_v25  ;;  %v8372_v46 = vcombine.low %v12392_v7, %v12390_v42  ;;  %v2991_v58 = vrot.slane %v2989_v53, 1  ;;  %v2866_v0 = vld [vmem:[#allocation2 + $0x20] sm:$0xe]  ;;  %v2870_v25 = vld [vmem:[#allocation2 + $0x50] sm:$0xe] }
 0x1b3   :  { %v2998_v38 = vrot.slane %v2996_v54, 1  ;;  %v2994_v61 = vshrl.u32 %v8370_v27, 16  ;;  %v8371_v13 = vcombine.low %v12397_v60, %v12395_v4  ;;  %v2987_v40 = vshrl.u32 %v8369_v39, 16  ;;  %v2869_v43 = vld [vmem:[#allocation2 + $0x38] sm:$0xe] }
 0x1b4   :  { %v3010_v45 = vshll.u32 %v8372_v46, 16  ;;  %v3118_v56 = vrot.slane %v8381_v15, 1  ;;  %v3119_v23 = vrot.slane %v8382_v44, 1  ;;  %v8498_v52 = vcombine.low %v12356_v22, %v12367_v19  ;;  %v12448_v53 = vld [vmem:[#allocation2 + $0x6c] sm:$0x1] }
 0x1b5   :  { %v2999_v12 = vor.u32 %v2998_v38, %v2994_v61  ;;  %v2992_v41 = vor.u32 %v2991_v58, %v2987_v40  ;;  %v3003_v9 = vshll.u32 %v8371_v13, 16  ;;  %v8528_v28 = vcombine.low %v12358_v62, %v12363_v20  ;;  %v2871_v54 = vld [vmem:[#allocation2 + $0x58] sm:$0xe]  ;;  %v12457_v38 = vld [vmem:[#allocation2 + $0x64] sm:$0x1] }
 0x1b6   :  { %v12427_v32 = vcombine.low %v12410_v21, %v12412_v16  ;;  %v8384_v59 = vcombine.low %v2865_v14, %v12365_v35  ;;  %v3012_v11 = vrot.slane %v3010_v45, 1  ;;  %v12435_v22 = vcombine.low %v12419_v31, %v12417_v47  ;;  %v12459_v58 = vld [vmem:[#allocation2 + $0x60] sm:$0xf] }
 0x1b7   :  { %4210 = vmatmul.mubr.bf16.vlgmr.msra.gmra.mxu0 %v8525_v36  ;;  %3872 = vmatmul.mubr.bf16.gmra.mxu1 %v8495_v49  ;;  %v8532_v57 = vcombine.low %v2992_v41, %v2999_v12  ;;  %v8527_v62 = vcombine.low %v3118_v56, %v3119_v23  ;;  %v8383_v19 = vcombine.low %v2864_v1, %v12360_v33  ;;  %v3005_v35 = vrot.slane %v3003_v9, 1  ;;  %v10431_v33 = vld [vmem:[%s13736_s2 + $0x218] sm:$0xff]   ;;  %v2868_v36 = vld [vmem:[#allocation2 + $0x30] sm:$0xe]  ;;  %v10401_v23 = vld [vmem:[%s13736_s2 + $0x1e8] sm:$0xff]  }
 0x1b8   :  { %4217 = vmatprep.mubr.bf16.mxu0 %v8529_v5  ;;  %3879 = vmatprep.mubr.bf16.mxu1 %v8499_v29  ;;  %v3008_v34 = vshrl.u32 %v8372_v46, 16  ;;  %v8385_v10 = vcombine.low %v2866_v0, %v12378_v50  ;;  %v3017_v39 = vshll.u32 %v12427_v32, 16  ;;  %v3121_v48 = vrot.slane %v8384_v59, 1  ;;  %v10392_v50 = vld [vmem:[%s13736_s2 + $0x1b8] sm:$0xff]   ;;  %v12450_v29 = vld [vmem:[#allocation2 + $0x68] sm:$0xf] }
 0x1b9   :  { %9968 = vmatpush3.bf16.msra.mxu0 %v12324_v18  ;;  %v2867_v18 = vld [vmem:[#allocation2 + $0x28] sm:$0xe]  ;;  %v3001_v8 = vshrl.u32 %v8371_v13, 16  ;;  %v3120_v30 = vrot.slane %v8383_v19, 1  ;;  %v8389_v49 = vcombine.low %v2870_v25, %v12412_v16  ;;  %v8388_v15 = vcombine.low %v2869_v43, %v12390_v42  ;;  %v10397_v13 = vld [vmem:[%s13736_s2 + $0x1f0] sm:$0xff]  }
 0x1ba   :  { %9969 = vmatprep.subr.bf16.mxu0 %v10394_v63  ;;  %v8386_v20 = vcombine.low %v2867_v18, %v12380_v24  ;;  %v3013_v27 = vor.u32 %v3012_v11, %v3008_v34  ;;  %v3024_v24 = vshll.u32 %v12435_v22, 16  ;;  %v3122_v55 = vrot.slane %v8385_v10, 1  ;;  %v10441_v12 = vld [vmem:[%s13736_s2 + $0x210] sm:$0xff]   ;;  %v2872_v18 = vld [vmem:[#allocation2 + $0x60] sm:$0xe] }
 0x1bb   :  { %v3006_v5 = vor.u32 %v3005_v35, %v3001_v8  ;;  %v8531_v44 = vcombine.low %v12382_v2, %v12384_v51  ;;  %v3019_v46 = vrot.slane %v3017_v39, 1  ;;  %v8530_v61 = vcombine.low %v3120_v30, %v3121_v48  ;;  %v2873_v41 = vld [vmem:[#allocation2 + $0x68] sm:$0xe]  ;;  %v12484_v1 = vld [vmem:[#allocation2 + $0x18] sm:$0xf]  ;;  %v10410_v48 = vld [vmem:[%s13736_s2 + $0x1e0] sm:$0xff]  }
 0x1bc   :  { %v3123_v17 = vrot.slane %v8386_v20, 1  ;;  %v3026_v14 = vrot.slane %v3024_v24, 1  ;;  %v12466_v42 = vcombine.low %v12450_v29, %v12448_v53  ;;  %v8387_v2 = vcombine.low %v2868_v36, %v12395_v4  ;;  %v10398_v4 = vld [vmem:[%s13736_s2 + $0x1b0] sm:$0xff]   ;;  %v12490_v11 = vld [vmem:[#allocation2 + $0x78] sm:$0xf] }
 0x1bd   :  { %9970 = vmatpush3.bf16.msra.mxu0 %v10394_v63  ;;  %v3015_v63 = vshrl.u32 %v12427_v32, 16  ;;  %v8535_v16 = vcombine.low %v3006_v5, %v3013_v27  ;;  %v8390_v51 = vcombine.low %v2871_v54, %v12417_v47  ;;  %v12476_v45 = vcombine.low %v12459_v58, %v12457_v38  ;;  %v10448_v32 = vld [vmem:[%s13736_s2 + $0x208] sm:$0xff]   ;;  %v2858_v34 = vld [vmem:[#allocation2 + $0x74] sm:$0x1]  ;;  %v12501_v25 = vld [vmem:[#allocation2 + $0x10] sm:$0xf] }
 0x1be   :  { %9971 = vmatprep.subr.bf16.mxu0 %v10407_v3  ;;  %v8533_v40 = vcombine.low %v3122_v55, %v3123_v17  ;;  %v3125_v56 = vrot.slane %v8388_v15, 1  ;;  %v3126_v47 = vrot.slane %v8389_v49, 1  ;;  %v3124_v59 = vrot.slane %v8387_v2, 1  ;;  %v12503_v39 = vld [vmem:[#allocation2 + $0x70] sm:$0xf]  ;;  %v10411_v49 = vld [vmem:[%s13736_s2 + $0x1a0] sm:$0xff]  }
 0x1bf   :  { %4218 = vmatmul.mubr.bf16.gmra.mxu0 %v8528_v28  ;;  %3880 = vmatmul.mubr.bf16.gmra.mxu1 %v8498_v52  ;;  %v3020_v9 = vor.u32 %v3019_v46, %v3015_v63  ;;  %v3038_v28 = vshll.u32 %v12466_v42, 16  ;;  %v3127_v0 = vrot.slane %v8390_v51, 1  ;;  %v3031_v20 = vshll.u32 %v12476_v45, 16  ;;  %v2874_v8 = vld [vmem:[#allocation2 + $0x70] sm:$0xe]  ;;  %v10414_v63 = vld [vmem:[%s13736_s2 + $0x1d8] sm:$0xff]  }
 0x1c0   :  { %4225 = vmatprep.mubr.bf16.mxu0 %v8532_v57  ;;  %9951 = vmatprep.mubr.bf16.mxu1 %v8527_v62  ;;  %v2859_v57 = vld [vmem:[#allocation2 + $0x7c] sm:$0x1]  ;;  %v8536_v19 = vcombine.low %v3124_v59, %v3125_v56  ;;  %v8392_v35 = vcombine.low %v2873_v41, %v12448_v53  ;;  %v8534_v10 = vcombine.low %v12397_v60, %v12392_v7  ;;  %v12509_v24 = vld [vmem:[#allocation2 + $0x14] sm:$0x1]  ;;  %v10455_v53 = vld [vmem:[%s13736_s2 + $0x200] sm:$0xff]   ;;  %v3036_v36 = vshrl.u32 %v12466_v42, 16 }
 0x1c1   :  { %9972 = vmatpush3.bf16.msra.mxu0 %v10407_v3  ;;  %v3022_v3 = vshrl.u32 %v12435_v22, 16  ;;  %v2875_v22 = vld [vmem:[#allocation2 + $0x78] sm:$0xe]  ;;  %v12495_v62 = vld [vmem:[#allocation2 + $0x1c] sm:$0x1]  ;;  %v8391_v43 = vcombine.low %v2872_v18, %v12457_v38  ;;  %v12512_v17 = vcombine.low %v12490_v11, %v2859_v57  ;;  %v8539_v7 = vcombine.low %v3126_v47, %v3127_v0 }
 0x1c2   :  { %9973 = vmatprep.subr.bf16.mxu0 %v10419_v26  ;;  %v8394_v60 = vcombine.low %v2875_v22, %v2859_v57  ;;  %v3033_v30 = vrot.slane %v3031_v20, 1  ;;  %v12523_v54 = vcombine.low %v12503_v39, %v2858_v34  ;;  %v3129_v5 = vrot.slane %v8392_v35, 1  ;;  %v2877_v38 = vld [vmem:[#allocation2 + $0x88] sm:$0xe]  ;;  %v10417_v51 = vld [vmem:[%s13736_s2 + $0x198] sm:$0xff]  }
 0x1c3   :  { %v3027_v52 = vor.u32 %v3026_v14, %v3022_v3  ;;  %v8393_v55 = vcombine.low %v2874_v8, %v2858_v34  ;;  %v12533_v15 = vcombine.low %v12501_v25, %v12509_v24  ;;  %v3029_v46 = vshrl.u32 %v12476_v45, 16  ;;  %v12540_v2 = vld [vmem:[#allocation2 + $0x88] sm:$0xf]  ;;  %v12545_v45 = vld [vmem:[#allocation2 + $0x2c] sm:$0x1] }
 0x1c4   :  { %v3128_v14 = vrot.slane %v8391_v43, 1  ;;  %v3131_v42 = vrot.slane %v8394_v60, 1  ;;  %v2876_v47 = vld [vmem:[#allocation2 + $0x80] sm:$0xe]  ;;  %v8537_v41 = vcombine.low %v12410_v21, %v12419_v31  ;;  %v12558_v0 = vld [vmem:[#allocation2 + $0x24] sm:$0x1] }
 0x1c5   :  { %9974 = vmatpush3.bf16.msra.mxu0 %v10419_v26  ;;  %v10405_v26 = vld [vmem:[%s13736_s2 + $0x1a8] sm:$0xff]   ;;  %v8538_v27 = vcombine.low %v3020_v9, %v3027_v52  ;;  %v3034_v3 = vor.u32 %v3033_v30, %v3029_v46  ;;  %v4503_v18 = vshll.u32 %v12533_v15, 16  ;;  %v12551_v9 = vld [vmem:[#allocation2 + $0x80] sm:$0xf]  ;;  %v10421_v52 = vld [vmem:[%s13736_s2 + $0x1d0] sm:$0xff]   ;;  %v3050_v35 = vshrl.u32 %v12512_v17, 16 }
 0x1c6   :  { %9975 = vmatprep.subr.bf16.mxu0 %v10431_v33  ;;  %v8542_v56 = vcombine.low %v3128_v14, %v3129_v5  ;;  %v12556_v59 = vld [vmem:[#allocation2 + $0x20] sm:$0xf]  ;;  %v8540_v46 = vcombine.low %v12459_v58, %v12450_v29  ;;  %v12588_v14 = vld [vmem:[#allocation2 + $0x30] sm:$0xf] }
 0x1c7   :  { %4226 = vmatmul.mubr.bf16.gmra.mxu0 %v8531_v44  ;;  %9952 = vmatmul.mubr.bf16.vlgmr.msra.gmra.mxu1 %v8530_v61  ;;  %v2861_v44 = vld [vmem:[#allocation2 + $0x8c] sm:$0x1]  ;;  %v8575_v8 = vcombine.low %v12556_v59, %v12558_v0 }
 0x1c8   :  { %4233 = vmatprep.mubr.bf16.mxu0 %v8535_v16  ;;  %9955 = vmatprep.mubr.bf16.mxu1 %v8533_v40  ;;  %v3052_v16 = vshll.u32 %v12512_v17, 16  ;;  %v3043_v17 = vshrl.u32 %v12523_v54, 16 }
 0x1c9   :  { %9488 = vmatpush3.bf16.msra.mxu1 %v10392_v50  ;;  %9976 = vmatpush3.bf16.msra.mxu0 %v10431_v33  ;;  %v3040_v33 = vrot.slane %v3038_v28, 1  ;;  %v12516_v50 = vcombine.low %v12484_v1, %v12495_v62  ;;  %v8396_v28 = vcombine.low %v2877_v38, %v2861_v44 }
 0x1ca   :  { %9489 = vmatprep.subr.bf16.mxu1 %v10397_v13  ;;  %9977 = vmatprep.subr.bf16.mxu0 %v10441_v12  ;;  %v12536_v13 = vld [vmem:[#allocation2 + $0x28] sm:$0xf]  ;;  %v3054_v57 = vrot.slane %v3052_v16, 1 }
 0x1cb   :  { %v3041_v61 = vor.u32 %v3040_v33, %v3036_v36  ;;  %v4510_v40 = vshll.u32 %v12516_v50, 16  ;;  %v8576_v21 = vcombine.low %v12536_v13, %v12545_v45  ;;  %v4508_v43 = vshrl.u32 %v12516_v50, 16  ;;  %v10425_v33 = vld [vmem:[%s13736_s2 + $0x1c8] sm:$0xff]   ;;  %v12576_v50 = vld [vmem:[#allocation2 + $0x38] sm:$0xf] }
 0x1cd   :  { %9490 = vmatpush3.bf16.msra.mxu1 %v10398_v4  ;;  %9978 = vmatpush3.bf16.msra.mxu0 %v10441_v12  ;;  %v2860_v12 = vld [vmem:[#allocation2 + $0x84] sm:$0x1]  ;;  %v3045_v4 = vshll.u32 %v12523_v54, 16  ;;  %v4512_v20 = vrot.slane %v4510_v40, 1  ;;  %v4524_v36 = vshll.u32 %v8576_v21, 16  ;;  %v4517_v54 = vshll.u32 %v8575_v8, 16 }
 0x1ce   :  { %9491 = vmatprep.subr.bf16.mxu1 %v10401_v23  ;;  %9979 = vmatprep.subr.bf16.mxu0 %v10448_v32  ;;  %v3130_v23 = vrot.slane %v8393_v55, 1  ;;  %v8395_v31 = vcombine.low %v2876_v47, %v2860_v12  ;;  %v8379_v34 = vcombine.low %v12551_v9, %v2860_v12 }
 0x1cf   :  { %4234 = vmatmul.mubr.bf16.gmra.mxu0 %v8534_v10  ;;  %9956 = vmatmul.mubr.bf16.gmra.mxu1 %v8536_v19  ;;  %v3047_v19 = vrot.slane %v3045_v4, 1  ;;  %v10422_v10 = vld [vmem:[%s13736_s2 + $0x190] sm:$0xff]   ;;  %v4513_v30 = vor.u32 %v4512_v20, %v4508_v43  ;;  %v4526_v12 = vrot.slane %v4524_v36, 1  ;;  %v10435_v4 = vld [vmem:[%s13736_s2 + $0x180] sm:$0xff]  }
 0x1d0   :  { %4241 = vmatprep.mubr.bf16.mxu0 %v8538_v27  ;;  %9959 = vmatprep.mubr.bf16.mxu1 %v8539_v7  ;;  %v8545_v22 = vcombine.low %v3130_v23, %v3131_v42  ;;  %v3133_v27 = vrot.slane %v8396_v28, 1  ;;  %v3055_v7 = vor.u32 %v3054_v57, %v3050_v35  ;;  %v3059_v55 = vshll.u32 %v8379_v34, 16  ;;  %v12590_v42 = vld [vmem:[#allocation2 + $0x34] sm:$0x1] }
 0x1d1   :  { %9492 = vmatpush3.bf16.msra.mxu1 %v10405_v26  ;;  %9980 = vmatpush3.bf16.msra.mxu0 %v10448_v32  ;;  %v8541_v32 = vcombine.low %v3034_v3, %v3041_v61  ;;  %v8380_v26 = vcombine.low %v12540_v2, %v2861_v44  ;;  %v3048_v5 = vor.u32 %v3047_v19, %v3043_v17  ;;  %v10426_v44 = vld [vmem:[%s13736_s2 + $0x188] sm:$0xff]   ;;  %v10434_v61 = vld [vmem:[%s13736_s2 + $0x1c0] sm:$0xff]   ;;  %v4522_v23 = vshrl.u32 %v8576_v21, 16 }
 0x1d2   :  { %9493 = vmatprep.subr.bf16.mxu1 %v10410_v48  ;;  %9981 = vmatprep.subr.bf16.mxu0 %v10455_v53  ;;  %v4505_v48 = vrot.slane %v4503_v18, 1  ;;  %v3061_v29 = vrot.slane %v3059_v55, 1  ;;  %v8577_v47 = vcombine.low %v12588_v14, %v12590_v42  ;;  %v3057_v18 = vshrl.u32 %v8379_v34, 16  ;;  %v12605_v19 = vld [vmem:[#allocation2 + $0x44] sm:$0x1] }
 0x1d3   :  { %v3066_v60 = vshll.u32 %v8380_v26, 16  ;;  %v8544_v16 = vcombine.low %v3048_v5, %v3055_v7  ;;  %v3064_v58 = vshrl.u32 %v8380_v26, 16  ;;  %v4515_v28 = vshrl.u32 %v8575_v8, 16  ;;  %v12601_v26 = vld [vmem:[#allocation2 + $0x4c] sm:$0x1] }
 0x1d4   :  { %v3062_v20 = vor.u32 %v3061_v29, %v3057_v18  ;;  %v4531_v35 = vshll.u32 %v8577_v47, 16  ;;  %v8543_v34 = vcombine.low %v12503_v39, %v12490_v11  ;;  %v4529_v36 = vshrl.u32 %v8577_v47, 16  ;;  %v4409_v5 = vld [vmem:[#allocation2 + $0x38] sm:$0xe]  ;;  %v4410_v47 = vld [vmem:[#allocation2 + $0x40] sm:$0xe] }
 0x1d5   :  { %9494 = vmatpush3.bf16.msra.mxu1 %v10411_v49  ;;  %9982 = vmatpush3.bf16.msra.mxu0 %v10455_v53  ;;  %v4501_v53 = vshrl.u32 %v12533_v15, 16  ;;  %v3132_v49 = vrot.slane %v8395_v31, 1  ;;  %v3068_v40 = vrot.slane %v3066_v60, 1  ;;  %v12603_v31 = vld [vmem:[#allocation2 + $0x40] sm:$0xf] }
 0x1d6   :  { %9495 = vmatprep.subr.bf16.mxu1 %v10414_v63  ;;  %v12578_v63 = vld [vmem:[#allocation2 + $0x3c] sm:$0x1]  ;;  %v8579_v7 = vcombine.low %v12603_v31, %v12605_v19  ;;  %v4533_v39 = vrot.slane %v4531_v35, 1  ;;  %v4411_v18 = vld [vmem:[#allocation2 + $0x48] sm:$0xe] }
 0x1d7   :  { %4242 = vmatmul.mubr.bf16.gmra.mxu0 %v8537_v41  ;;  %9960 = vmatmul.mubr.bf16.gmra.mxu1 %v8542_v56  ;;  %v4506_v38 = vor.u32 %v4505_v48, %v4501_v53  ;;  %v8548_v15 = vcombine.low %v3132_v49, %v3133_v27  ;;  %v8578_v3 = vcombine.low %v12576_v50, %v12578_v63  ;;  %v4519_v56 = vrot.slane %v4517_v54, 1 }
 0x1d8   :  { %4249 = vmatprep.mubr.bf16.mxu0 %v8541_v32  ;;  %9963 = vmatprep.mubr.bf16.mxu1 %v8545_v22  ;;  %v3069_v41 = vor.u32 %v3068_v40, %v3064_v58  ;;  %v4527_v32 = vor.u32 %v4526_v12, %v4522_v23  ;;  %v4405_v22 = vld [vmem:[#allocation2 + $0x18] sm:$0xe]  ;;  %v8653_v48 = vcombine.low %v12501_v25, %v12484_v1  ;;  %v4407_v1 = vld [vmem:[#allocation2 + $0x28] sm:$0xe]  ;;  %v12624_v12 = vld [vmem:[#allocation2 + $0x60] sm:$0xf] }
 0x1d9   :  { %9496 = vmatpush3.bf16.msra.mxu1 %v10417_v51  ;;  %v8654_v51 = vcombine.low %v4506_v38, %v4513_v30  ;;  %v4538_v57 = vshll.u32 %v8578_v3, 16  ;;  %v4520_v21 = vor.u32 %v4519_v56, %v4515_v28  ;;  %v8590_v27 = vcombine.low %v4405_v22, %v12495_v62  ;;  %v4406_v30 = vld [vmem:[#allocation2 + $0x20] sm:$0xe]  ;;  %v4397_v38 = vld [vmem:[#allocation2 + $0x6c] sm:$0x1] }
 0x1da   :  { %9497 = vmatprep.subr.bf16.mxu1 %v10421_v52  ;;  %v12599_v52 = vld [vmem:[#allocation2 + $0x48] sm:$0xf]  ;;  %v8547_v43 = vcombine.low %v3062_v20, %v3069_v41  ;;  %v4536_v60 = vshrl.u32 %v8578_v3, 16  ;;  %v4545_v62 = vshll.u32 %v8579_v7, 16  ;;  %v8592_v54 = vcombine.low %v4407_v1, %v12545_v45  ;;  %v4396_v3 = vld [vmem:[#allocation2 + $0x64] sm:$0x1] }
 0x1db   :  { %v8580_v8 = vcombine.low %v12599_v52, %v12601_v26  ;;  %v4540_v17 = vrot.slane %v4538_v57, 1  ;;  %v4661_v53 = vrot.slane %v8590_v27, 1  ;;  %v8594_v29 = vcombine.low %v4409_v5, %v12578_v63  ;;  %v4413_v57 = vld [vmem:[#allocation2 + $0x68] sm:$0xe]  ;;  %v12633_v20 = vld [vmem:[#allocation2 + $0x78] sm:$0xf] }
 0x1dc   :  { %v8591_v58 = vcombine.low %v4406_v30, %v12558_v0  ;;  %v4547_v45 = vrot.slane %v4545_v62, 1  ;;  %v4415_v30 = vld [vmem:[#allocation2 + $0x78] sm:$0xe]  ;;  %v4417_v62 = vld [vmem:[#allocation2 + $0x88] sm:$0xe] }
 0x1dd   :  { %9498 = vmatpush3.bf16.msra.mxu1 %v10422_v10  ;;  %v4404_v10 = vld [vmem:[#allocation2 + $0x10] sm:$0xe]  ;;  %v4552_v25 = vshll.u32 %v8580_v8, 16  ;;  %v4541_v49 = vor.u32 %v4540_v17, %v4536_v60  ;;  %v4665_v23 = vrot.slane %v8594_v29, 1 }
 0x1de   :  { %9499 = vmatprep.subr.bf16.mxu1 %v10425_v33  ;;  %v8657_v33 = vcombine.low %v4520_v21, %v4527_v32  ;;  %v8589_v11 = vcombine.low %v4404_v10, %v12509_v24  ;;  %v8546_v24 = vcombine.low %v12551_v9, %v12540_v2  ;;  %v4663_v9 = vrot.slane %v8592_v54, 1  ;;  %v12631_v32 = vld [vmem:[#allocation2 + $0x70] sm:$0xf]  ;;  %v4399_v21 = vld [vmem:[#allocation2 + $0x7c] sm:$0x1] }
 0x1df   :  { %4250 = vmatmul.mubr.bf16.gmra.mxu0 %v8540_v46  ;;  %9964 = vmatmul.mubr.bf16.gmra.mxu1 %v8548_v15  ;;  %v4534_v46 = vor.u32 %v4533_v39, %v4529_v36  ;;  %v4550_v15 = vshrl.u32 %v8580_v8, 16  ;;  %v4554_v40 = vrot.slane %v4552_v25, 1  ;;  %v4662_v63 = vrot.slane %v8591_v58, 1  ;;  %v4414_v54 = vld [vmem:[#allocation2 + $0x70] sm:$0xe] }
 0x1e0   :  { %4257 = vmatprep.mubr.bf16.mxu0 %v8544_v16  ;;  %4981 = vmatprep.mubr.bf16.mxu1 %v8654_v51  ;;  %v4660_v55 = vrot.slane %v8589_v11, 1  ;;  %v8656_v16 = vcombine.low %v12556_v59, %v12536_v13  ;;  %v4543_v13 = vshrl.u32 %v8579_v7, 16  ;;  %v8581_v59 = vcombine.low %v12624_v12, %v4396_v3 }
 0x1e1   :  { %9500 = vmatpush3.bf16.msra.mxu1 %v10426_v44  ;;  %v12617_v44 = vld [vmem:[#allocation2 + $0x68] sm:$0xf]  ;;  %v4555_v0 = vor.u32 %v4554_v40, %v4550_v15  ;;  %v8595_v10 = vcombine.low %v4410_v47, %v12605_v19  ;;  %v8659_v8 = vcombine.low %v12588_v14, %v12576_v50  ;;  %v8584_v11 = vcombine.low %v12633_v20, %v4399_v21 }
 0x1e2   :  { %9501 = vmatprep.subr.bf16.mxu1 %v10434_v61  ;;  %v4408_v61 = vld [vmem:[#allocation2 + $0x30] sm:$0xe]  ;;  %v8655_v51 = vcombine.low %v4660_v55, %v4661_v53  ;;  %v8582_v56 = vcombine.low %v12617_v44, %v4397_v38  ;;  %v4548_v41 = vor.u32 %v4547_v45, %v4543_v13  ;;  %v4559_v35 = vshll.u32 %v8581_v59, 16 }
 0x1e3   :  { %v8593_v2 = vcombine.low %v4408_v61, %v12590_v42  ;;  %v8658_v42 = vcombine.low %v4662_v63, %v4663_v9  ;;  %v4557_v50 = vshrl.u32 %v8581_v59, 16  ;;  %v4580_v36 = vshll.u32 %v8584_v11, 16  ;;  %v4418_v63 = vld [vmem:[#allocation2 + $0x90] sm:$0xe] }
 0x1e4   :  { %v4566_v28 = vshll.u32 %v8582_v56, 16  ;;  %v8663_v17 = vcombine.low %v4548_v41, %v4555_v0  ;;  %v4561_v19 = vrot.slane %v4559_v35, 1  ;;  %v4564_v1 = vshrl.u32 %v8582_v56, 16  ;;  %v4419_v41 = vld [vmem:[#allocation2 + $0x98] sm:$0xe] }
 0x1e5   :  { %9502 = vmatpush3.bf16.msra.mxu1 %v10435_v4  ;;  %v8660_v4 = vcombine.low %v4534_v46, %v4541_v49  ;;  %v4664_v22 = vrot.slane %v8593_v2, 1  ;;  %v4401_v49 = vld [vmem:[#allocation2 + $0x8c] sm:$0x1]  ;;  %v8600_v61 = vcombine.low %v4415_v30, %v4399_v21  ;;  %v8662_v40 = vcombine.low %v12603_v31, %v12599_v52  ;;  %v4402_v52 = vld [vmem:[#allocation2 + $0x94] sm:$0x1] }
 0x1e6   :  { %v4568_v7 = vrot.slane %v4566_v28, 1  ;;  %v4562_v46 = vor.u32 %v4561_v19, %v4557_v50  ;;  %v8602_v29 = vcombine.low %v4417_v62, %v4401_v49  ;;  %v4578_v13 = vshrl.u32 %v8584_v11, 16  ;;  %v4403_v31 = vld [vmem:[#allocation2 + $0x9c] sm:$0x1]  ;;  %v4387_v35 = vld [vmem:[#allocation2 + $0x98] sm:$0xf] }
 0x1e7   :  { %4258 = vmatmul.mubr.bf16.gmra.mxu0 %v8543_v34  ;;  %v4398_v34 = vld [vmem:[#allocation2 + $0x74] sm:$0x1]  ;;  %v8661_v27 = vcombine.low %v4664_v22, %v4665_v23  ;;  %v4671_v23 = vrot.slane %v8600_v61, 1  ;;  %v8588_v11 = vcombine.low %v4387_v35, %v4403_v31 }
 0x1e8   :  { %4982 = vmatmul.mubr.bf16.vlgmr.msra.gmra.mxu1 %v8653_v48  ;;  %4265 = vmatprep.mubr.bf16.mxu0 %v8547_v43  ;;  %v8596_v48 = vcombine.low %v4411_v18, %v12601_v26  ;;  %v4412_v43 = vld [vmem:[#allocation2 + $0x60] sm:$0xe]  ;;  %v8583_v39 = vcombine.low %v12631_v32, %v4398_v34  ;;  %v4666_v26 = vrot.slane %v8595_v10, 1  ;;  %v4569_v14 = vor.u32 %v4568_v7, %v4564_v1 }
 0x1e9   :  { %4989 = vmatprep.mubr.bf16.mxu1 %v8657_v33  ;;  %v8598_v33 = vcombine.low %v4413_v57, %v4397_v38  ;;  %v8597_v60 = vcombine.low %v4412_v43, %v4396_v3  ;;  %v12641_v38 = vld [vmem:[#allocation2 + $0x88] sm:$0xf]  ;;  %v12645_v3 = vld [vmem:[#allocation2 + $0x80] sm:$0xf]  ;;  %v8599_v56 = vcombine.low %v4414_v54, %v4398_v34  ;;  %v4673_v18 = vrot.slane %v8602_v29, 1 }
 0x1ea   :  { %v4667_v25 = vrot.slane %v8596_v48, 1  ;;  %v4573_v5 = vshll.u32 %v8583_v39, 16  ;;  %v8666_v58 = vcombine.low %v4562_v46, %v4569_v14  ;;  %v8586_v45 = vcombine.low %v12641_v38, %v4401_v49 }
 0x1eb   :  { %v4669_v53 = vrot.slane %v8598_v33, 1  ;;  %v4668_v55 = vrot.slane %v8597_v60, 1  ;;  %v4571_v47 = vshrl.u32 %v8583_v39, 16  ;;  %v4670_v57 = vrot.slane %v8599_v56, 1 }
 0x1ec   :  { %v8664_v15 = vcombine.low %v4666_v26, %v4667_v25  ;;  %v4575_v2 = vrot.slane %v4573_v5, 1  ;;  %v4594_v28 = vshll.u32 %v8586_v45, 16  ;;  %v8603_v48 = vcombine.low %v4418_v63, %v4402_v52  ;;  %v10484_v63 = vld [vmem:[%s13737_s3 + $0x138] sm:$0xff]  }
 0x1ed   :  { %v8670_v10 = vcombine.low %v4670_v57, %v4671_v23  ;;  %v8604_v43 = vcombine.low %v4419_v41, %v4403_v31  ;;  %v4592_v60 = vshrl.u32 %v8586_v45, 16  ;;  %v4608_v30 = vshll.u32 %v8588_v11, 16  ;;  %v10485_v41 = vld [vmem:[%s13737_s3 + $0x170] sm:$0xff]   ;;  %9567 = vmatprep.subr.bf16.mxu0 %v10484_v63 }
 0x1ee   :  { %v4576_v22 = vor.u32 %v4575_v2, %v4571_v47  ;;  %v4674_v19 = vrot.slane %v8603_v48, 1  ;;  %v4606_v49 = vshrl.u32 %v8588_v11, 16  ;;  %v8671_v46 = vcombine.low %v12645_v3, %v12641_v38 }
 0x1ef   :  { %4266 = vmatmul.mubr.bf16.gmra.mxu0 %v8546_v24  ;;  %v4400_v24 = vld [vmem:[#allocation2 + $0x84] sm:$0x1]  ;;  %v4675_v1 = vrot.slane %v8604_v43, 1  ;;  %v4610_v62 = vrot.slane %v4608_v30, 1 }
 0x1f0   :  { %4990 = vmatmul.mubr.bf16.gmra.mxu1 %v8656_v16  ;;  %9983 = vmatprep.mubr.bf16.mxu0 %v8655_v51  ;;  %v4416_v16 = vld [vmem:[#allocation2 + $0x80] sm:$0xe]  ;;  %v8667_v51 = vcombine.low %v4668_v55, %v4669_v53  ;;  %v8585_v59 = vcombine.low %v12645_v3, %v4400_v24 }
 0x1f1   :  { %4997 = vmatprep.mubr.bf16.mxu1 %v8660_v4  ;;  %v4582_v4 = vrot.slane %v4580_v36, 1  ;;  %v8601_v9 = vcombine.low %v4416_v16, %v4400_v24  ;;  %v8676_v14 = vcombine.low %v4674_v19, %v4675_v1  ;;  %v4611_v54 = vor.u32 %v4610_v62, %v4606_v49  ;;  %v10489_v19 = vld [vmem:[%s13737_s3 + $0xf0] sm:$0xff]   ;;  %v10490_v1 = vld [vmem:[%s13737_s3 + $0x128] sm:$0xff]   ;;  %v10494_v49 = vld [vmem:[%s13737_s3 + $0x158] sm:$0xff]  }
 0x1f2   :  { %v4587_v34 = vshll.u32 %v8585_v59, 16  ;;  %v4585_v26 = vshrl.u32 %v8585_v59, 16 }
 0x1f3   :  { %v4583_v0 = vor.u32 %v4582_v4, %v4578_v13  ;;  %v4672_v21 = vrot.slane %v8601_v9, 1  ;;  %v10483_v9 = vld [vmem:[%s13737_s3 + $0x178] sm:$0xff]  }
 0x1f4   :  { %v4589_v39 = vrot.slane %v4587_v34, 1  ;;  %9999 = vmatprep.subr.bf16.mxu1 %v10483_v9  ;;  %v10487_v34 = vld [vmem:[%s13737_s3 + $0x130] sm:$0xff]  }
 0x1f5   :  { %v8669_v33 = vcombine.low %v4576_v22, %v4583_v0  ;;  %10000 = vmatpush3.bf16.msra.mxu1 %v10483_v9 }
 0x1f6   :  { %v4590_v50 = vor.u32 %v4589_v39, %v4585_v26  ;;  %10001 = vmatprep.subr.bf16.mxu1 %v10485_v41  ;;  %v10491_v26 = vld [vmem:[%s13737_s3 + $0x160] sm:$0xff]  }
 0x1f7   :  { %9984 = vmatmul.mubr.bf16.vlgmr.msra.gmra.mxu0 %v8658_v42  ;;  %v4386_v42 = vld [vmem:[#allocation2 + $0x90] sm:$0xf] }
 0x1f8   :  { %4998 = vmatmul.mubr.bf16.gmra.mxu1 %v8659_v8  ;;  %9987 = vmatprep.mubr.bf16.mxu0 %v8661_v27  ;;  %v8665_v8 = vcombine.low %v12624_v12, %v12617_v44  ;;  %v8673_v27 = vcombine.low %v4672_v21, %v4673_v18  ;;  %v8587_v7 = vcombine.low %v4386_v42, %v4402_v52 }
 0x1f9   :  { %5005 = vmatprep.mubr.bf16.mxu1 %v8663_v17  ;;  %v4596_v17 = vrot.slane %v4594_v28, 1  ;;  %v8668_v44 = vcombine.low %v12631_v32, %v12633_v20  ;;  %v8674_v24 = vcombine.low %v4386_v42, %v4387_v35  ;;  %10002 = vmatpush3.bf16.msra.mxu1 %v10485_v41  ;;  %v10486_v42 = vld [vmem:[%s13737_s3 + $0xf8] sm:$0xff]  }
 0x1fa   :  { %v4601_v53 = vshll.u32 %v8587_v7, 16  ;;  %v4599_v5 = vshrl.u32 %v8587_v7, 16  ;;  %9568 = vmatpush3.bf16.msra.mxu0 %v10486_v42 }
 0x1fb   :  { %v4597_v25 = vor.u32 %v4596_v17, %v4592_v60  ;;  %9569 = vmatprep.subr.bf16.mxu0 %v10487_v34  ;;  %v10502_v34 = vld [vmem:[%s13737_s3 + $0x108] sm:$0xff]  }
 0x1fc   :  { %v4603_v36 = vrot.slane %v4601_v53, 1 }
 0x1fd   :  { %v8672_v12 = vcombine.low %v4590_v50, %v4597_v25 }
 0x1fe   :  { %v4604_v55 = vor.u32 %v4603_v36, %v4599_v5  ;;  %9570 = vmatpush3.bf16.msra.mxu0 %v10489_v19  ;;  %v10493_v36 = vld [vmem:[%s13737_s3 + $0x120] sm:$0xff]  }
 0x1ff   :  { %9988 = vmatmul.mubr.bf16.gmra.mxu0 %v8664_v15  ;;  %9571 = vmatprep.subr.bf16.mxu0 %v10490_v1  ;;  %v10514_v1 = vld [vmem:[%s13737_s3 + $0xb8] sm:$0xff]  }
 0x200   :  { %5006 = vmatmul.mubr.bf16.gmra.mxu1 %v8662_v40  ;;  %9991 = vmatprep.mubr.bf16.mxu0 %v8667_v51  ;;  %v8675_v15 = vcombine.low %v4604_v55, %v4611_v54  ;;  %v10495_v54 = vld [vmem:[%s13737_s3 + $0xe0] sm:$0xff]  }
 0x201   :  { %5013 = vmatprep.mubr.bf16.mxu1 %v8666_v58 }
 0x207   :  { %9992 = vmatmul.mubr.bf16.gmra.mxu0 %v8670_v10  ;;  %v10488_v10 = vld [vmem:[%s13737_s3 + $0x168] sm:$0xff]  }
 0x208   :  { %5014 = vmatmul.mubr.bf16.gmra.mxu1 %v8665_v8  ;;  %9995 = vmatprep.mubr.bf16.mxu0 %v8673_v27 }
 0x209   :  { %5021 = vmatprep.mubr.bf16.mxu1 %v8669_v33  ;;  %10003 = vmatprep.subr.bf16.mxu1 %v10488_v10 }
 0x20a   :  { %10004 = vmatpush3.bf16.msra.mxu1 %v10488_v10  ;;  %v10503_v10 = vld [vmem:[%s13737_s3 + $0x140] sm:$0xff]  }
 0x20b   :  { %10005 = vmatprep.subr.bf16.mxu1 %v10491_v26 }
 0x20e   :  { %10006 = vmatpush3.bf16.msra.mxu1 %v10491_v26 }
 0x20f   :  { %9996 = vmatmul.mubr.bf16.gmra.mxu0 %v8676_v14  ;;  %10007 = vmatprep.subr.bf16.mxu1 %v10494_v49 }
 0x210   :  { %5022 = vmatmul.mubr.bf16.gmra.mxu1 %v8668_v44 }
 0x211   :  { %5029 = vmatprep.mubr.bf16.mxu1 %v8672_v12  ;;  %v10492_v12 = vld [vmem:[%s13737_s3 + $0xe8] sm:$0xff]  }
 0x212   :  { %9572 = vmatpush3.bf16.msra.mxu0 %v10492_v12  ;;  %10008 = vmatpush3.bf16.msra.mxu1 %v10494_v49 }
 0x213   :  { %9573 = vmatprep.subr.bf16.mxu0 %v10493_v36 }
 0x216   :  { %9574 = vmatpush3.bf16.msra.mxu0 %v10495_v54 }
 0x218   :  { %5030 = vmatmul.mubr.bf16.gmra.mxu1 %v8671_v46 }
 0x219   :  { %5037 = vmatprep.mubr.bf16.mxu1 %v8675_v15 }
 0x220   :  { %5038 = vmatmul.mubr.bf16.gmra.mxu1 %v8674_v24 }
 0x23e   :  { %v9921_v32 = vpop.f32.mrf.mxu0 }
 0x240   :  { %v9343_v61 = vpop.f32.mrf.mxu1  ;;  %v3922_v16 = vpop.f32.mrf.mxu0 }
 0x242   :  { %v9344_v20 = vpop.f32.mrf.mxu1  ;;  %v9922_v13 = vpop.f32.mrf.mxu0 }
 0x243   :  { %v9345_v40 = vadd.f32 %v9344_v20, %v9343_v61  ;;  %v10496_v61 = vld [vmem:[%s13737_s3 + $0x118] sm:$0xff]  }
 0x244   :  { %v12655_v51 = vpop.f32.mrf.mxu1  ;;  %v12668_v52 = vpop.f32.mrf.mxu0  ;;  %9575 = vmatprep.subr.bf16.mxu0 %v10496_v61 }
 0x245   :  { %v12657_v29 = vadd.f32 %v9345_v40, %v3922_v16  ;;  %v10498_v16 = vld [vmem:[%s13737_s3 + $0xd8] sm:$0xff]  }
 0x246   :  { %v12659_v58 = vpop.f32.mrf.mxu1  ;;  %9576 = vmatpush3.bf16.msra.mxu0 %v10498_v16 }
 0x24a   :  { %v9349_v4 = vpop.f32.mrf.mxu1 }
 0x24c   :  { %v9350_v45 = vpop.f32.mrf.mxu1 }
 0x24d   :  { %v9351_v56 = vadd.f32 %v9350_v45, %v9349_v4 }
 0x24e   :  { %v9352_v38 = vpop.f32.mrf.mxu1 }
 0x24f   :  { %v12661_v3 = vadd.f32 %v9921_v32, %v9351_v56  ;;  %v10497_v32 = vld [vmem:[%s13737_s3 + $0x150] sm:$0xff]  }
 0x250   :  { %v9353_v2 = vpop.f32.mrf.mxu1  ;;  %10009 = vmatprep.subr.bf16.mxu1 %v10497_v32 }
 0x251   :  { %v9354_v59 = vadd.f32 %v9353_v2, %v9352_v38  ;;  %10010 = vmatpush3.bf16.msra.mxu1 %v10497_v32 }
 0x253   :  { %v12666_v23 = vadd.f32 %v9922_v13, %v9354_v59 }
 0x255   :  { %v9355_v31 = vpop.f32.mrf.mxu1 }
 0x257   :  { %v9356_v47 = vpop.f32.mrf.mxu1  ;;  %v9925_v18 = vpop.f32.mrf.mxu0 }
 0x258   :  { %v9357_v0 = vadd.f32 %v9356_v47, %v9355_v31  ;;  %v10499_v31 = vld [vmem:[%s13737_s3 + $0x110] sm:$0xff]   ;;  %v10500_v47 = vld [vmem:[%s13737_s3 + $0x148] sm:$0xff]  }
 0x259   :  { %v12676_v28 = vpop.f32.mrf.mxu1  ;;  %v3938_v57 = vpop.f32.mrf.mxu0  ;;  %9577 = vmatprep.subr.bf16.mxu0 %v10499_v31  ;;  %10011 = vmatprep.subr.bf16.mxu1 %v10500_v47 }
 0x25a   :  { %v12678_v22 = vadd.f32 %v9357_v0, %v3938_v57  ;;  %10012 = vmatpush3.bf16.msra.mxu1 %v10500_v47 }
 0x25b   :  { %v12680_v21 = vpop.f32.mrf.mxu1  ;;  %v9926_v35 = vpop.f32.mrf.mxu0  ;;  %10013 = vmatprep.subr.bf16.mxu1 %v10503_v10 }
 0x25d   :  { %v12691_v43 = vpop.f32.mrf.mxu0 }
 0x25e   :  { %10014 = vmatpush3.bf16.msra.mxu1 %v10503_v10 }
 0x25f   :  { %v9361_v48 = vpop.f32.mrf.mxu1 }
 0x261   :  { %v9362_v8 = vpop.f32.mrf.mxu1 }
 0x262   :  { %v9363_v27 = vadd.f32 %v9362_v8, %v9361_v48  ;;  %v9929_v33 = vpop.f32.mrf.mxu0  ;;  %v10504_v48 = vld [vmem:[%s13737_s3 + $0xc8] sm:$0xff]  }
 0x263   :  { %v9364_v17 = vpop.f32.mrf.mxu1 }
 0x264   :  { %v12693_v7 = vadd.f32 %v9925_v18, %v9363_v27  ;;  %v3954_v11 = vpop.f32.mrf.mxu0  ;;  %v10501_v18 = vld [vmem:[%s13737_s3 + $0xd0] sm:$0xff]  }
 0x265   :  { %v9365_v39 = vpop.f32.mrf.mxu1  ;;  %9578 = vmatpush3.bf16.msra.mxu0 %v10501_v18 }
 0x266   :  { %v9366_v60 = vadd.f32 %v9365_v39, %v9364_v17  ;;  %v9930_v30 = vpop.f32.mrf.mxu0  ;;  %9579 = vmatprep.subr.bf16.mxu0 %v10502_v34 }
 0x267   :  { %v9367_v25 = vpop.f32.mrf.mxu1 }
 0x268   :  { %v12704_v53 = vadd.f32 %v9926_v35, %v9366_v60  ;;  %v12719_v5 = vpop.f32.mrf.mxu0  ;;  %v10513_v60 = vld [vmem:[%s13737_s3 + $0xc0] sm:$0xff]  }
 0x269   :  { %v9368_v50 = vpop.f32.mrf.mxu1  ;;  %9580 = vmatpush3.bf16.msra.mxu0 %v10504_v48 }
 0x26a   :  { %13781 = vst [vmem:[#allocation7_spill] sm:$0xff] %v12704_v53  ;;  %v9369_v14 = vadd.f32 %v9368_v50, %v9367_v25 }
 0x26b   :  { %v12706_v44 = vpop.f32.mrf.mxu1 }
 0x26c   :  { %v12717_v62 = vadd.f32 %v9369_v14, %v3954_v11  ;;  %v10517_v11 = vld [vmem:[%s13737_s3 + $0x78] sm:$0xff]  }
 0x26d   :  { %v12721_v55 = vpop.f32.mrf.mxu1  ;;  %9647 = vmatprep.subr.bf16.mxu1 %v10517_v11 }
 0x26e   :  { %13782 = vst [vmem:[#allocation13_spill] sm:$0xff] %v12717_v62 }
 0x26f   :  { %v9933_v46 = vpop.f32.mrf.mxu0  ;;  %v9373_v15 = vpop.f32.mrf.mxu1 }
 0x271   :  { %v3970_v24 = vpop.f32.mrf.mxu0  ;;  %v9374_v20 = vpop.f32.mrf.mxu1 }
 0x272   :  { %v9375_v40 = vadd.f32 %v9374_v20, %v9373_v15 }
 0x273   :  { %v9934_v4 = vpop.f32.mrf.mxu0  ;;  %v9376_v45 = vpop.f32.mrf.mxu1 }
 0x274   :  { %v12735_v56 = vadd.f32 %v9929_v33, %v9375_v40  ;;  %v10510_v33 = vld [vmem:[%s13737_s3 + $0x100] sm:$0xff]  }
 0x275   :  { %v12737_v38 = vpop.f32.mrf.mxu0  ;;  %v9377_v2 = vpop.f32.mrf.mxu1  ;;  %9581 = vmatprep.subr.bf16.mxu0 %v10510_v33 }
 0x276   :  { %13783 = vst [vmem:[#allocation15_spill] sm:$0xff] %v12735_v56  ;;  %v9378_v9 = vadd.f32 %v9377_v2, %v9376_v45  ;;  %9582 = vmatpush3.bf16.msra.mxu0 %v10513_v60 }
 0x277   :  { %v12739_v13 = vpop.f32.mrf.mxu0  ;;  %v9379_v59 = vpop.f32.mrf.mxu1  ;;  %10031 = vmatprep.subr.bf16.mxu0 %v10514_v1 }
 0x278   :  { %v12750_v63 = vadd.f32 %v9930_v30, %v9378_v9 }
 0x279   :  { %v12752_v41 = vpop.f32.mrf.mxu0  ;;  %v9380_v0 = vpop.f32.mrf.mxu1 }
 0x27a   :  { %13784 = vst [vmem:[#allocation11_spill] sm:$0xff] %v12750_v63  ;;  %v9381_v57 = vadd.f32 %v9380_v0, %v9379_v59 }
 0x27b   :  { %v12754_v42 = vpop.f32.mrf.mxu0  ;;  %v12756_v35 = vpop.f32.mrf.mxu1 }
 0x27c   :  { %v12767_v8 = vadd.f32 %v9381_v57, %v3970_v24 }
 0x27d   :  { %v12769_v27 = vpop.f32.mrf.mxu0  ;;  %v12774_v17 = vpop.f32.mrf.mxu1 }
 0x27e   :  { %13785 = vst [vmem:[#allocation12_spill] sm:$0xff] %v12767_v8 }
 0x27f   :  { %v9429_v39 = vpop.f32.mrf.mxu0  ;;  %v9385_v19 = vpop.f32.mrf.mxu1 }
 0x281   :  { %v9430_v26 = vpop.f32.mrf.mxu0  ;;  %v9386_v25 = vpop.f32.mrf.mxu1 }
 0x282   :  { %v9387_v30 = vadd.f32 %v9386_v25, %v9385_v19  ;;  %v9431_v63 = vadd.f32 %v9430_v26, %v9429_v39 }
 0x283   :  { %v9432_v50 = vpop.f32.mrf.mxu0  ;;  %v9388_v14 = vpop.f32.mrf.mxu1 }
 0x284   :  { %v12785_v12 = vadd.f32 %v9933_v46, %v9387_v30  ;;  %v4220_v26 = vadd.f32 %v9431_v63, %v12661_v3 }
 0x285   :  { %v9433_v36 = vpop.f32.mrf.mxu0  ;;  %v9389_v49 = vpop.f32.mrf.mxu1 }
 0x286   :  { %v9390_v54 = vadd.f32 %v9389_v49, %v9388_v14  ;;  %v9434_v56 = vadd.f32 %v9433_v36, %v9432_v50 }
 0x287   :  { %v9435_v15 = vpop.f32.mrf.mxu0  ;;  %v12787_v24 = vpop.f32.mrf.mxu1 }
 0x288   :  { %v12789_v61 = vadd.f32 %v9934_v4, %v9390_v54  ;;  %v4317_v63 = vadd.f32 %v12787_v24, %v4220_v26 }
 0x289   :  { %v9436_v32 = vpop.f32.mrf.mxu0  ;;  %v12791_v20 = vpop.f32.mrf.mxu1 }
 0x28b   :  { %v9438_v16 = vpop.f32.mrf.mxu0  ;;  %v12793_v40 = vpop.f32.mrf.mxu1 }
 0x28d   :  { %v9439_v45 = vpop.f32.mrf.mxu0  ;;  %v12795_v2 = vpop.f32.mrf.mxu1 }
 0x28f   :  { %v9441_v9 = vpop.f32.mrf.mxu0  ;;  %v12797_v46 = vpop.f32.mrf.mxu1 }
 0x290   :  { %13786 = vst [vmem:[#allocation14_spill] sm:$0xff] %v12797_v46 }
 0x291   :  { %v9442_v59 = vpop.f32.mrf.mxu0  ;;  %v12799_v31 = vpop.f32.mrf.mxu1 }
 0x293   :  { %v12801_v47 = vpop.f32.mrf.mxu0  ;;  %v12803_v18 = vpop.f32.mrf.mxu1 }
 0x294   :  { %13787 = vst [vmem:[#allocation8_spill] sm:$0xff] %v12803_v18 }
 0x295   :  { %v12805_v4 = vpop.f32.mrf.mxu0  ;;  %v12807_v0 = vpop.f32.mrf.mxu1 }
 0x296   :  { %13788 = vst [vmem:[#allocation17_spill] sm:$0xff] %v12807_v0 }
 0x297   :  { %v12809_v57 = vpop.f32.mrf.mxu0  ;;  %v12811_v34 = vpop.f32.mrf.mxu1 }
 0x298   :  { %13789 = vst [vmem:[#allocation16_spill] sm:$0xff] %v12811_v34 }
 0x299   :  { %v9448_v10 = vpop.f32.mrf.mxu0  ;;  %v12813_v48 = vpop.f32.mrf.mxu1 }
 0x29a   :  { %13790 = vst [vmem:[#allocation18_spill] sm:$0xff] %v12813_v48 }
 0x29b   :  { %v9450_v33 = vpop.f32.mrf.mxu0  ;;  %v12815_v11 = vpop.f32.mrf.mxu1 }
 0x29c   :  { %13791 = vst [vmem:[#allocation9_spill] sm:$0xff] %v12815_v11 }
 0x29d   :  { %v9451_v60 = vpop.f32.mrf.mxu0  ;;  %v12817_v19 = vpop.f32.mrf.mxu1 }
 0x29e   :  { %13792 = vst [vmem:[#allocation19_spill] sm:$0xff] %v12817_v19  ;;  %v9348_v19 = vadd.f32 %v12659_v58, %v12655_v51  ;;  %v9372_v51 = vadd.f32 %v12721_v55, %v12706_v44  ;;  %v9384_v58 = vadd.f32 %v12774_v17, %v12756_v35 }
 0x29f   :  { %v12819_v1 = vpop.f32.mrf.mxu0  ;;  %v9965_v25 = vpop.f32.mrf.mxu1 }
 0x2a0   :  { %v3926_v46 = vadd.f32 %v9348_v19, %v12668_v52  ;;  %v9440_v19 = vadd.f32 %v9439_v45, %v9438_v16  ;;  %v3958_v55 = vadd.f32 %v9372_v51, %v12719_v5  ;;  %v12856_v35 = vadd.f32 %v9384_v58, %v12737_v38 }
 0x2a1   :  { %v12821_v30 = vpop.f32.mrf.mxu0  ;;  %v12823_v14 = vpop.f32.mrf.mxu1  ;;  %v9452_v45 = vadd.f32 %v9451_v60, %v9450_v33 }
 0x2a2   :  { %13793 = vst [vmem:[#allocation20_spill] sm:$0xff] %v12823_v14  ;;  %v9425_v14 = vadd.f32 %v12752_v41, %v12739_v13  ;;  %v9437_v13 = vadd.f32 %v9436_v32, %v9435_v15 }
 0x2a3   :  { %v12825_v49 = vpop.f32.mrf.mxu0  ;;  %v12827_v54 = vpop.f32.mrf.mxu1 }
 0x2a4   :  { %13794 = vst [vmem:[#allocation21_spill] sm:$0xff] %v12827_v54  ;;  %v9360_v54 = vadd.f32 %v12680_v21, %v12676_v28  ;;  %v4212_v39 = vadd.f32 %v9425_v14, %v12657_v29  ;;  %v4228_v29 = vadd.f32 %v9437_v13, %v12678_v22 }
 0x2a5   :  { %v9457_v6 = vpop.f32.mrf.mxu0  ;;  %v12829_v37 = vpop.f32.mrf.mxu1 }
 0x2a6   :  { %13795 = vst [vmem:[#allocation22_spill] sm:$0xff] %v12829_v37  ;;  %v9428_v37 = vadd.f32 %v12769_v27, %v12754_v42  ;;  %v4223_v42 = vadd.f32 %v9434_v56, %v12666_v23  ;;  %v9443_v27 = vadd.f32 %v9442_v59, %v9441_v9  ;;  %v3942_v52 = vadd.f32 %v9360_v54, %v12691_v43  ;;  %v5517_v59 = vld [vmem:[#allocation2] sm:$0xf] }
 0x2a7   :  { %v9459_v34 = vpop.f32.mrf.mxu0  ;;  %v4309_v23 = vadd.f32 %v12791_v20, %v4212_v39  ;;  %v9449_v20 = vadd.f32 %v9448_v10, %v12809_v57  ;;  %v9458_v14 = vadd.f32 %v9457_v6, %v12825_v49  ;;  %v13797_v57 = vld [vmem:[#allocation14_spill] sm:$0xff]  ;;  %v13800_v6 = vld [vmem:[#allocation13_spill] sm:$0xff] }
 0x2a8   :  { %v9503_v48 = vpop.f32.mrf.mxu1  ;;  %v4215_v28 = vadd.f32 %v9428_v37, %v3926_v46  ;;  %v4236_v37 = vadd.f32 %v9443_v27, %v12693_v7  ;;  %v4320_v43 = vadd.f32 %v12793_v40, %v4223_v42  ;;  %v4231_v22 = vadd.f32 %v9440_v19, %v3942_v52  ;;  %v13801_v42 = vld [vmem:[#allocation15_spill] sm:$0xff] }
 0x2a9   :  { %v9460_v11 = vpop.f32.mrf.mxu0 }
 0x2aa   :  { %v9504_v0 = vpop.f32.mrf.mxu1  ;;  %v4312_v15 = vadd.f32 %v12795_v2, %v4215_v28  ;;  %v12872_v2 = vadd.f32 %v12799_v31, %v4228_v29 }
 0x2ab   :  { %v12831_v18 = vpop.f32.mrf.mxu0  ;;  %v9505_v9 = vadd.f32 %v9504_v0, %v9503_v48  ;;  %v13798_v48 = vld [vmem:[#allocation21_spill] sm:$0xff] }
 0x2ac   :  { %13796 = vst [vmem:[#allocation23_spill] sm:$0xff] %v12831_v18  ;;  %v12835_v8 = vpop.f32.mrf.mxu1 }
 0x2ad   :  { %v12839_v62 = vpop.f32.mrf.mxu0 }
 0x2ae   :  { %v9507_v53 = vpop.f32.mrf.mxu1 }
 0x2af   :  { %v9465_v18 = vpop.f32.mrf.mxu0  ;;  %v9508_v58 = vadd.f32 %v9507_v53, %v12835_v8 }
 0x2b0   :  { %v9509_v41 = vpop.f32.mrf.mxu1 }
 0x2b1   :  { %v9466_v50 = vpop.f32.mrf.mxu0 }
 0x2b2   :  { %v9510_v21 = vpop.f32.mrf.mxu1  ;;  %v9467_v36 = vadd.f32 %v9466_v50, %v9465_v18  ;;  %v5533_v18 = vld [vmem:[#allocation2 + $0x4] sm:$0x1]  ;;  %v13802_v50 = vld [vmem:[#allocation11_spill] sm:$0xff] }
 0x2b3   :  { %v9468_v44 = vpop.f32.mrf.mxu0  ;;  %v9511_v5 = vadd.f32 %v9510_v21, %v9509_v41  ;;  %v12890_v51 = vcombine.low %v5517_v59, %v5533_v18  ;;  %v4255_v28 = vadd.f32 %v9458_v14, %v13802_v50  ;;  %v13803_v21 = vld [vmem:[#allocation12_spill] sm:$0xff]  ;;  %v13804_v52 = vld [vmem:[#allocation23_spill] sm:$0xff]  ;;  %v13810_v18 = vld [vmem:[#allocation9_spill] sm:$0xff] }
 0x2b4   :  { %v9512_v17 = vpop.f32.mrf.mxu1  ;;  %v4268_v3 = vadd.f32 %v9467_v36, %v12785_v12  ;;  %v9446_v12 = vadd.f32 %v12805_v4, %v12801_v47  ;;  %v9461_v47 = vadd.f32 %v9460_v11, %v9459_v34  ;;  %v12880_v4 = vld [vmem:[%s13739_s5] ss:$0 sm:$0xff]  ;;  %v4244_v34 = vadd.f32 %v9449_v20, %v13800_v6 }
 0x2b5   :  { %v9469_v56 = vpop.f32.mrf.mxu0  ;;  %v4247_v11 = vadd.f32 %v9452_v45, %v3958_v55  ;;  %v9464_v19 = vadd.f32 %v12839_v62, %v13804_v52 }
 0x2b6   :  { %v9513_v32 = vpop.f32.mrf.mxu1  ;;  %v12865_v38 = vadd.f32 %v9965_v25, %v4268_v3  ;;  %v9470_v16 = vadd.f32 %v9469_v56, %v9468_v44  ;;  %v9455_v25 = vadd.f32 %v12821_v30, %v12819_v1  ;;  %v13799_v1 = vld [vmem:[#allocation7_spill] sm:$0xff]  ;;  %v4260_v36 = vadd.f32 %v9461_v47, %v13803_v21  ;;  %v13806_v56 = vld [vmem:[#allocation17_spill] sm:$0xff] }
 0x2b7   :  { %v9985_v7 = vpop.f32.mrf.mxu0  ;;  %v9514_v10 = vadd.f32 %v9513_v32, %v9512_v17  ;;  %v4239_v30 = vadd.f32 %v9446_v12, %v13799_v1  ;;  %v12923_v47 = vadd.f32 %v9464_v19, %v12856_v35  ;;  %v5436_v21 = vld [vmem:[#allocation2 + $0x1c] sm:$0x1] }
 0x2b8   :  { %v9515_v46 = vpop.f32.mrf.mxu1  ;;  %v4271_v24 = vadd.f32 %v9470_v16, %v12789_v61  ;;  %v5089_v40 = vadd.f32 %v9985_v7, %v9511_v5  ;;  %v12883_v61 = vadd.f32 %v13797_v57, %v4236_v37  ;;  %v4252_v27 = vadd.f32 %v9455_v25, %v13801_v42  ;;  %v13805_v37 = vld [vmem:[#allocation8_spill] sm:$0xff]  ;;  %v13807_v5 = vld [vmem:[#allocation18_spill] sm:$0xff]  ;;  %v13808_v16 = vld [vmem:[#allocation19_spill] sm:$0xff] }
 0x2b9   :  { %v5080_v0 = vpop.f32.mrf.mxu0  ;;  %v12907_v32 = vadd.f32 %v13807_v5, %v4244_v34  ;;  %v12910_v12 = vadd.f32 %v13808_v16, %v4247_v11  ;;  %v13811_v25 = vld [vmem:[#allocation20_spill] sm:$0xff] }
 0x2ba   :  { %v9516_v31 = vpop.f32.mrf.mxu1  ;;  %v12886_v33 = vadd.f32 %v13798_v48, %v4271_v24  ;;  %v5145_v60 = vadd.f32 %v5089_v40, %v4317_v63  ;;  %v5081_v54 = vadd.f32 %v9505_v9, %v5080_v0  ;;  %v12904_v63 = vadd.f32 %v13806_v56, %v4231_v22  ;;  %v13809_v40 = vld [vmem:[#allocation16_spill] sm:$0xff]  ;;  %v5424_v56 = vld [vmem:[#allocation2 + $0xc] sm:$0x1] }
 0x2bb   :  { %v9986_v49 = vpop.f32.mrf.mxu0  ;;  %v9517_v9 = vadd.f32 %v9516_v31, %v9515_v46  ;;  %v12914_v59 = vadd.f32 %v13809_v40, %v4252_v27  ;;  %v12917_v22 = vadd.f32 %v13810_v18, %v4255_v28  ;;  %v12920_v14 = vadd.f32 %v13811_v25, %v4260_v36  ;;  %v5433_v28 = vld [vmem:[#allocation2 + $0x18] sm:$0xf] }
 0x2bc   :  { %v9518_v13 = vpop.f32.mrf.mxu1  ;;  %v5168_v41 = vadd.f32 %v12880_v4, %v5145_v60  ;;  %v5143_v39 = vadd.f32 %v5081_v54, %v4309_v23  ;;  %v5092_v26 = vadd.f32 %v9986_v49, %v9514_v10  ;;  %v12901_v23 = vadd.f32 %v13805_v37, %v4239_v30 }
 0x2bd   :  { %v5083_v44 = vpop.f32.mrf.mxu0 }
 0x2be   :  { %v9519_v55 = vpop.f32.mrf.mxu1  ;;  %v5184_v29 = vmax.f32 %v5168_v41, 0.0  ;;  %v5166_v17 = vadd.f32 %v12880_v4, %v5143_v39  ;;  %v5146_v53 = vadd.f32 %v5092_v26, %v4320_v43  ;;  %v5084_v8 = vadd.f32 %v9508_v58, %v5083_v44 }
 0x2bf   :  { %v9989_v3 = vpop.f32.mrf.mxu0  ;;  %v9520_v60 = vadd.f32 %v9519_v55, %v9518_v13 }
 0x2c0   :  { %v9521_v62 = vpop.f32.mrf.mxu1  ;;  %v9073_v20 = vpack.c.bf16 %v5184_v29, %v5184_v29  ;;  %v5182_v45 = vmax.f32 %v5166_v17, 0.0  ;;  %v5169_v7 = vadd.f32 %v12880_v4, %v5146_v53  ;;  %v5144_v43 = vadd.f32 %v5084_v8, %v4312_v15  ;;  %v10678_v29 = vld [vmem:[%s13737_s3 + $0xb8] sm:$0xff]  }
 0x2c1   :  { %v5096_v24 = vpop.f32.mrf.mxu0 }
 0x2c2   :  { %v9522_v0 = vpop.f32.mrf.mxu1  ;;  %v5279_v57 = vshrl.u32 %v9073_v20, 16  ;;  %v9071_v10 = vpack.c.bf16 %v5182_v45, %v5182_v45  ;;  %v5185_v48 = vmax.f32 %v5169_v7, 0.0  ;;  %v5167_v46 = vadd.f32 %v12880_v4, %v5144_v43  ;;  %v10677_v45 = vld [vmem:[#allocation2 + $0x8] sm:$0xf] }
 0x2c3   :  { %v9523_v15 = vadd.f32 %v9522_v0, %v9521_v62  ;;  %v5097_v31 = vadd.f32 %v9517_v9, %v5096_v24  ;;  %v9990_v54 = vpop.f32.mrf.mxu0  ;;  %v5282_v30 = vshll.u32 %v9073_v20, 16 }
 0x2c4   :  { %v5281_v1 = vrot.slane %v5279_v57, 7  ;;  %v9524_v6 = vpop.f32.mrf.mxu1  ;;  %v5263_v34 = vshrl.u32 %v9071_v10, 16  ;;  %v9074_v11 = vpack.c.bf16 %v5185_v48, %v5185_v48  ;;  %v5266_v49 = vshll.u32 %v9071_v10, 16  ;;  %v5439_v48 = vld [vmem:[#allocation2 + $0x20] sm:$0xf] }
 0x2c5   :  { %v5183_v58 = vmax.f32 %v5167_v46, 0.0  ;;  %v5105_v41 = vadd.f32 %v9989_v3, %v9523_v15  ;;  %v5147_v35 = vadd.f32 %v5097_v31, %v12872_v2  ;;  %v5099_v39 = vpop.f32.mrf.mxu0  ;;  %v5442_v15 = vld [vmem:[#allocation2 + $0x24] sm:$0x1] }
 0x2c6   :  { %v5284_v26 = vor.u32 %v5282_v30, %v5281_v1  ;;  %v5285_v42 = vrot.slane %v5281_v1, 4  ;;  %v5265_v27 = vrot.slane %v5263_v34, 7  ;;  %v9525_v13 = vpop.f32.mrf.mxu1  ;;  %v5287_v50 = vshrl.u32 %v9074_v11, 16 }
 0x2c7   :  { %v9526_v36 = vadd.f32 %v9525_v13, %v9524_v6  ;;  %v5290_v52 = vshll.u32 %v9074_v11, 16  ;;  %v9072_v19 = vpack.c.bf16 %v5183_v58, %v5183_v58  ;;  %v5149_v44 = vadd.f32 %v5105_v41, %v12883_v61  ;;  %v12928_v55 = vpop.f32.mrf.mxu0  ;;  %v5427_v58 = vld [vmem:[#allocation2 + $0x10] sm:$0xf]  ;;  %v5430_v41 = vld [vmem:[#allocation2 + $0x14] sm:$0x1] }
 0x2c8   :  { %v5434_v17 = vsel %vm12073_vm6, %v5284_v26, %v5433_v28  ;;  %v5437_v2 = vsel %vm11711_vm2, %v5285_v42, %v5436_v21  ;;  %v5268_v8 = vor.u32 %v5266_v49, %v5265_v27  ;;  %v5269_v3 = vrot.slane %v5265_v27, 4  ;;  %v9527_v37 = vpop.f32.mrf.mxu1  ;;  %v13814_v28 = vld [vmem:[#allocation22_spill] sm:$0xff] }
 0x2c9   :  { %5435 = vst [vmem:[#allocation2 + $0x18] sm:$0xf] %v5434_v17  ;;  %5438 = vst [vmem:[#allocation2 + $0x1c] sm:$0x1] %v5437_v2  ;;  %v5289_v5 = vrot.slane %v5287_v50, 7  ;;  %v5271_v16 = vshrl.u32 %v9072_v19, 16  ;;  %v5172_v20 = vadd.f32 %v12880_v4, %v5149_v44  ;;  %v5112_v61 = vpop.f32.mrf.mxu0  ;;  %v5170_v24 = vadd.f32 %v12880_v4, %v5147_v35 }
 0x2ca   :  { %v5274_v62 = vshll.u32 %v9072_v19, 16  ;;  %v5422_v7 = vsel %vm12073_vm6, %v5268_v8, %v10677_v45  ;;  %v5425_v43 = vsel %vm11711_vm2, %v5269_v3, %v5424_v56  ;;  %v9528_v9 = vpop.f32.mrf.mxu1  ;;  %v5108_v40 = vadd.f32 %v9990_v54, %v9526_v36 }
 0x2cb   :  { %5423 = vst [vmem:[#allocation2 + $0x8] sm:$0xf] %v5422_v7  ;;  %5426 = vst [vmem:[#allocation2 + $0xc] sm:$0x1] %v5425_v43  ;;  %v5292_v18 = vor.u32 %v5290_v52, %v5289_v5  ;;  %v5293_v25 = vrot.slane %v5289_v5, 4  ;;  %v5273_v0 = vrot.slane %v5271_v16, 7  ;;  %v9529_v57 = vadd.f32 %v9528_v9, %v9527_v37  ;;  %v12940_v10 = vpop.f32.mrf.mxu0 }
 0x2cc   :  { %v5188_v46 = vmax.f32 %v5172_v20, 0.0  ;;  %v9530_v31 = vpop.f32.mrf.mxu1  ;;  %v5186_v1 = vmax.f32 %v5170_v24, 0.0  ;;  %v5150_v30 = vadd.f32 %v5108_v40, %v12901_v23  ;;  %v5100_v6 = vadd.f32 %v9520_v60, %v5099_v39 }
 0x2cd   :  { %v5440_v34 = vsel %vm12073_vm6, %v5292_v18, %v5439_v48  ;;  %v5443_v54 = vsel %vm11711_vm2, %v5293_v25, %v5442_v15  ;;  %v5276_v11 = vor.u32 %v5274_v62, %v5273_v0  ;;  %v5277_v49 = vrot.slane %v5273_v0, 4  ;;  %v5115_v50 = vpop.f32.mrf.mxu0  ;;  %v5457_v18 = vld [vmem:[#allocation2 + $0x38] sm:$0xf]  ;;  %v5460_v25 = vld [vmem:[#allocation2 + $0x3c] sm:$0x1] }
 0x2ce   :  { %5441 = vst [vmem:[#allocation2 + $0x20] sm:$0xf] %v5440_v34  ;;  %5444 = vst [vmem:[#allocation2 + $0x24] sm:$0x1] %v5443_v54  ;;  %v9077_v35 = vpack.c.bf16 %v5188_v46, %v5188_v46  ;;  %v9075_v26 = vpack.c.bf16 %v5186_v1, %v5186_v1  ;;  %v9531_v42 = vpop.f32.mrf.mxu1  ;;  %v5173_v27 = vadd.f32 %v12880_v4, %v5150_v30  ;;  %v5445_v15 = vld [vmem:[#allocation2 + $0x28] sm:$0xf] }
 0x2cf   :  { %v5148_v23 = vadd.f32 %v5100_v6, %v12904_v63  ;;  %v5428_v60 = vsel %vm12073_vm6, %v5276_v11, %v5427_v58  ;;  %v5431_v39 = vsel %vm11711_vm2, %v5277_v49, %v5430_v41  ;;  %v5113_v13 = vadd.f32 %v9529_v57, %v5112_v61  ;;  %v12968_v24 = vpop.f32.mrf.mxu0  ;;  %v5448_v46 = vld [vmem:[#allocation2 + $0x2c] sm:$0x1] }
 0x2d0   :  { %v12955_v21 = vadd.f32 %v13814_v28, %v12923_v47  ;;  %5432 = vst [vmem:[#allocation2 + $0x14] sm:$0x1] %v5431_v39  ;;  %5429 = vst [vmem:[#allocation2 + $0x10] sm:$0xf] %v5428_v60  ;;  %v5311_v36 = vshrl.u32 %v9077_v35, 16  ;;  %v5314_v52 = vshll.u32 %v9077_v35, 16  ;;  %v9532_v44 = vadd.f32 %v9531_v42, %v9530_v31  ;;  %v9533_v17 = vpop.f32.mrf.mxu1 }
 0x2d1   :  { %v5295_v19 = vshrl.u32 %v9075_v26, 16  ;;  %v12957_v63 = vld [vmem:[#allocation2 + $0x1c] sm:$0x1]  ;;  %v5298_v2 = vshll.u32 %v9075_v26, 16  ;;  %v5189_v8 = vmax.f32 %v5173_v27, 0.0  ;;  %v5171_v3 = vadd.f32 %v12880_v4, %v5148_v23  ;;  %v5128_v27 = vpop.f32.mrf.mxu0 }
 0x2d2   :  { %v5151_v37 = vadd.f32 %v5113_v13, %v12907_v32  ;;  %v12961_v56 = vld [vmem:[#allocation2 + $0x18] sm:$0xe]  ;;  %v5313_v5 = vrot.slane %v5311_v36, 7  ;;  %v9534_v16 = vpop.f32.mrf.mxu1  ;;  %v5116_v62 = vadd.f32 %v9532_v44, %v5115_v50  ;;  %v12983_v41 = vld [vmem:[#allocation2 + $0x8] sm:$0xf] }
 0x2d3   :  { %v5297_v47 = vrot.slane %v5295_v19, 7  ;;  %v8768_v20 = vcombine.low %v12961_v56, %v12957_v63  ;;  %v12965_v61 = vld [vmem:[#allocation2 + $0x18] sm:$0xf]  ;;  %v9078_v45 = vpack.c.bf16 %v5189_v8, %v5189_v8  ;;  %v5187_v7 = vmax.f32 %v5171_v3, 0.0  ;;  %v12986_v23 = vld [vmem:[#allocation2 + $0xc] sm:$0x1] }
 0x2d4   :  { %v9535_v43 = vadd.f32 %v9534_v16, %v9533_v17  ;;  %v5174_v9 = vadd.f32 %v12880_v4, %v5151_v37  ;;  %v5316_v40 = vor.u32 %v5314_v52, %v5313_v5  ;;  %v5317_v32 = vrot.slane %v5313_v5, 4  ;;  %v9536_v48 = vpop.f32.mrf.mxu1  ;;  %v5463_v8 = vld [vmem:[#allocation2 + $0x40] sm:$0xf] }
 0x2d5   :  { %v5300_v0 = vor.u32 %v5298_v2, %v5297_v47  ;;  %v5301_v57 = vrot.slane %v5297_v47, 4  ;;  %v5319_v31 = vshrl.u32 %v9078_v45, 16  ;;  %v9076_v1 = vpack.c.bf16 %v5187_v7, %v5187_v7 }
 0x2d6   :  { %v5121_v30 = vadd.f32 %v12928_v55, %v9535_v43  ;;  %v12973_v6 = vcombine.low %v12965_v61, %v12957_v63  ;;  %v5458_v34 = vsel %vm12073_vm6, %v5316_v40, %v5457_v18  ;;  %v5461_v54 = vsel %vm11711_vm2, %v5317_v32, %v5460_v25  ;;  %v9537_v58 = vpop.f32.mrf.mxu1  ;;  %v5451_v43 = vld [vmem:[#allocation2 + $0x30] sm:$0xf] }
 0x2d7   :  { %v5446_v11 = vsel %vm12073_vm6, %v5300_v0, %v5445_v15  ;;  %v5449_v49 = vsel %vm11711_vm2, %v5301_v57, %v5448_v46  ;;  %5462 = vst [vmem:[#allocation2 + $0x3c] sm:$0x1] %v5461_v54  ;;  %5459 = vst [vmem:[#allocation2 + $0x38] sm:$0xf] %v5458_v34  ;;  %v5321_v55 = vrot.slane %v5319_v31, 7  ;;  %v5322_v35 = vshll.u32 %v9078_v45, 16 }
 0x2d8   :  { %5450 = vst [vmem:[#allocation2 + $0x2c] sm:$0x1] %v5449_v49  ;;  %5447 = vst [vmem:[#allocation2 + $0x28] sm:$0xf] %v5446_v11  ;;  %v5303_v26 = vshrl.u32 %v9076_v1, 16  ;;  %v5153_v42 = vadd.f32 %v5121_v30, %v12914_v59  ;;  %v5306_v60 = vshll.u32 %v9076_v1, 16  ;;  %v9538_v13 = vadd.f32 %v9537_v58, %v9536_v48  ;;  %v9539_v50 = vpop.f32.mrf.mxu1 }
 0x2d9   :  { %v5190_v39 = vmax.f32 %v5174_v9, 0.0  ;;  %v5152_v28 = vadd.f32 %v5116_v62, %v12910_v12  ;;  %v5324_v36 = vor.u32 %v5322_v35, %v5321_v55  ;;  %v5325_v52 = vrot.slane %v5321_v55, 4  ;;  %v12990_v17 = vld [vmem:[#allocation2 + $0x10] sm:$0xf]  ;;  %v12992_v2 = vld [vmem:[#allocation2 + $0x14] sm:$0x1]  ;;  %v13004_v9 = vpop.f32.mrf.mxu0 }
 0x2da   :  { %v5305_v19 = vrot.slane %v5303_v26, 7  ;;  %v5176_v44 = vadd.f32 %v12880_v4, %v5153_v42  ;;  %v5466_v59 = vld [vmem:[#allocation2 + $0x44] sm:$0x1]  ;;  %v5124_v37 = vadd.f32 %v12940_v10, %v9538_v13  ;;  %v9540_v47 = vpop.f32.mrf.mxu1  ;;  %v12998_v12 = vcombine.low %v12983_v41, %v12986_v23  ;;  %v5454_v10 = vld [vmem:[#allocation2 + $0x34] sm:$0x1] }
 0x2db   :  { %v9079_v3 = vpack.c.bf16 %v5190_v39, %v5190_v39  ;;  %v5175_v5 = vadd.f32 %v12880_v4, %v5152_v28  ;;  %v5464_v16 = vsel %vm12073_vm6, %v5324_v36, %v5463_v8  ;;  %v5467_v62 = vsel %vm11711_vm2, %v5325_v52, %v5466_v59  ;;  %v13007_v0 = vld [vmem:[#allocation2 + $0x8] sm:$0xe]  ;;  %v5469_v11 = vld [vmem:[#allocation2 + $0x58] sm:$0xf]  ;;  %v5131_v35 = vpop.f32.mrf.mxu0  ;;  %v5934_v8 = vld [vmem:[#allocation2 + $0x10] sm:$0xe] }
 0x2dc   :  { %v5308_v45 = vor.u32 %v5306_v60, %v5305_v19  ;;  %v5309_v7 = vrot.slane %v5305_v19, 4  ;;  %5465 = vst [vmem:[#allocation2 + $0x40] sm:$0xf] %v5464_v16  ;;  %5468 = vst [vmem:[#allocation2 + $0x44] sm:$0x1] %v5467_v62  ;;  %v5192_v40 = vmax.f32 %v5176_v44, 0.0  ;;  %v5154_v18 = vadd.f32 %v5124_v37, %v12917_v22  ;;  %v9542_v25 = vpop.f32.mrf.mxu1 }
 0x2dd   :  { %v5327_v32 = vshrl.u32 %v9079_v3, 16  ;;  %v13011_v57 = vcombine.low %v12990_v17, %v12992_v2  ;;  %v5191_v46 = vmax.f32 %v5175_v5, 0.0  ;;  %v9541_v31 = vadd.f32 %v9540_v47, %v9539_v50  ;;  %v5472_v50 = vld [vmem:[#allocation2 + $0x5c] sm:$0x1] }
 0x2de   :  { %v5452_v48 = vsel %vm12073_vm6, %v5308_v45, %v5451_v43  ;;  %v5455_v15 = vsel %vm11711_vm2, %v5309_v7, %v5454_v10  ;;  %v9081_v1 = vpack.c.bf16 %v5192_v40, %v5192_v40  ;;  %v5330_v22 = vshll.u32 %v9079_v3, 16  ;;  %v9543_v54 = vpop.f32.mrf.mxu1 }
 0x2df   :  { %5456 = vst [vmem:[#allocation2 + $0x34] sm:$0x1] %v5455_v15  ;;  %5453 = vst [vmem:[#allocation2 + $0x30] sm:$0xf] %v5452_v48  ;;  %v5329_v30 = vrot.slane %v5327_v32, 7  ;;  %v5177_v34 = vadd.f32 %v12880_v4, %v5154_v18  ;;  %v9080_v49 = vpack.c.bf16 %v5191_v46, %v5191_v46  ;;  %v5129_v58 = vadd.f32 %v9541_v31, %v5128_v27 }
 0x2e0   :  { %v9544_v55 = vadd.f32 %v9543_v54, %v9542_v25  ;;  %v8766_v26 = vcombine.low %v13007_v0, %v12986_v23  ;;  %v5343_v42 = vshrl.u32 %v9081_v1, 16  ;;  %v5346_v60 = vshll.u32 %v9081_v1, 16  ;;  %v9545_v28 = vpop.f32.mrf.mxu1  ;;  %v5484_v32 = vld [vmem:[#allocation2 + $0x6c] sm:$0x1]  ;;  %v5475_v31 = vld [vmem:[#allocation2 + $0x60] sm:$0xf] }
 0x2e1   :  { %v5332_v39 = vor.u32 %v5330_v22, %v5329_v30  ;;  %v5333_v13 = vrot.slane %v5329_v30, 4  ;;  %v5193_v36 = vmax.f32 %v5177_v34, 0.0  ;;  %v5335_v52 = vshrl.u32 %v9080_v49, 16  ;;  %v5478_v1 = vld [vmem:[#allocation2 + $0x64] sm:$0x1] }
 0x2e2   :  { %v5338_v19 = vshll.u32 %v9080_v49, 16  ;;  %v5155_v44 = vadd.f32 %v5129_v58, %v12920_v14  ;;  %v5345_v59 = vrot.slane %v5343_v42, 7  ;;  %v5132_v23 = vadd.f32 %v9544_v55, %v5131_v35  ;;  %v9546_v37 = vpop.f32.mrf.mxu1  ;;  %v5481_v14 = vld [vmem:[#allocation2 + $0x68] sm:$0xf] }
 0x2e3   :  { %v5470_v27 = vsel %vm12073_vm6, %v5332_v39, %v5469_v11  ;;  %v5473_v3 = vsel %vm11711_vm2, %v5333_v13, %v5472_v50  ;;  %v9082_v5 = vpack.c.bf16 %v5193_v36, %v5193_v36  ;;  %v5337_v47 = vrot.slane %v5335_v52, 7  ;;  %v5487_v39 = vld [vmem:[#allocation2 + $0x70] sm:$0xf]  ;;  %v5490_v13 = vld [vmem:[#allocation2 + $0x74] sm:$0x1] }
 0x2e4   :  { %5471 = vst [vmem:[#allocation2 + $0x58] sm:$0xf] %v5470_v27  ;;  %5474 = vst [vmem:[#allocation2 + $0x5c] sm:$0x1] %v5473_v3  ;;  %v5178_v16 = vadd.f32 %v12880_v4, %v5155_v44  ;;  %v9547_v62 = vadd.f32 %v9546_v37, %v9545_v28  ;;  %v5348_v45 = vor.u32 %v5346_v60, %v5345_v59  ;;  %v5349_v7 = vrot.slane %v5345_v59, 4  ;;  %v9548_v10 = vpop.f32.mrf.mxu1 }
 0x2e5   :  { %v5156_v43 = vadd.f32 %v5132_v23, %v12955_v21  ;;  %v8767_v40 = vcombine.low %v5934_v8, %v12992_v2  ;;  %v5351_v18 = vshrl.u32 %v9082_v5, 16  ;;  %v5354_v25 = vshll.u32 %v9082_v5, 16  ;;  %v5920_v44 = vld [vmem:[#allocation2 + $0x24] sm:$0x1]  ;;  %v5936_v8 = vld [vmem:[#allocation2 + $0x20] sm:$0xe] }
 0x2e6   :  { %v5340_v0 = vor.u32 %v5338_v19, %v5337_v47  ;;  %v5341_v48 = vrot.slane %v5337_v47, 4  ;;  %v5482_v15 = vsel %vm12073_vm6, %v5348_v45, %v5481_v14  ;;  %v5485_v46 = vsel %vm11711_vm2, %v5349_v7, %v5484_v32  ;;  %v9549_v21 = vpop.f32.mrf.mxu1  ;;  %v5493_v14 = vld [vmem:[#allocation2 + $0x78] sm:$0xf] }
 0x2e7   :  { %v5194_v30 = vmax.f32 %v5178_v16, 0.0  ;;  %v5179_v22 = vadd.f32 %v12880_v4, %v5156_v43  ;;  %5486 = vst [vmem:[#allocation2 + $0x6c] sm:$0x1] %v5485_v46  ;;  %5483 = vst [vmem:[#allocation2 + $0x68] sm:$0xf] %v5482_v15  ;;  %v5353_v2 = vrot.slane %v5351_v18, 7  ;;  %v5137_v11 = vadd.f32 %v12968_v24, %v9547_v62 }
 0x2e8   :  { %v5476_v34 = vsel %vm12073_vm6, %v5340_v0, %v5475_v31  ;;  %v5479_v54 = vsel %vm11711_vm2, %v5341_v48, %v5478_v1  ;;  %v9550_v55 = vadd.f32 %v9549_v21, %v9548_v10  ;;  %v6190_v35 = vrot.slane %v8767_v40, 1  ;;  %v5496_v40 = vld [vmem:[#allocation2 + $0x7c] sm:$0x1]  ;;  %v5499_v48 = vld [vmem:[#allocation2 + $0x80] sm:$0xf] }
 0x2e9   :  { %5480 = vst [vmem:[#allocation2 + $0x64] sm:$0x1] %v5479_v54  ;;  %5477 = vst [vmem:[#allocation2 + $0x60] sm:$0xf] %v5476_v34  ;;  %v9083_v49 = vpack.c.bf16 %v5194_v30, %v5194_v30  ;;  %v5195_v58 = vmax.f32 %v5179_v22, 0.0  ;;  %v5356_v42 = vor.u32 %v5354_v25, %v5353_v2  ;;  %v5357_v60 = vrot.slane %v5353_v2, 4 }
 0x2ea   :  { %v5157_v50 = vadd.f32 %v5137_v11, %v12865_v38  ;;  %v6189_v28 = vrot.slane %v8766_v26, 1  ;;  %v5140_v19 = vadd.f32 %v13004_v9, %v9550_v55  ;;  %v8830_v24 = vcombine.low %v12983_v41, %v12990_v17  ;;  %v13058_v15 = vld [vmem:[#allocation2 + $0x20] sm:$0xf]  ;;  %v5502_v46 = vld [vmem:[#allocation2 + $0x84] sm:$0x1]  ;;  %v10525_v22 = vld [vmem:[%s13737_s3 + $0x70] sm:$0xff]  }
 0x2eb   :  { %v5359_v36 = vshrl.u32 %v9083_v49, 16  ;;  %v9084_v52 = vpack.c.bf16 %v5195_v58, %v5195_v58  ;;  %v5488_v59 = vsel %vm12073_vm6, %v5356_v42, %v5487_v39  ;;  %v5491_v27 = vsel %vm11711_vm2, %v5357_v60, %v5490_v13  ;;  %v13072_v11 = vld [vmem:[#allocation2 + $0x28] sm:$0xf]  ;;  %v10526_v39 = vld [vmem:[%s13737_s3 + $0x30] sm:$0xff]   ;;  %v10538_v17 = vld [vmem:[%s13737_s3 + $0x20] sm:$0xff]  }
 0x2ec   :  { %v5180_v3 = vadd.f32 %v12880_v4, %v5157_v50  ;;  %v8832_v23 = vcombine.low %v6189_v28, %v6190_v35  ;;  %5492 = vst [vmem:[#allocation2 + $0x74] sm:$0x1] %v5491_v27  ;;  %5489 = vst [vmem:[#allocation2 + $0x70] sm:$0xf] %v5488_v59  ;;  %v5362_v26 = vshll.u32 %v9083_v49, 16  ;;  %v5158_v9 = vadd.f32 %v5140_v19, %v12886_v33 }
 0x2ed   :  { %v5361_v38 = vrot.slane %v5359_v36, 7  ;;  %v5367_v37 = vshrl.u32 %v9084_v52, 16  ;;  %v5370_v5 = vshll.u32 %v9084_v52, 16  ;;  %v8769_v16 = vcombine.low %v5936_v8, %v5920_v44  ;;  %v13074_v49 = vld [vmem:[#allocation2 + $0x2c] sm:$0x1] }
 0x2ee   :  { %v5196_v47 = vmax.f32 %v5180_v3, 0.0  ;;  %10015 = vmatprep.mubr.bf16.mxu1 %v8832_v23  ;;  %v6191_v62 = vrot.slane %v8768_v20, 1  ;;  %v5181_v10 = vadd.f32 %v12880_v4, %v5158_v9  ;;  %v6030_v25 = vshrl.u32 %v12998_v12, 16  ;;  %v10522_v4 = vld [vmem:[%s13737_s3 + $0x38] sm:$0xff]   ;;  %v5937_v60 = vld [vmem:[#allocation2 + $0x28] sm:$0xe] }
 0x2ef   :  { %v5364_v45 = vor.u32 %v5362_v26, %v5361_v38  ;;  %v5365_v7 = vrot.slane %v5361_v38, 4  ;;  %v5369_v43 = vrot.slane %v5367_v37, 7  ;;  %v6192_v18 = vrot.slane %v8769_v16, 1  ;;  %v5505_v13 = vld [vmem:[#allocation2 + $0x88] sm:$0xf] }
 0x2f0   :  { %v9085_v32 = vpack.c.bf16 %v5196_v47, %v5196_v47  ;;  %v6032_v33 = vshll.u32 %v12998_v12, 16  ;;  %v5197_v12 = vmax.f32 %v5181_v10, 0.0  ;;  %v6037_v30 = vshrl.u32 %v13011_v57, 16  ;;  %v5508_v50 = vld [vmem:[#allocation2 + $0x8c] sm:$0x1] }
 0x2f1   :  { %v5494_v0 = vsel %vm12073_vm6, %v5364_v45, %v5493_v14  ;;  %v5497_v63 = vsel %vm11711_vm2, %v5365_v7, %v5496_v40  ;;  %v5372_v56 = vor.u32 %v5370_v5, %v5369_v43  ;;  %v5373_v20 = vrot.slane %v5369_v43, 4  ;;  %v13082_v19 = vld [vmem:[#allocation2 + $0x3c] sm:$0x1]  ;;  %v5939_v8 = vld [vmem:[#allocation2 + $0x38] sm:$0xe] }
 0x2f2   :  { %5498 = vst [vmem:[#allocation2 + $0x7c] sm:$0x1] %v5497_v63  ;;  %5495 = vst [vmem:[#allocation2 + $0x78] sm:$0xf] %v5494_v0  ;;  %v5375_v31 = vshrl.u32 %v9085_v32, 16  ;;  %v8835_v1 = vcombine.low %v6191_v62, %v6192_v18  ;;  %v6034_v34 = vrot.slane %v6032_v33, 1  ;;  %v9086_v35 = vpack.c.bf16 %v5197_v12, %v5197_v12 }
 0x2f3   :  { %v5500_v21 = vsel %vm12073_vm6, %v5372_v56, %v5499_v48  ;;  %v5503_v2 = vsel %vm11711_vm2, %v5373_v20, %v5502_v46  ;;  %v6039_v54 = vshll.u32 %v13011_v57, 16  ;;  %v5378_v55 = vshll.u32 %v9085_v32, 16  ;;  %v13087_v23 = vld [vmem:[#allocation2 + $0x30] sm:$0xf]  ;;  %v5922_v38 = vld [vmem:[#allocation2 + $0x34] sm:$0x1] }
 0x2f4   :  { %5504 = vst [vmem:[#allocation2 + $0x84] sm:$0x1] %v5503_v2  ;;  %5501 = vst [vmem:[#allocation2 + $0x80] sm:$0xf] %v5500_v21  ;;  %v5377_v58 = vrot.slane %v5375_v31, 7  ;;  %10016 = vmatmul.mubr.bf16.vlgmr.msra.gmra.mxu1 %v8835_v1  ;;  %v8753_v42 = vcombine.low %v13058_v15, %v5920_v44  ;;  %v6035_v57 = vor.u32 %v6034_v34, %v6030_v25  ;;  %v6044_v36 = vshrl.u32 %v12973_v6, 16 }
 0x2f5   :  { %v6041_v28 = vrot.slane %v6039_v54, 1  ;;  %v6046_v52 = vshll.u32 %v12973_v6, 16  ;;  %9648 = vmatpush3.bf16.msra.mxu1 %v10522_v4  ;;  %v10529_v44 = vld [vmem:[%s13737_s3 + $0x68] sm:$0xff]   ;;  %v5383_v3 = vshrl.u32 %v9086_v35, 16  ;;  %v13091_v26 = vcombine.low %v13072_v11, %v13074_v49  ;;  %v5938_v47 = vld [vmem:[#allocation2 + $0x30] sm:$0xe] }
 0x2f6   :  { %v5380_v59 = vor.u32 %v5378_v55, %v5377_v58  ;;  %v5381_v27 = vrot.slane %v5377_v58, 4  ;;  %9649 = vmatprep.subr.bf16.mxu1 %v10525_v22  ;;  %v5386_v6 = vshll.u32 %v9086_v35, 16  ;;  %v6053_v5 = vshll.u32 %v8753_v42, 16  ;;  %v13097_v14 = vld [vmem:[#allocation2 + $0x44] sm:$0x1]  ;;  %v10528_v0 = vld [vmem:[%s13737_s3 + $0xb0] sm:$0xff]  }
 0x2f7   :  { %v6042_v37 = vor.u32 %v6041_v28, %v6037_v30  ;;  %v6048_v9 = vrot.slane %v6046_v52, 1  ;;  %v5385_v45 = vrot.slane %v5383_v3, 7  ;;  %v6051_v7 = vshrl.u32 %v8753_v42, 16  ;;  %v5940_v43 = vld [vmem:[#allocation2 + $0x40] sm:$0xe]  ;;  %v10534_v63 = vld [vmem:[%s13737_s3 + $0x28] sm:$0xff]  }
 0x2f8   :  { %v5506_v16 = vsel %vm12073_vm6, %v5380_v59, %v5505_v13  ;;  %v5509_v62 = vsel %vm11711_vm2, %v5381_v27, %v5508_v50  ;;  %v5511_v10 = vld [vmem:[#allocation2 + $0x90] sm:$0xf]  ;;  %v5514_v40 = vld [vmem:[#allocation2 + $0x94] sm:$0x1]  ;;  %v6055_v18 = vrot.slane %v6053_v5, 1  ;;  %v13100_v25 = vcombine.low %v13087_v23, %v5922_v38  ;;  %v10537_v12 = vld [vmem:[%s13737_s3 + $0x60] sm:$0xff]  }
 0x2f9   :  { %5510 = vst [vmem:[#allocation2 + $0x8c] sm:$0x1] %v5509_v62  ;;  %5507 = vst [vmem:[#allocation2 + $0x88] sm:$0xf] %v5506_v16  ;;  %v8831_v32 = vcombine.low %v6035_v57, %v6042_v37  ;;  %v8770_v33 = vcombine.low %v5937_v60, %v13074_v49  ;;  %9650 = vmatpush3.bf16.msra.mxu1 %v10526_v39  ;;  %v5388_v56 = vor.u32 %v5386_v6, %v5385_v45  ;;  %v13110_v46 = vld [vmem:[#allocation2 + $0x5c] sm:$0x1] }
 0x2fa   :  { %v5389_v20 = vrot.slane %v5385_v45, 4  ;;  %v8771_v48 = vcombine.low %v5938_v47, %v5922_v38  ;;  %v8772_v4 = vcombine.low %v5939_v8, %v13082_v19  ;;  %9651 = vmatprep.subr.bf16.mxu1 %v10529_v44  ;;  %v5941_v31 = vld [vmem:[#allocation2 + $0x58] sm:$0xe]  ;;  %v6049_v1 = vor.u32 %v6048_v9, %v6044_v36  ;;  %v13116_v21 = vld [vmem:[#allocation2 + $0x64] sm:$0x1]  ;;  %v10540_v28 = vld [vmem:[%s13737_s3 + $0xa8] sm:$0xff]  }
 0x2fb   :  { %6510 = vmatprep.mubr.bf16.mxu0 %v8831_v32  ;;  %v6056_v30 = vor.u32 %v6055_v18, %v6051_v7  ;;  %v8773_v22 = vcombine.low %v5940_v43, %v13097_v14  ;;  %v13118_v2 = vld [vmem:[#allocation2 + $0x6c] sm:$0x1]  ;;  %v13120_v34 = vld [vmem:[#allocation2 + $0x68] sm:$0xe]  ;;  %v5512_v54 = vsel %vm12073_vm6, %v5388_v56, %v5511_v10  ;;  %v6193_v58 = vrot.slane %v8770_v33, 1  ;;  %v10543_v3 = vld [vmem:[%s13737_s3 + $0x58] sm:$0xff]  }
 0x2fc   :  { %v5515_v49 = vsel %vm11711_vm2, %v5389_v20, %v5514_v40  ;;  %6511 = vmatmul.mubr.bf16.vlgmr.msra.gmra.mxu0 %v8830_v24  ;;  %v6194_v55 = vrot.slane %v8771_v48, 1  ;;  %v5942_v35 = vld [vmem:[#allocation2 + $0x60] sm:$0xe]  ;;  %v13129_v42 = vld [vmem:[#allocation2 + $0x74] sm:$0x1]  ;;  %v6195_v39 = vrot.slane %v8772_v4, 1  ;;  %v8774_v27 = vcombine.low %v5941_v31, %v13110_v46 }
 0x2fd   :  { %5513 = vst [vmem:[#allocation2 + $0x90] sm:$0xf] %v5512_v54  ;;  %5516 = vst [vmem:[#allocation2 + $0x94] sm:$0x1] %v5515_v49  ;;  %v8834_v60 = vcombine.low %v6049_v1, %v6056_v30  ;;  %10032 = vmatpush3.bf16.msra.mxu0 %v10678_v29  ;;  %v6196_v53 = vrot.slane %v8773_v22, 1  ;;  %v6060_v13 = vshll.u32 %v13091_v26, 16  ;;  %9652 = vmatpush3.bf16.msra.mxu1 %v10534_v63 }
 0x2fe   :  { %v5944_v41 = vld [vmem:[#allocation2 + $0x70] sm:$0xe]  ;;  %v8838_v24 = vcombine.low %v6193_v58, %v6194_v55  ;;  %10033 = vmatprep.subr.bf16.mxu0 %v10528_v0  ;;  %v6058_v50 = vshrl.u32 %v13091_v26, 16  ;;  %v6067_v57 = vshll.u32 %v13100_v25, 16  ;;  %9653 = vmatprep.subr.bf16.mxu1 %v10537_v12  ;;  %v13143_v36 = vld [vmem:[#allocation2 + $0x38] sm:$0xf]  ;;  %v8775_v6 = vcombine.low %v5942_v35, %v13116_v21 }
 0x2ff   :  { %v5648_v52 = vshll.u32 %v12890_v51, 16  ;;  %6518 = vmatprep.mubr.bf16.mxu0 %v8834_v60  ;;  %v8841_v8 = vcombine.low %v6195_v39, %v6196_v53  ;;  %v6062_v44 = vrot.slane %v6060_v13, 1  ;;  %v6065_v59 = vshrl.u32 %v13100_v25, 16  ;;  %v13151_v26 = vld [vmem:[#allocation2 + $0x58] sm:$0xf] }
 0x300   :  { %10019 = vmatprep.mubr.bf16.mxu1 %v8838_v24  ;;  %v6069_v38 = vrot.slane %v6067_v57, 1  ;;  %v8776_v37 = vcombine.low %v13120_v34, %v13118_v2  ;;  %v8777_v9 = vcombine.low %v5944_v41, %v13129_v42  ;;  %v13157_v5 = vld [vmem:[#allocation2 + $0x40] sm:$0xf]  ;;  %v8833_v47 = vcombine.low %v12965_v61, %v13058_v15  ;;  %v13165_v7 = vld [vmem:[#allocation2 + $0x7c] sm:$0x1]  ;;  %v10550_v41 = vld [vmem:[%s13737_s3 + $0x10] sm:$0xff]  }
 0x301   :  { %10020 = vmatmul.mubr.bf16.gmra.mxu1 %v8841_v8  ;;  %v6063_v16 = vor.u32 %v6062_v44, %v6058_v50  ;;  %10034 = vmatpush3.bf16.msra.mxu0 %v10528_v0  ;;  %v13161_v62 = vld [vmem:[#allocation2 + $0x60] sm:$0xf]  ;;  %v8756_v45 = vcombine.low %v13143_v36, %v13082_v19  ;;  %v10548_v43 = vld [vmem:[%s13737_s3 + $0x18] sm:$0xff]   ;;  %v5646_v10 = vshrl.u32 %v12890_v51, 16  ;;  %v6197_v32 = vrot.slane %v8774_v27, 1 }
 0x302   :  { %v6070_v40 = vor.u32 %v6069_v38, %v6065_v59  ;;  %v6198_v18 = vrot.slane %v8775_v6, 1  ;;  %v6200_v25 = vrot.slane %v8777_v9, 1  ;;  %9654 = vmatpush3.bf16.msra.mxu1 %v10538_v17  ;;  %10035 = vmatprep.subr.bf16.mxu0 %v10540_v28  ;;  %v5945_v61 = vld [vmem:[#allocation2 + $0x78] sm:$0xe]  ;;  %v10552_v15 = vld [vmem:[%s13737_s3 + $0xa0] sm:$0xff]   ;;  %v13176_v19 = vcombine.low %v13151_v26, %v13110_v46  ;;  %v10549_v46 = vld [vmem:[%s13737_s3 + $0x50] sm:$0xff]  }
 0x303   :  { %v8757_v33 = vcombine.low %v13157_v5, %v13097_v14  ;;  %v6074_v0 = vshll.u32 %v8756_v45, 16  ;;  %9655 = vmatprep.subr.bf16.mxu1 %v10543_v3  ;;  %v13180_v63 = vld [vmem:[#allocation2 + $0x84] sm:$0x1]  ;;  %v5946_v56 = vld [vmem:[#allocation2 + $0x80] sm:$0xe]  ;;  %v5650_v20 = vrot.slane %v5648_v52, 1  ;;  %v13184_v4 = vcombine.low %v13161_v62, %v13116_v21 }
 0x304   :  { %6519 = vmatmul.mubr.bf16.gmra.mxu0 %v8833_v47  ;;  %v8837_v48 = vcombine.low %v6063_v16, %v6070_v40  ;;  %v8844_v31 = vcombine.low %v6197_v32, %v6198_v18  ;;  %v6199_v12 = vrot.slane %v8776_v37, 1  ;;  %v13189_v1 = vld [vmem:[#allocation2 + $0x8c] sm:$0x1]  ;;  %v13191_v14 = vld [vmem:[#allocation2 + $0x8] sm:$0xf]  ;;  %v6072_v30 = vshrl.u32 %v8756_v45, 16 }
 0x305   :  { %v6076_v22 = vrot.slane %v6074_v0, 1  ;;  %v6081_v34 = vshll.u32 %v8757_v33, 16  ;;  %10036 = vmatpush3.bf16.msra.mxu0 %v10540_v28  ;;  %v8778_v54 = vcombine.low %v5945_v61, %v13165_v7  ;;  %v5947_v49 = vld [vmem:[#allocation2 + $0x88] sm:$0xe]  ;;  %v10563_v21 = vld [vmem:[%s13737_s3 + $0x98] sm:$0xff]   ;;  %v8779_v55 = vcombine.low %v5946_v56, %v13180_v63  ;;  %v10560_v0 = vld [vmem:[%s13737_s3 + $0x40] sm:$0xff]  }
 0x306   :  { %6526 = vmatprep.mubr.bf16.mxu0 %v8837_v48  ;;  %10023 = vmatprep.mubr.bf16.mxu1 %v8844_v31  ;;  %v8847_v58 = vcombine.low %v6199_v12, %v6200_v25  ;;  %v13198_v35 = vld [vmem:[#allocation2 + $0x94] sm:$0x1]  ;;  %v5948_v60 = vld [vmem:[#allocation2 + $0x90] sm:$0xe]  ;;  %v13200_v29 = vld [vmem:[#allocation2 + $0xc] sm:$0x1]  ;;  %v8780_v28 = vcombine.low %v5947_v49, %v13189_v1  ;;  %v8836_v6 = vcombine.low %v13072_v11, %v13087_v23 }
 0x307   :  { %v6077_v39 = vor.u32 %v6076_v22, %v6072_v30  ;;  %v6079_v53 = vshrl.u32 %v8757_v33, 16  ;;  %v6083_v13 = vrot.slane %v6081_v34, 1  ;;  %9656 = vmatpush3.bf16.msra.mxu1 %v10548_v43  ;;  %10037 = vmatprep.subr.bf16.mxu0 %v10552_v15  ;;  %v6088_v17 = vshll.u32 %v13176_v19, 16  ;;  %v10555_v52 = vld [vmem:[%s13737_s3 + $0x48] sm:$0xff]   ;;  %v13214_v27 = vld [vmem:[#allocation2 + $0x10] sm:$0xf] }
 0x308   :  { %v6201_v24 = vrot.slane %v8778_v54, 1  ;;  %v6202_v50 = vrot.slane %v8779_v55, 1  ;;  %9657 = vmatprep.subr.bf16.mxu1 %v10549_v46  ;;  %v6095_v57 = vshll.u32 %v13184_v4, 16  ;;  %v8781_v44 = vcombine.low %v5948_v60, %v13198_v35  ;;  %v13216_v3 = vld [vmem:[#allocation2 + $0x18] sm:$0xf]  ;;  %v10556_v47 = vld [vmem:[%s13737_s3 + $0x8] sm:$0xff]  }
 0x309   :  { %10024 = vmatmul.mubr.bf16.gmra.mxu1 %v8847_v58  ;;  %v6084_v8 = vor.u32 %v6083_v13, %v6079_v53  ;;  %10038 = vmatpush3.bf16.msra.mxu0 %v10552_v15  ;;  %v8719_v59 = vcombine.low %v13191_v14, %v13200_v29  ;;  %v13218_v38 = vld [vmem:[#allocation2 + $0x1c] sm:$0x1]  ;;  %v13225_v16 = vld [vmem:[#allocation2 + $0x68] sm:$0xf]  ;;  %v13227_v45 = vld [vmem:[#allocation2 + $0x70] sm:$0xf]  ;;  %v5651_v15 = vor.u32 %v5650_v20, %v5646_v10 }
 0x30a   :  { %v8850_v37 = vcombine.low %v6201_v24, %v6202_v50  ;;  %v6097_v9 = vrot.slane %v6095_v57, 1  ;;  %10039 = vmatprep.subr.bf16.mxu0 %v10563_v21  ;;  %v6203_v40 = vrot.slane %v8780_v28, 1  ;;  %v6204_v32 = vrot.slane %v8781_v44, 1  ;;  %v13229_v25 = vld [vmem:[#allocation2 + $0x14] sm:$0x1]  ;;  %v10576_v54 = vld [vmem:[%s13737_s3 + $0x88] sm:$0xff]  }
 0x30b   :  { %v8840_v43 = vcombine.low %v6077_v39, %v6084_v8  ;;  %9658 = vmatpush3.bf16.msra.mxu1 %v10550_v41  ;;  %v5655_v18 = vshll.u32 %v8719_v59, 16  ;;  %v10571_v11 = vld [vmem:[%s13737_s3 + $0x90] sm:$0xff]   ;;  %v6090_v23 = vrot.slane %v6088_v17, 1  ;;  %v6093_v61 = vshrl.u32 %v13184_v4, 16  ;;  %v13246_v4 = vld [vmem:[#allocation2 + $0x80] sm:$0xf] }
 0x30c   :  { %6527 = vmatmul.mubr.bf16.gmra.mxu0 %v8836_v6  ;;  %10027 = vmatprep.mubr.bf16.mxu1 %v8850_v37  ;;  %v5653_v33 = vshrl.u32 %v8719_v59, 16  ;;  %v8853_v56 = vcombine.low %v6203_v40, %v6204_v32  ;;  %v13242_v31 = vcombine.low %v13225_v16, %v13118_v2  ;;  %v8761_v12 = vcombine.low %v13227_v45, %v13129_v42  ;;  %v10561_v2 = vld [vmem:[%s13737_s3] sm:$0xff]   ;;  %v13260_v49 = vld [vmem:[#allocation2 + $0x78] sm:$0xf]  ;;  %v13280_v8 = vld [vmem:[#allocation2 + $0x2c] sm:$0x1] }
 0x30d   :  { %6534 = vmatprep.mubr.bf16.mxu0 %v8840_v43  ;;  %9659 = vmatprep.subr.bf16.mxu1 %v10555_v52  ;;  %v5657_v48 = vrot.slane %v5655_v18, 1  ;;  %v8720_v51 = vcombine.low %v13214_v27, %v13229_v25  ;;  %v8721_v10 = vcombine.low %v13216_v3, %v13218_v38  ;;  %v6086_v20 = vshrl.u32 %v13176_v19, 16  ;;  %v13266_v60 = vld [vmem:[#allocation2 + $0x20] sm:$0xf]  ;;  %v13273_v24 = vld [vmem:[#allocation2 + $0x24] sm:$0x1] }
 0x30e   :  { %10040 = vmatpush3.bf16.msra.mxu0 %v10563_v21  ;;  %v6098_v46 = vor.u32 %v6097_v9, %v6093_v61  ;;  %v6102_v42 = vshll.u32 %v13242_v31, 16  ;;  %v6109_v22 = vshll.u32 %v8761_v12, 16  ;;  %v13264_v19 = vcombine.low %v13246_v4, %v13180_v63  ;;  %v10583_v39 = vld [vmem:[%s13737_s3 + $0x80] sm:$0xff]   ;;  %v10594_v63 = vld [vmem:[%s13737_s3 + $0x238] sm:$0xff]   ;;  %v13278_v52 = vld [vmem:[#allocation2 + $0x28] sm:$0xf] }
 0x30f   :  { %9660 = vmatpush3.bf16.msra.mxu1 %v10556_v47  ;;  %v5658_v30 = vor.u32 %v5657_v48, %v5653_v33  ;;  %10041 = vmatprep.subr.bf16.mxu0 %v10571_v11  ;;  %v5662_v34 = vshll.u32 %v8720_v51, 16  ;;  %v6091_v21 = vor.u32 %v6090_v23, %v6086_v20  ;;  %v5669_v55 = vshll.u32 %v8721_v10, 16  ;;  %v10599_v32 = vld [vmem:[%s13737_s3 + $0x230] sm:$0xff]   ;;  %v10679_v18 = vld [vmem:[#allocation2] sm:$0xf] }
 0x310   :  { %9661 = vmatprep.subr.bf16.mxu1 %v10560_v0  ;;  %v8839_v53 = vcombine.low %v13143_v36, %v13157_v5  ;;  %v6111_v13 = vrot.slane %v6109_v22, 1  ;;  %v5660_v41 = vshrl.u32 %v8720_v51, 16  ;;  %v6107_v57 = vshrl.u32 %v8761_v12, 16  ;;  %v13299_v23 = vld [vmem:[#allocation2 + $0x90] sm:$0xf] }
 0x311   :  { %10028 = vmatmul.mubr.bf16.gmra.mxu1 %v8853_v56  ;;  %v8879_v58 = vcombine.low %v5651_v15, %v5658_v30  ;;  %v5664_v17 = vrot.slane %v5662_v34, 1  ;;  %v8843_v50 = vcombine.low %v6091_v21, %v6098_v46  ;;  %v5671_v28 = vrot.slane %v5669_v55, 1  ;;  %v13301_v61 = vld [vmem:[#allocation2 + $0x38] sm:$0xf]  ;;  %v13303_v15 = vld [vmem:[#allocation2 + $0x3c] sm:$0x1] }
 0x312   :  { %10042 = vmatpush3.bf16.msra.mxu0 %v10571_v11  ;;  %v13284_v36 = vcombine.low %v13260_v49, %v13165_v7  ;;  %v6104_v5 = vrot.slane %v6102_v42, 1  ;;  %v5667_v59 = vshrl.u32 %v8721_v10, 16  ;;  %v6100_v6 = vshrl.u32 %v13242_v31, 16  ;;  %v10589_v7 = vld [vmem:[%s13737_s3 + $0x1f8] sm:$0xff]   ;;  %v13306_v31 = vld [vmem:[#allocation2 + $0x30] sm:$0xf] }
 0x313   :  { %6896 = vmatprep.mubr.bf16.mxu1 %v8879_v58  ;;  %9662 = vmatpush3.bf16.msra.mxu1 %v10561_v2  ;;  %v5665_v44 = vor.u32 %v5664_v17, %v5660_v41  ;;  %v6112_v37 = vor.u32 %v6111_v13, %v6107_v57  ;;  %v6123_v47 = vshll.u32 %v13264_v19, 16  ;;  %v8722_v43 = vcombine.low %v13266_v60, %v13273_v24  ;;  %v13308_v12 = vld [vmem:[#allocation2 + $0x34] sm:$0x1]  ;;  %v13312_v30 = vld [vmem:[#allocation2 + $0x88] sm:$0xf] }
 0x314   :  { %6535 = vmatmul.mubr.bf16.gmra.mxu0 %v8839_v53  ;;  %10043 = vmatprep.subr.bf16.mxu0 %v10576_v54  ;;  %v5672_v9 = vor.u32 %v5671_v28, %v5667_v59  ;;  %v8723_v40 = vcombine.low %v13278_v52, %v13280_v8  ;;  %v8878_v11 = vcombine.low %v10679_v18, %v13191_v14  ;;  %v6116_v56 = vshll.u32 %v13284_v36, 16  ;;  %v13322_v58 = vld [vmem:[#allocation2 + $0x54] sm:$0x1]  ;;  %v13330_v41 = vld [vmem:[#allocation2 + $0x58] sm:$0xf] }
 0x315   :  { %6542 = vmatprep.mubr.bf16.mxu0 %v8843_v50  ;;  %10063 = vmatprep.subr.bf16.mxu1 %v10594_v63  ;;  %v6105_v33 = vor.u32 %v6104_v5, %v6100_v6  ;;  %v5676_v48 = vshll.u32 %v8722_v43, 16  ;;  %v8842_v51 = vcombine.low %v13151_v26, %v13161_v62  ;;  %v6125_v20 = vrot.slane %v6123_v47, 1  ;;  %v13320_v62 = vld [vmem:[#allocation2 + $0x50] sm:$0xf]  ;;  %v13332_v17 = vld [vmem:[#allocation2 + $0x5c] sm:$0x1] }
 0x316   :  { %10044 = vmatpush3.bf16.msra.mxu0 %v10576_v54  ;;  %v8882_v0 = vcombine.low %v5665_v44, %v5672_v9  ;;  %v5683_v14 = vshll.u32 %v8723_v40, 16  ;;  %v8765_v2 = vcombine.low %v13299_v23, %v13198_v35  ;;  %v5681_v42 = vshrl.u32 %v8723_v40, 16  ;;  %v10607_v35 = vld [vmem:[%s13737_s3 + $0x228] sm:$0xff]  }
 0x317   :  { %10045 = vmatprep.subr.bf16.mxu0 %v10583_v39  ;;  %v8846_v10 = vcombine.low %v6105_v33, %v6112_v37  ;;  %v5678_v46 = vrot.slane %v5676_v48, 1  ;;  %v8724_v34 = vcombine.low %v13306_v31, %v13308_v12  ;;  %v8725_v26 = vcombine.low %v13301_v61, %v13303_v15  ;;  %v10612_v37 = vld [vmem:[%s13737_s3 + $0x220] sm:$0xff]   ;;  %v10620_v33 = vld [vmem:[%s13737_s3 + $0x218] sm:$0xff]  }
 0x318   :  { %v5685_v22 = vrot.slane %v5683_v14, 1  ;;  %v6118_v54 = vrot.slane %v6116_v56, 1  ;;  %v5674_v21 = vshrl.u32 %v8722_v43, 16  ;;  %v6121_v55 = vshrl.u32 %v13264_v19, 16 }
 0x319   :  { %6897 = vmatmul.mubr.bf16.vlgmr.msra.gmra.mxu1 %v8878_v11  ;;  %v8764_v53 = vcombine.low %v13312_v30, %v13189_v1  ;;  %v5690_v13 = vshll.u32 %v8724_v34, 16  ;;  %v5697_v50 = vshll.u32 %v8725_v26, 16  ;;  %v6114_v57 = vshrl.u32 %v13284_v36, 16 }
 0x31a   :  { %6904 = vmatprep.mubr.bf16.mxu1 %v8882_v0  ;;  %10046 = vmatpush3.bf16.msra.mxu0 %v10583_v39  ;;  %v5686_v39 = vor.u32 %v5685_v22, %v5681_v42  ;;  %v6126_v28 = vor.u32 %v6125_v20, %v6121_v55  ;;  %v8881_v5 = vcombine.low %v13214_v27, %v13216_v3  ;;  %v6137_v44 = vshll.u32 %v8765_v2, 16  ;;  %v13355_v42 = vld [vmem:[#allocation2 + $0x68] sm:$0xf]  ;;  %v13357_v22 = vld [vmem:[#allocation2 + $0x6c] sm:$0x1] }
 0x31b   :  { %9727 = vmatprep.subr.bf16.mxu0 %v10589_v7  ;;  %10064 = vmatpush3.bf16.msra.mxu1 %v10594_v63  ;;  %v5679_v63 = vor.u32 %v5678_v46, %v5674_v21  ;;  %v5692_v59 = vrot.slane %v5690_v13, 1  ;;  %v8726_v1 = vcombine.low %v13320_v62, %v13322_v58  ;;  %v8727_v6 = vcombine.low %v13330_v41, %v13332_v17  ;;  %v10680_v13 = vld [vmem:[#allocation2 + $0x4] sm:$0x1] }
 0x31c   :  { %6543 = vmatmul.mubr.bf16.gmra.mxu0 %v8842_v51  ;;  %10065 = vmatprep.subr.bf16.mxu1 %v10599_v32  ;;  %v6119_v36 = vor.u32 %v6118_v54, %v6114_v57  ;;  %v6130_v9 = vshll.u32 %v8764_v53, 16  ;;  %v8845_v27 = vcombine.low %v13225_v16, %v13227_v45  ;;  %v5688_v3 = vshrl.u32 %v8724_v34, 16  ;;  %v13349_v16 = vld [vmem:[#allocation2 + $0x60] sm:$0xf]  ;;  %v13351_v45 = vld [vmem:[#allocation2 + $0x64] sm:$0x1] }
 0x31d   :  { %6550 = vmatprep.mubr.bf16.mxu0 %v8846_v10  ;;  %v8885_v19 = vcombine.low %v5679_v63, %v5686_v39  ;;  %v5699_v47 = vrot.slane %v5697_v50, 1  ;;  %v6139_v40 = vrot.slane %v6137_v44, 1  ;;  %v5704_v18 = vshll.u32 %v8726_v1, 16  ;;  %v5549_v51 = vld [vmem:[#allocation2] sm:$0xe] }
 0x31e   :  { %v8849_v43 = vcombine.low %v6119_v36, %v6126_v28  ;;  %v5693_v7 = vor.u32 %v5692_v59, %v5688_v3  ;;  %v5711_v11 = vshll.u32 %v8727_v6, 16  ;;  %v6132_v0 = vrot.slane %v6130_v9, 1  ;;  %v13374_v44 = vld [vmem:[#allocation2 + $0x7c] sm:$0x1]  ;;  %v13380_v36 = vld [vmem:[#allocation2 + $0x74] sm:$0x1] }
 0x31f   :  { %10066 = vmatpush3.bf16.msra.mxu1 %v10599_v32  ;;  %v5695_v32 = vshrl.u32 %v8725_v26, 16  ;;  %v6135_v56 = vshrl.u32 %v8765_v2, 16  ;;  %v6128_v14 = vshrl.u32 %v8764_v53, 16  ;;  %v8884_v20 = vcombine.low %v13266_v60, %v13278_v52  ;;  %v5550_v26 = vld [vmem:[#allocation2 + $0x8] sm:$0xe] }
 0x320   :  { %10067 = vmatprep.subr.bf16.mxu1 %v10607_v35  ;;  %v5702_v46 = vshrl.u32 %v8726_v1, 16  ;;  %v5706_v2 = vrot.slane %v5704_v18, 1  ;;  %v5713_v54 = vrot.slane %v5711_v11, 1  ;;  %v8728_v21 = vcombine.low %v13349_v16, %v13351_v45  ;;  %v5552_v9 = vld [vmem:[#allocation2 + $0x18] sm:$0xe] }
 0x321   :  { %6905 = vmatmul.mubr.bf16.gmra.mxu1 %v8881_v5  ;;  %v5700_v48 = vor.u32 %v5699_v47, %v5695_v32  ;;  %v6140_v10 = vor.u32 %v6139_v40, %v6135_v56  ;;  %v6133_v55 = vor.u32 %v6132_v0, %v6128_v14  ;;  %v8848_v60 = vcombine.low %v13260_v49, %v13246_v4  ;;  %v10634_v4 = vld [vmem:[%s13737_s3 + $0x208] sm:$0xff]   ;;  %v13372_v49 = vld [vmem:[#allocation2 + $0x78] sm:$0xf]  ;;  %v10639_v40 = vld [vmem:[%s13737_s3 + $0x200] sm:$0xff]  }
 0x322   :  { %6912 = vmatprep.mubr.bf16.mxu1 %v8885_v19  ;;  %v5709_v52 = vshrl.u32 %v8727_v6, 16  ;;  %v8729_v39 = vcombine.low %v13355_v42, %v13357_v22  ;;  %v8734_v63 = vcombine.low %v5549_v51, %v10680_v13  ;;  %v8735_v50 = vcombine.low %v5550_v26, %v13200_v29  ;;  %v5551_v19 = vld [vmem:[#allocation2 + $0x10] sm:$0xe]  ;;  %v5554_v3 = vld [vmem:[#allocation2 + $0x28] sm:$0xe] }
 0x323   :  { %10068 = vmatpush3.bf16.msra.mxu1 %v10607_v35  ;;  %v8888_v34 = vcombine.low %v5693_v7, %v5700_v48  ;;  %v10625_v35 = vld [vmem:[%s13737_s3 + $0x210] sm:$0xff]   ;;  %v8852_v53 = vcombine.low %v6133_v55, %v6140_v10  ;;  %v5707_v57 = vor.u32 %v5706_v2, %v5702_v46  ;;  %v5718_v5 = vshll.u32 %v8728_v21, 16  ;;  %v13397_v10 = vld [vmem:[#allocation2 + $0x8c] sm:$0x1]  ;;  %v13401_v2 = vld [vmem:[#allocation2 + $0x80] sm:$0xf] }
 0x324   :  { %6551 = vmatmul.mubr.bf16.gmra.mxu0 %v8845_v27  ;;  %10069 = vmatprep.subr.bf16.mxu1 %v10612_v37  ;;  %v5714_v28 = vor.u32 %v5713_v54, %v5709_v52  ;;  %v5725_v59 = vshll.u32 %v8729_v39, 16  ;;  %v5805_v1 = vrot.slane %v8734_v63, 1  ;;  %v5806_v6 = vrot.slane %v8735_v50, 1  ;;  %v5555_v46 = vld [vmem:[#allocation2 + $0x30] sm:$0xe] }
 0x325   :  { %6558 = vmatprep.mubr.bf16.mxu0 %v8849_v43  ;;  %v8887_v29 = vcombine.low %v13306_v31, %v13301_v61  ;;  %v5720_v47 = vrot.slane %v5718_v5, 1  ;;  %v8731_v43 = vcombine.low %v13372_v49, %v13374_v44  ;;  %v8736_v7 = vcombine.low %v5551_v19, %v13229_v25  ;;  %v5553_v31 = vld [vmem:[#allocation2 + $0x20] sm:$0xe]  ;;  %v13403_v54 = vld [vmem:[#allocation2 + $0x84] sm:$0x1] }
 0x326   :  { %v8891_v27 = vcombine.low %v5707_v57, %v5714_v28  ;;  %v8851_v61 = vcombine.low %v13312_v30, %v13299_v23  ;;  %v5716_v32 = vshrl.u32 %v8728_v21, 16  ;;  %v5727_v18 = vrot.slane %v5725_v59, 1  ;;  %v13395_v30 = vld [vmem:[#allocation2 + $0x88] sm:$0xf] }
 0x327   :  { %10070 = vmatpush3.bf16.msra.mxu1 %v10612_v37  ;;  %v13378_v37 = vld [vmem:[#allocation2 + $0x70] sm:$0xf]  ;;  %v8880_v0 = vcombine.low %v5805_v1, %v5806_v6  ;;  %v8739_v56 = vcombine.low %v5554_v3, %v13280_v8  ;;  %v5723_v25 = vshrl.u32 %v8729_v39, 16  ;;  %v5739_v51 = vshll.u32 %v8731_v43, 16 }
 0x328   :  { %10071 = vmatprep.subr.bf16.mxu1 %v10620_v33  ;;  %v8730_v11 = vcombine.low %v13378_v37, %v13380_v36  ;;  %v5721_v48 = vor.u32 %v5720_v47, %v5716_v32  ;;  %v5807_v14 = vrot.slane %v8736_v7, 1  ;;  %v8738_v23 = vcombine.low %v5553_v31, %v13273_v24  ;;  %v5558_v24 = vld [vmem:[#allocation2 + $0x58] sm:$0xe] }
 0x329   :  { %6913 = vmatmul.mubr.bf16.gmra.mxu1 %v8884_v20  ;;  %v5728_v20 = vor.u32 %v5727_v18, %v5723_v25  ;;  %v5810_v26 = vrot.slane %v8739_v56, 1  ;;  %v8890_v8 = vcombine.low %v13320_v62, %v13330_v41  ;;  %v5741_v55 = vrot.slane %v5739_v51, 1  ;;  %v5556_v62 = vld [vmem:[#allocation2 + $0x38] sm:$0xe]  ;;  %v10597_v41 = vld [vmem:[%s13737_s3 + $0x1f0] sm:$0xff]  }
 0x32a   :  { %6920 = vmatprep.mubr.bf16.mxu1 %v8888_v34  ;;  %v5809_v39 = vrot.slane %v8738_v23, 1  ;;  %v8740_v13 = vcombine.low %v5555_v46, %v13308_v12  ;;  %v5737_v50 = vshrl.u32 %v8731_v43, 16  ;;  %v8732_v57 = vcombine.low %v13401_v2, %v13403_v54  ;;  %v10598_v12 = vld [vmem:[%s13737_s3 + $0x1b0] sm:$0xff]   ;;  %v5559_v43 = vld [vmem:[#allocation2 + $0x60] sm:$0xe] }
 0x32b   :  { %10072 = vmatpush3.bf16.msra.mxu1 %v10620_v33  ;;  %v8737_v33 = vcombine.low %v5552_v9, %v13218_v38  ;;  %v5732_v38 = vshll.u32 %v8730_v11, 16  ;;  %v8894_v21 = vcombine.low %v5721_v48, %v5728_v20  ;;  %v8741_v19 = vcombine.low %v5556_v62, %v13303_v15  ;;  %v10605_v15 = vld [vmem:[%s13737_s3 + $0x1a8] sm:$0xff]   ;;  %v5562_v31 = vld [vmem:[#allocation2 + $0x78] sm:$0xe]  ;;  %v7074_v18 = vld [vmem:[#allocation2 + $0x14] sm:$0x1] }
 0x32c   :  { %6559 = vmatmul.mubr.bf16.gmra.mxu0 %v8848_v60  ;;  %10073 = vmatprep.subr.bf16.mxu1 %v10625_v35  ;;  %v8733_v60 = vcombine.low %v13395_v30, %v13397_v10  ;;  %v8886_v28 = vcombine.low %v5809_v39, %v5810_v26  ;;  %v5730_v59 = vshrl.u32 %v8730_v11, 16  ;;  %v5742_v1 = vor.u32 %v5741_v55, %v5737_v50  ;;  %v10610_v11 = vld [vmem:[%s13737_s3 + $0x1e0] sm:$0xff]   ;;  %v7075_v51 = vld [vmem:[#allocation2 + $0x1c] sm:$0x1]  ;;  %v7091_v39 = vld [vmem:[#allocation2 + $0x18] sm:$0xe] }
 0x32d   :  { %6566 = vmatprep.mubr.bf16.mxu0 %v8852_v53  ;;  %v5808_v34 = vrot.slane %v8737_v33, 1  ;;  %v10592_v53 = vld [vmem:[%s13737_s3 + $0x1b8] sm:$0xff]   ;;  %v5734_v63 = vrot.slane %v5732_v38, 1  ;;  %v8893_v47 = vcombine.low %v13349_v16, %v13355_v42  ;;  %v5812_v7 = vrot.slane %v8741_v19, 1  ;;  %v5560_v33 = vld [vmem:[#allocation2 + $0x68] sm:$0xe] }
 0x32e   :  { %v5753_v6 = vshll.u32 %v8733_v60, 16  ;;  %v8744_v16 = vcombine.low %v5559_v43, %v13351_v45  ;;  %v5561_v42 = vld [vmem:[#allocation2 + $0x70] sm:$0xe]  ;;  %v5751_v25 = vshrl.u32 %v8733_v60, 16  ;;  %v8747_v23 = vcombine.low %v5562_v31, %v13374_v44  ;;  %v10611_v45 = vld [vmem:[%s13737_s3 + $0x1a0] sm:$0xff]   ;;  %v10618_v50 = vld [vmem:[%s13737_s3 + $0x198] sm:$0xff]  }
 0x32f   :  { %10074 = vmatpush3.bf16.msra.mxu1 %v10625_v35  ;;  %v5557_v35 = vld [vmem:[#allocation2 + $0x50] sm:$0xe]  ;;  %v8883_v52 = vcombine.low %v5807_v14, %v5808_v34  ;;  %v5735_v9 = vor.u32 %v5734_v63, %v5730_v59  ;;  %v8745_v46 = vcombine.low %v5560_v33, %v13357_v22  ;;  %v5744_v38 = vshrl.u32 %v8732_v57, 16  ;;  %v10615_v22 = vld [vmem:[%s13737_s3 + $0x1d8] sm:$0xff]   ;;  %v5564_v60 = vld [vmem:[#allocation2 + $0x88] sm:$0xe] }
 0x330   :  { %10075 = vmatprep.subr.bf16.mxu1 %v10634_v4  ;;  %v8742_v5 = vcombine.low %v5557_v35, %v13322_v58  ;;  %v10602_v58 = vld [vmem:[%s13737_s3 + $0x1e8] sm:$0xff]   ;;  %v5755_v32 = vrot.slane %v5753_v6, 1  ;;  %v8746_v26 = vcombine.low %v5561_v42, %v13380_v36  ;;  %v5815_v44 = vrot.slane %v8744_v16, 1  ;;  %v13463_v19 = vld [vmem:[#allocation2 + $0x20] sm:$0xf] }
 0x331   :  { %6921 = vmatmul.mubr.bf16.gmra.mxu1 %v8887_v29  ;;  %v5811_v29 = vrot.slane %v8740_v13, 1  ;;  %v8896_v55 = vcombine.low %v13378_v37, %v13372_v49  ;;  %v7077_v13 = vld [vmem:[#allocation2 + $0x2c] sm:$0x1]  ;;  %v10623_v37 = vld [vmem:[%s13737_s3 + $0x1d0] sm:$0xff]   ;;  %v7076_v59 = vld [vmem:[#allocation2 + $0x24] sm:$0x1] }
 0x332   :  { %6928 = vmatprep.mubr.bf16.mxu1 %v8891_v27  ;;  %v5813_v27 = vrot.slane %v8742_v5, 1  ;;  %v5756_v34 = vor.u32 %v5755_v32, %v5751_v25  ;;  %v5817_v63 = vrot.slane %v8746_v26, 1  ;;  %v8749_v5 = vcombine.low %v5564_v60, %v13397_v10  ;;  %v7092_v31 = vld [vmem:[#allocation2 + $0x20] sm:$0xe]  ;;  %v7095_v16 = vld [vmem:[#allocation2 + $0x38] sm:$0xe] }
 0x333   :  { %10076 = vmatpush3.bf16.msra.mxu1 %v10634_v4  ;;  %v8743_v4 = vcombine.low %v5558_v24, %v13332_v17  ;;  %v5746_v17 = vshll.u32 %v8732_v57, 16  ;;  %v8889_v56 = vcombine.low %v5811_v29, %v5812_v7  ;;  %v5818_v24 = vrot.slane %v8747_v23, 1  ;;  %v5563_v57 = vld [vmem:[#allocation2 + $0x80] sm:$0xe]  ;;  %v10624_v29 = vld [vmem:[%s13737_s3 + $0x190] sm:$0xff]   ;;  %v10628_v7 = vld [vmem:[%s13737_s3 + $0x1c8] sm:$0xff]  }
 0x334   :  { %6567 = vmatmul.mubr.bf16.gmra.mxu0 %v8851_v61  ;;  %10077 = vmatprep.subr.bf16.mxu1 %v10639_v40  ;;  %v8897_v61 = vcombine.low %v5735_v9, %v5742_v1  ;;  %v5820_v43 = vrot.slane %v8749_v5, 1  ;;  %v13482_v25 = vld [vmem:[#allocation2 + $0x30] sm:$0xf]  ;;  %v8944_v23 = vcombine.low %v7092_v31, %v7076_v59  ;;  %v13494_v60 = vld [vmem:[#allocation2 + $0x64] sm:$0x1] }
 0x335   :  { %10047 = vmatprep.mubr.bf16.mxu0 %v8880_v0  ;;  %v5814_v3 = vrot.slane %v8743_v4, 1  ;;  %v13435_v0 = vld [vmem:[#allocation2 + $0x18] sm:$0xf]  ;;  %v5748_v48 = vrot.slane %v5746_v17, 1  ;;  %v8943_v4 = vcombine.low %v7091_v39, %v7075_v51  ;;  %v8898_v1 = vcombine.low %v5817_v63, %v5818_v24  ;;  %v7093_v17 = vld [vmem:[#allocation2 + $0x28] sm:$0xe] }
 0x336   :  { %v8945_v33 = vcombine.low %v7093_v17, %v7077_v13  ;;  %v7085_v31 = vld [vmem:[#allocation2 + $0x7c] sm:$0x1] }
 0x337   :  { %10078 = vmatpush3.bf16.msra.mxu1 %v10639_v40  ;;  %v13430_v40 = vld [vmem:[#allocation2 + $0x10] sm:$0xf]  ;;  %v8892_v14 = vcombine.low %v5813_v27, %v5814_v3  ;;  %v5749_v35 = vor.u32 %v5748_v48, %v5744_v38  ;;  %v13473_v3 = vcombine.low %v13463_v19, %v7076_v59  ;;  %v13491_v38 = vld [vmem:[#allocation2 + $0x38] sm:$0xf] }
 0x338   :  { %v8926_v20 = vcombine.low %v13430_v40, %v7074_v18  ;;  %v9006_v17 = vcombine.low %v13430_v40, %v13435_v0 }
 0x339   :  { %6929 = vmatmul.mubr.bf16.gmra.mxu1 %v8890_v8  ;;  %v13446_v8 = vcombine.low %v13435_v0, %v7075_v51  ;;  %v8900_v36 = vcombine.low %v5749_v35, %v5756_v34  ;;  %v7097_v35 = vld [vmem:[#allocation2 + $0x48] sm:$0xe]  ;;  %v7201_v63 = vshrl.u32 %v13473_v3, 16  ;;  %v13516_v0 = vld [vmem:[#allocation2 + $0x8c] sm:$0x1] }
 0x33a   :  { %6936 = vmatprep.mubr.bf16.mxu1 %v8894_v21  ;;  %v7090_v21 = vld [vmem:[#allocation2 + $0x10] sm:$0xe]  ;;  %v7187_v10 = vshrl.u32 %v8926_v20, 16 }
 0x33b   :  { %v8942_v62 = vcombine.low %v7090_v21, %v7074_v18  ;;  %v7194_v18 = vshrl.u32 %v13446_v8, 16  ;;  %v7349_v21 = vrot.slane %v8945_v33, 1 }
 0x33c   :  { %10048 = vmatmul.mubr.bf16.vlgmr.msra.gmra.mxu0 %v8883_v52  ;;  %v7189_v52 = vshll.u32 %v8926_v20, 16 }
 0x33d   :  { %10051 = vmatprep.mubr.bf16.mxu0 %v8886_v28  ;;  %9728 = vmatpush3.bf16.msra.mxu0 %v10592_v53  ;;  %v5816_v53 = vrot.slane %v8745_v46, 1  ;;  %v7196_v28 = vshll.u32 %v13446_v8, 16  ;;  %v7346_v9 = vrot.slane %v8942_v62, 1  ;;  %v10637_v46 = vld [vmem:[%s13737_s3 + $0x1c0] sm:$0xff]  }
 0x33e   :  { %9729 = vmatprep.subr.bf16.mxu0 %v10597_v41  ;;  %v13453_v41 = vld [vmem:[#allocation2 + $0x28] sm:$0xf]  ;;  %v7191_v6 = vrot.slane %v7189_v52, 1  ;;  %v10638_v52 = vld [vmem:[%s13737_s3 + $0x180] sm:$0xff]  }
 0x33f   :  { %v8895_v49 = vcombine.low %v5815_v44, %v5816_v53  ;;  %v7198_v27 = vrot.slane %v7196_v28, 1  ;;  %v13502_v28 = vld [vmem:[#allocation2 + $0x6c] sm:$0x1] }
 0x340   :  { %v7192_v32 = vor.u32 %v7191_v6, %v7187_v10  ;;  %v13506_v6 = vld [vmem:[#allocation2 + $0x40] sm:$0xf] }
 0x341   :  { %9730 = vmatpush3.bf16.msra.mxu0 %v10598_v12  ;;  %6937 = vmatmul.mubr.bf16.gmra.mxu1 %v8893_v47  ;;  %v13466_v12 = vcombine.low %v13453_v41, %v7077_v13  ;;  %v7094_v47 = vld [vmem:[#allocation2 + $0x30] sm:$0xe]  ;;  %v7098_v13 = vld [vmem:[#allocation2 + $0x60] sm:$0xe] }
 0x342   :  { %9731 = vmatprep.subr.bf16.mxu0 %v10602_v58  ;;  %6944 = vmatprep.mubr.bf16.mxu1 %v8897_v61  ;;  %v8748_v58 = vcombine.low %v5563_v57, %v13403_v54  ;;  %v8899_v54 = vcombine.low %v13401_v2, %v13395_v30  ;;  %v7347_v61 = vrot.slane %v8943_v4, 1  ;;  %v10629_v30 = vld [vmem:[%s13737_s3 + $0x188] sm:$0xff]   ;;  %v7199_v2 = vor.u32 %v7198_v27, %v7194_v18 }
 0x343   :  { %v7208_v53 = vshrl.u32 %v13466_v12, 16 }
 0x344   :  { %10052 = vmatmul.mubr.bf16.gmra.mxu0 %v8889_v56  ;;  %v7079_v56 = vld [vmem:[#allocation2 + $0x3c] sm:$0x1]  ;;  %v5819_v42 = vrot.slane %v8748_v58, 1  ;;  %v9008_v48 = vcombine.low %v7346_v9, %v7347_v61  ;;  %v9007_v26 = vcombine.low %v7192_v32, %v7199_v2  ;;  %v13514_v61 = vld [vmem:[#allocation2 + $0x74] sm:$0x1] }
 0x345   :  { %10055 = vmatprep.mubr.bf16.mxu0 %v8892_v14  ;;  %9732 = vmatpush3.bf16.msra.mxu0 %v10605_v15  ;;  %v7078_v15 = vld [vmem:[#allocation2 + $0x34] sm:$0x1]  ;;  %v7203_v14 = vshll.u32 %v13473_v3, 16  ;;  %v8947_v34 = vcombine.low %v7095_v16, %v7079_v56  ;;  %v8931_v62 = vcombine.low %v13491_v38, %v7079_v56  ;;  %v7101_v32 = vld [vmem:[#allocation2 + $0x78] sm:$0xe] }
 0x346   :  { %9733 = vmatprep.subr.bf16.mxu0 %v10610_v11  ;;  %v7210_v11 = vshll.u32 %v13466_v12, 16  ;;  %v8946_v51 = vcombine.low %v7094_v47, %v7078_v15  ;;  %v8901_v20 = vcombine.low %v5819_v42, %v5820_v43  ;;  %v8930_v44 = vcombine.low %v13482_v25, %v7078_v15  ;;  %v7100_v42 = vld [vmem:[#allocation2 + $0x70] sm:$0xe] }
 0x347   :  { %v7205_v39 = vrot.slane %v7203_v14, 1  ;;  %v7224_v9 = vshll.u32 %v8931_v62, 16  ;;  %v8953_v2 = vcombine.low %v7101_v32, %v7085_v31  ;;  %v13518_v14 = vld [vmem:[#allocation2 + $0x84] sm:$0x1] }
 0x348   :  { %v7212_v8 = vrot.slane %v7210_v11, 1  ;;  %v7350_v24 = vrot.slane %v8946_v51, 1  ;;  %v7217_v4 = vshll.u32 %v8930_v44, 16  ;;  %v7215_v18 = vshrl.u32 %v8930_v44, 16  ;;  %v7103_v11 = vld [vmem:[#allocation2 + $0x88] sm:$0xe] }
 0x349   :  { %9734 = vmatpush3.bf16.msra.mxu0 %v10611_v45  ;;  %6945 = vmatmul.mubr.bf16.gmra.mxu1 %v8896_v55  ;;  %v7081_v45 = vld [vmem:[#allocation2 + $0x4c] sm:$0x1]  ;;  %v7096_v55 = vld [vmem:[#allocation2 + $0x40] sm:$0xe]  ;;  %v7206_v58 = vor.u32 %v7205_v39, %v7201_v63  ;;  %v7226_v40 = vrot.slane %v7224_v9, 1  ;;  %v7222_v51 = vshrl.u32 %v8931_v62, 16  ;;  %v9012_v9 = vcombine.low %v13482_v25, %v13491_v38 }
 0x34a   :  { %9735 = vmatprep.subr.bf16.mxu0 %v10615_v22  ;;  %6952 = vmatprep.mubr.bf16.mxu1 %v8900_v36  ;;  %v7080_v22 = vld [vmem:[#allocation2 + $0x44] sm:$0x1]  ;;  %v7348_v36 = vrot.slane %v8944_v23, 1  ;;  %v8949_v57 = vcombine.low %v7097_v35, %v7081_v45  ;;  %v7219_v47 = vrot.slane %v7217_v4, 1  ;;  %v7102_v23 = vld [vmem:[#allocation2 + $0x80] sm:$0xe] }
 0x34b   :  { %v8948_v59 = vcombine.low %v7096_v55, %v7080_v22  ;;  %v8932_v27 = vcombine.low %v13506_v6, %v7080_v22  ;;  %v7357_v39 = vrot.slane %v8953_v2, 1  ;;  %v7104_v62 = vld [vmem:[#allocation2 + $0x90] sm:$0xe]  ;;  %v7070_v38 = vld [vmem:[#allocation2 + $0x80] sm:$0xf] }
 0x34c   :  { %10056 = vmatmul.mubr.bf16.gmra.mxu0 %v8895_v49  ;;  %v13504_v49 = vld [vmem:[#allocation2 + $0x48] sm:$0xf]  ;;  %v9011_v5 = vcombine.low %v7348_v36, %v7349_v21  ;;  %v7089_v36 = vld [vmem:[#allocation2 + $0x9c] sm:$0x1] }
 0x34d   :  { %10059 = vmatprep.mubr.bf16.mxu0 %v8898_v1  ;;  %9736 = vmatpush3.bf16.msra.mxu0 %v10618_v50  ;;  %v7351_v50 = vrot.slane %v8947_v34, 1  ;;  %v7099_v1 = vld [vmem:[#allocation2 + $0x68] sm:$0xe]  ;;  %v8933_v3 = vcombine.low %v13504_v49, %v7081_v45  ;;  %v7352_v43 = vrot.slane %v8948_v59, 1  ;;  %v7231_v56 = vshll.u32 %v8932_v27, 16 }
 0x34e   :  { %9737 = vmatprep.subr.bf16.mxu0 %v10623_v37  ;;  %v7213_v37 = vor.u32 %v7212_v8, %v7208_v53  ;;  %v8951_v10 = vcombine.low %v7099_v1, %v13502_v28  ;;  %v8955_v34 = vcombine.low %v7103_v11, %v13516_v0  ;;  %v9009_v45 = vcombine.low %v13463_v19, %v13453_v41  ;;  %v13526_v21 = vld [vmem:[#allocation2 + $0x68] sm:$0xf]  ;;  %v7088_v53 = vld [vmem:[#allocation2 + $0x94] sm:$0x1] }
 0x34f   :  { %v9014_v12 = vcombine.low %v7350_v24, %v7351_v50  ;;  %v7238_v16 = vshll.u32 %v8933_v3, 16  ;;  %v8952_v8 = vcombine.low %v7100_v42, %v13514_v61  ;;  %v7233_v44 = vrot.slane %v7231_v56, 1  ;;  %v7071_v11 = vld [vmem:[#allocation2 + $0x88] sm:$0xf] }
 0x350   :  { %v9010_v15 = vcombine.low %v7206_v58, %v7213_v37  ;;  %v7355_v33 = vrot.slane %v8951_v10, 1  ;;  %v7236_v22 = vshrl.u32 %v8933_v3, 16  ;;  %v8954_v24 = vcombine.low %v7102_v23, %v13518_v14  ;;  %v7068_v10 = vld [vmem:[#allocation2 + $0x70] sm:$0xf] }
 0x351   :  { %9738 = vmatpush3.bf16.msra.mxu0 %v10624_v29  ;;  %6953 = vmatmul.mubr.bf16.gmra.mxu1 %v8899_v54  ;;  %v8950_v29 = vcombine.low %v7098_v13, %v13494_v60  ;;  %v7240_v35 = vrot.slane %v7238_v16, 1  ;;  %v7229_v41 = vshrl.u32 %v8932_v27, 16  ;;  %v7359_v19 = vrot.slane %v8955_v34, 1  ;;  %v7105_v13 = vld [vmem:[#allocation2 + $0x98] sm:$0xe] }
 0x352   :  { %9739 = vmatprep.subr.bf16.mxu0 %v10628_v7  ;;  %10079 = vmatprep.mubr.bf16.mxu1 %v9008_v48  ;;  %v7353_v7 = vrot.slane %v8949_v57, 1  ;;  %v7220_v48 = vor.u32 %v7219_v47, %v7215_v18  ;;  %v8935_v63 = vcombine.low %v13526_v21, %v13502_v28  ;;  %v7356_v50 = vrot.slane %v8952_v8, 1  ;;  %v7073_v34 = vld [vmem:[#allocation2 + $0x98] sm:$0xf] }
 0x353   :  { %v7354_v54 = vrot.slane %v8950_v29, 1  ;;  %v7234_v57 = vor.u32 %v7233_v44, %v7229_v41  ;;  %v7241_v37 = vor.u32 %v7240_v35, %v7236_v22  ;;  %v8956_v1 = vcombine.low %v7104_v62, %v7088_v53  ;;  %v7069_v29 = vld [vmem:[#allocation2 + $0x78] sm:$0xf] }
 0x354   :  { %10060 = vmatmul.mubr.bf16.gmra.mxu0 %v8901_v20  ;;  %v13520_v20 = vld [vmem:[#allocation2 + $0x60] sm:$0xf]  ;;  %v9023_v4 = vcombine.low %v7356_v50, %v7357_v39  ;;  %v7252_v58 = vshll.u32 %v8935_v63, 16  ;;  %v7250_v32 = vshrl.u32 %v8935_v63, 16  ;;  %v9015_v56 = vcombine.low %v13506_v6, %v13504_v49 }
 0x355   :  { %9740 = vmatpush3.bf16.msra.mxu0 %v10629_v30  ;;  %7667 = vmatprep.mubr.bf16.mxu0 %v9007_v26  ;;  %v9017_v30 = vcombine.low %v7352_v43, %v7353_v7  ;;  %v7227_v26 = vor.u32 %v7226_v40, %v7222_v51  ;;  %v7360_v28 = vrot.slane %v8956_v1, 1  ;;  %v8936_v7 = vcombine.low %v7068_v10, %v13514_v61 }
 0x356   :  { %9741 = vmatprep.subr.bf16.mxu0 %v10637_v46  ;;  %v9020_v46 = vcombine.low %v7354_v54, %v7355_v33  ;;  %v7254_v43 = vrot.slane %v7252_v58, 1  ;;  %v9018_v49 = vcombine.low %v13520_v20, %v13526_v21  ;;  %v8941_v44 = vcombine.low %v7073_v34, %v7089_v36 }
 0x357   :  { %v9013_v55 = vcombine.low %v7220_v48, %v7227_v26  ;;  %v7259_v25 = vshll.u32 %v8936_v7, 16  ;;  %v8938_v48 = vcombine.low %v7070_v38, %v13518_v14  ;;  %v9021_v41 = vcombine.low %v7068_v10, %v7069_v29 }
 0x358   :  { %v7255_v33 = vor.u32 %v7254_v43, %v7250_v32 }
 0x359   :  { %9742 = vmatpush3.bf16.msra.mxu0 %v10638_v52  ;;  %10080 = vmatmul.mubr.bf16.vlgmr.msra.gmra.mxu1 %v9011_v5  ;;  %v8934_v52 = vcombine.low %v13520_v20, %v13494_v60  ;;  %v7358_v5 = vrot.slane %v8954_v24, 1  ;;  %v8957_v60 = vcombine.low %v7105_v13, %v7089_v36  ;;  %v7261_v61 = vrot.slane %v7259_v25, 1 }
 0x35a   :  { %10083 = vmatprep.mubr.bf16.mxu1 %v9014_v12  ;;  %v7273_v26 = vshll.u32 %v8938_v48, 16  ;;  %v7271_v35 = vshrl.u32 %v8938_v48, 16  ;;  %v7292_v13 = vshrl.u32 %v8941_v44, 16  ;;  %v9024_v36 = vcombine.low %v7070_v38, %v7071_v11 }
 0x35b   :  { %v7245_v59 = vshll.u32 %v8934_v52, 16  ;;  %v9026_v12 = vcombine.low %v7358_v5, %v7359_v19  ;;  %v7361_v3 = vrot.slane %v8957_v60, 1  ;;  %v7243_v47 = vshrl.u32 %v8934_v52, 16 }
 0x35c   :  { %7668 = vmatmul.mubr.bf16.vlgmr.msra.gmra.mxu0 %v9006_v17  ;;  %v9016_v17 = vcombine.low %v7234_v57, %v7241_v37  ;;  %v7275_v14 = vrot.slane %v7273_v26, 1  ;;  %v7294_v52 = vshll.u32 %v8941_v44, 16 }
 0x35d   :  { %7675 = vmatprep.mubr.bf16.mxu0 %v9010_v15  ;;  %v7247_v27 = vrot.slane %v7245_v59, 1  ;;  %v8937_v15 = vcombine.low %v7069_v29, %v7085_v31  ;;  %v9029_v18 = vcombine.low %v7360_v28, %v7361_v3  ;;  %v8939_v31 = vcombine.low %v7071_v11, %v13516_v0 }
 0x35e   :  { %v7276_v39 = vor.u32 %v7275_v14, %v7271_v35  ;;  %v7296_v63 = vrot.slane %v7294_v52, 1 }
 0x35f   :  { %v7248_v54 = vor.u32 %v7247_v27, %v7243_v47  ;;  %v7266_v40 = vshll.u32 %v8937_v15, 16  ;;  %v7264_v51 = vshrl.u32 %v8937_v15, 16  ;;  %v7280_v23 = vshll.u32 %v8939_v31, 16 }
 0x360   :  { %v7278_v22 = vshrl.u32 %v8939_v31, 16 }
 0x361   :  { %10084 = vmatmul.mubr.bf16.gmra.mxu1 %v9017_v30  ;;  %v9019_v16 = vcombine.low %v7248_v54, %v7255_v33  ;;  %v7268_v42 = vrot.slane %v7266_v40, 1  ;;  %v7257_v30 = vshrl.u32 %v8936_v7, 16  ;;  %v7282_v0 = vrot.slane %v7280_v23, 1 }
 0x362   :  { %10087 = vmatprep.mubr.bf16.mxu1 %v9020_v46  ;;  %v7072_v46 = vld [vmem:[#allocation2 + $0x90] sm:$0xf] }
 0x363   :  { %v7269_v2 = vor.u32 %v7268_v42, %v7264_v51  ;;  %v8940_v8 = vcombine.low %v7072_v46, %v7088_v53  ;;  %v7283_v24 = vor.u32 %v7282_v0, %v7278_v22  ;;  %v7297_v53 = vor.u32 %v7296_v63, %v7292_v13 }
 0x364   :  { %7676 = vmatmul.mubr.bf16.gmra.mxu0 %v9009_v45  ;;  %v7262_v45 = vor.u32 %v7261_v61, %v7257_v30  ;;  %v9027_v57 = vcombine.low %v7072_v46, %v7073_v34 }
 0x365   :  { %7683 = vmatprep.mubr.bf16.mxu0 %v9013_v55  ;;  %v7287_v55 = vshll.u32 %v8940_v8, 16  ;;  %v9025_v19 = vcombine.low %v7276_v39, %v7283_v24  ;;  %v7285_v20 = vshrl.u32 %v8940_v8, 16 }
 0x366   :  { %v9022_v6 = vcombine.low %v7262_v45, %v7269_v2 }
 0x367   :  { %v7289_v62 = vrot.slane %v7287_v55, 1 }
 0x369   :  { %10088 = vmatmul.mubr.bf16.gmra.mxu1 %v9023_v4  ;;  %v7290_v21 = vor.u32 %v7289_v62, %v7285_v20 }
 0x36a   :  { %10091 = vmatprep.mubr.bf16.mxu1 %v9026_v12 }
 0x36b   :  { %v9028_v50 = vcombine.low %v7290_v21, %v7297_v53 }
 0x36c   :  { %7684 = vmatmul.mubr.bf16.gmra.mxu0 %v9012_v9 }
 0x36d   :  { %7691 = vmatprep.mubr.bf16.mxu0 %v9016_v17 }
 0x371   :  { %10092 = vmatmul.mubr.bf16.gmra.mxu1 %v9029_v18 }
 0x374   :  { %7692 = vmatmul.mubr.bf16.gmra.mxu0 %v9015_v56 }
 0x375   :  { %7699 = vmatprep.mubr.bf16.mxu0 %v9019_v16 }
 0x37c   :  { %7700 = vmatmul.mubr.bf16.gmra.mxu0 %v9018_v49 }
 0x37d   :  { %7707 = vmatprep.mubr.bf16.mxu0 %v9022_v6 }
 0x384   :  { %7708 = vmatmul.mubr.bf16.gmra.mxu0 %v9021_v41 }
 0x385   :  { %7715 = vmatprep.mubr.bf16.mxu0 %v9025_v19 }
 0x38c   :  { %7716 = vmatmul.mubr.bf16.gmra.mxu0 %v9024_v36 }
 0x38d   :  { %7723 = vmatprep.mubr.bf16.mxu0 %v9028_v50 }
 0x394   :  { %7724 = vmatmul.mubr.bf16.gmra.mxu0 %v9027_v57 }
 0x3b4   :  { %v10017_v37 = vpop.f32.mrf.mxu1 }
 0x3b6   :  { %v6609_v5 = vpop.f32.mrf.mxu1 }
 0x3b8   :  { %v10018_v4 = vpop.f32.mrf.mxu1 }
 0x3ba   :  { %v6612_v1 = vpop.f32.mrf.mxu1 }
 0x3bc   :  { %v9583_v59 = vpop.f32.mrf.mxu0 }
 0x3be   :  { %v9584_v60 = vpop.f32.mrf.mxu0 }
 0x3bf   :  { %v9585_v12 = vadd.f32 %v9584_v60, %v9583_v59 }
 0x3c0   :  { %v9586_v29 = vpop.f32.mrf.mxu0 }
 0x3c1   :  { %v13542_v58 = vadd.f32 %v9585_v12, %v6609_v5  ;;  %v10021_v9 = vpop.f32.mrf.mxu1 }
 0x3c2   :  { %v9587_v17 = vpop.f32.mrf.mxu0 }
 0x3c3   :  { %v9588_v10 = vadd.f32 %v9587_v17, %v9586_v29  ;;  %v6625_v27 = vpop.f32.mrf.mxu1 }
 0x3c4   :  { %v9589_v28 = vpop.f32.mrf.mxu0 }
 0x3c5   :  { %v13544_v3 = vadd.f32 %v9588_v10, %v6612_v1  ;;  %v10022_v15 = vpop.f32.mrf.mxu1 }
 0x3c6   :  { %v9590_v47 = vpop.f32.mrf.mxu0 }
 0x3c7   :  { %v9591_v43 = vadd.f32 %v9590_v47, %v9589_v28  ;;  %v6628_v7 = vpop.f32.mrf.mxu1 }
 0x3c8   :  { %v9592_v54 = vpop.f32.mrf.mxu0 }
 0x3c9   :  { %v13546_v32 = vadd.f32 %v10017_v37, %v9591_v43  ;;  %v10025_v18 = vpop.f32.mrf.mxu1 }
 0x3ca   :  { %v9593_v40 = vpop.f32.mrf.mxu0 }
 0x3cb   :  { %v9594_v11 = vadd.f32 %v9593_v40, %v9592_v54  ;;  %v6641_v33 = vpop.f32.mrf.mxu1 }
 0x3cc   :  { %v9595_v25 = vpop.f32.mrf.mxu0 }
 0x3cd   :  { %v13548_v38 = vadd.f32 %v10018_v4, %v9594_v11  ;;  %v10026_v56 = vpop.f32.mrf.mxu1 }
 0x3ce   :  { %v9596_v31 = vpop.f32.mrf.mxu0 }
 0x3cf   :  { %v9597_v16 = vadd.f32 %v9596_v31, %v9595_v25  ;;  %v6644_v42 = vpop.f32.mrf.mxu1 }
 0x3d0   :  { %v9598_v48 = vpop.f32.mrf.mxu0 }
 0x3d1   :  { %v13550_v61 = vadd.f32 %v9597_v16, %v6625_v27  ;;  %v10029_v51 = vpop.f32.mrf.mxu1 }
 0x3d2   :  { %v9599_v30 = vpop.f32.mrf.mxu0 }
 0x3d3   :  { %v9600_v2 = vadd.f32 %v9599_v30, %v9598_v48  ;;  %v6657_v23 = vpop.f32.mrf.mxu1 }
 0x3d4   :  { %v9601_v46 = vpop.f32.mrf.mxu0 }
 0x3d5   :  { %v13552_v34 = vadd.f32 %v9600_v2, %v6628_v7  ;;  %v10030_v45 = vpop.f32.mrf.mxu1 }
 0x3d6   :  { %v9602_v26 = vpop.f32.mrf.mxu0 }
 0x3d7   :  { %v9603_v49 = vadd.f32 %v9602_v26, %v9601_v46  ;;  %v6660_v6 = vpop.f32.mrf.mxu1 }
 0x3d8   :  { %v9604_v0 = vpop.f32.mrf.mxu0 }
 0x3d9   :  { %v13554_v8 = vadd.f32 %v10021_v9, %v9603_v49  ;;  %v13556_v44 = vpop.f32.mrf.mxu1 }
 0x3da   :  { %v9605_v14 = vpop.f32.mrf.mxu0 }
 0x3db   :  { %v9606_v22 = vadd.f32 %v9605_v14, %v9604_v0  ;;  %v13558_v35 = vpop.f32.mrf.mxu1 }
 0x3dc   :  { %v9607_v24 = vpop.f32.mrf.mxu0 }
 0x3dd   :  { %v13560_v55 = vadd.f32 %v10022_v15, %v9606_v22  ;;  %v13562_v52 = vpop.f32.mrf.mxu1 }
 0x3de   :  { %v9608_v39 = vpop.f32.mrf.mxu0 }
 0x3df   :  { %v9609_v41 = vadd.f32 %v9608_v39, %v9607_v24  ;;  %v13564_v19 = vpop.f32.mrf.mxu1 }
 0x3e0   :  { %v9610_v62 = vpop.f32.mrf.mxu0 }
 0x3e1   :  { %v13566_v13 = vadd.f32 %v9609_v41, %v6641_v33  ;;  %v13568_v63 = vpop.f32.mrf.mxu1 }
 0x3e2   :  { %v9611_v20 = vpop.f32.mrf.mxu0 }
 0x3e3   :  { %v9612_v21 = vadd.f32 %v9611_v20, %v9610_v62  ;;  %v13570_v53 = vpop.f32.mrf.mxu1 }
 0x3e4   :  { %v9613_v36 = vpop.f32.mrf.mxu0 }
 0x3e5   :  { %v13572_v50 = vadd.f32 %v9612_v21, %v6644_v42  ;;  %v13574_v57 = vpop.f32.mrf.mxu1 }
 0x3e6   :  { %v9614_v37 = vpop.f32.mrf.mxu0 }
 0x3e7   :  { %v9615_v5 = vadd.f32 %v9614_v37, %v9613_v36  ;;  %v13576_v4 = vpop.f32.mrf.mxu1 }
 0x3e8   :  { %v9616_v59 = vpop.f32.mrf.mxu0 }
 0x3e9   :  { %v13578_v1 = vadd.f32 %v10025_v18, %v9615_v5  ;;  %v13580_v60 = vpop.f32.mrf.mxu1 }
 0x3ea   :  { %v9617_v12 = vpop.f32.mrf.mxu0 }
 0x3eb   :  { %v9618_v29 = vadd.f32 %v9617_v12, %v9616_v59  ;;  %v13582_v9 = vpop.f32.mrf.mxu1 }
 0x3ec   :  { %v9619_v17 = vpop.f32.mrf.mxu0 }
 0x3ed   :  { %v13584_v10 = vadd.f32 %v10026_v56, %v9618_v29  ;;  %v13586_v27 = vpop.f32.mrf.mxu1 }
 0x3ee   :  { %v9620_v28 = vpop.f32.mrf.mxu0 }
 0x3ef   :  { %13815 = vst [vmem:[#allocation14_spill] sm:$0xff] %v13584_v10  ;;  %v9621_v15 = vadd.f32 %v9620_v28, %v9619_v17  ;;  %v13588_v47 = vpop.f32.mrf.mxu1 }
 0x3f0   :  { %v9622_v43 = vpop.f32.mrf.mxu0 }
 0x3f1   :  { %v13590_v7 = vadd.f32 %v9621_v15, %v6657_v23  ;;  %v13592_v54 = vpop.f32.mrf.mxu1 }
 0x3f2   :  { %v9623_v18 = vpop.f32.mrf.mxu0 }
 0x3f3   :  { %13816 = vst [vmem:[#allocation21_spill] sm:$0xff] %v13590_v7  ;;  %v9624_v40 = vadd.f32 %v9623_v18, %v9622_v43  ;;  %v13594_v11 = vpop.f32.mrf.mxu1 }
 0x3f4   :  { %v9625_v33 = vpop.f32.mrf.mxu0 }
 0x3f5   :  { %v13596_v25 = vadd.f32 %v9624_v40, %v6660_v6  ;;  %v13598_v56 = vpop.f32.mrf.mxu1 }
 0x3f6   :  { %v9626_v31 = vpop.f32.mrf.mxu0 }
 0x3f7   :  { %13817 = vst [vmem:[#allocation7_spill] sm:$0xff] %v13596_v25  ;;  %v9627_v16 = vadd.f32 %v9626_v31, %v9625_v33  ;;  %v13600_v42 = vpop.f32.mrf.mxu1 }
 0x3f8   :  { %v9628_v48 = vpop.f32.mrf.mxu0 }
 0x3f9   :  { %v6666_v30 = vadd.f32 %v10029_v51, %v9627_v16  ;;  %v13602_v2 = vpop.f32.mrf.mxu1 }
 0x3fa   :  { %v9629_v23 = vpop.f32.mrf.mxu0 }
 0x3fb   :  { %v9630_v46 = vadd.f32 %v9629_v23, %v9628_v48  ;;  %v13604_v26 = vpop.f32.mrf.mxu1 }
 0x3fc   :  { %v13606_v49 = vpop.f32.mrf.mxu0 }
 0x3fd   :  { %v6669_v0 = vadd.f32 %v10030_v45, %v9630_v46  ;;  %v13608_v14 = vpop.f32.mrf.mxu1 }
 0x3fe   :  { %v6995_v6 = vpop.f32.mrf.mxu0 }
 0x3ff   :  { %v13610_v22 = vpop.f32.mrf.mxu1 }
 0x400   :  { %v13612_v24 = vpop.f32.mrf.mxu0 }
 0x401   :  { %v13614_v39 = vpop.f32.mrf.mxu1 }
 0x402   :  { %v6998_v41 = vpop.f32.mrf.mxu0 }
 0x403   :  { %v13616_v51 = vpop.f32.mrf.mxu1 }
 0x404   :  { %v13618_v62 = vpop.f32.mrf.mxu0 }
 0x405   :  { %v13620_v20 = vpop.f32.mrf.mxu1 }
 0x406   :  { %v13622_v21 = vpop.f32.mrf.mxu0 }
 0x407   :  { %v13624_v36 = vpop.f32.mrf.mxu1 }
 0x408   :  { %v13626_v45 = vpop.f32.mrf.mxu0 }
 0x409   :  { %v13628_v37 = vpop.f32.mrf.mxu1 }
 0x40a   :  { %13818 = vst [vmem:[#allocation13_spill] sm:$0xff] %v13628_v37  ;;  %v13630_v5 = vpop.f32.mrf.mxu0 }
 0x40b   :  { %v13632_v59 = vpop.f32.mrf.mxu1 }
 0x40c   :  { %13819 = vst [vmem:[#allocation15_spill] sm:$0xff] %v13632_v59  ;;  %v13634_v12 = vpop.f32.mrf.mxu0 }
 0x40d   :  { %13820 = vst [vmem:[#allocation11_spill] sm:$0xff] %v13634_v12  ;;  %v13636_v29 = vpop.f32.mrf.mxu1 }
 0x40e   :  { %13821 = vst [vmem:[#allocation12_spill] sm:$0xff] %v13636_v29  ;;  %v13638_v17 = vpop.f32.mrf.mxu0 }
 0x40f   :  { %v13640_v28 = vpop.f32.mrf.mxu1 }
 0x410   :  { %13822 = vst [vmem:[#allocation23_spill] sm:$0xff] %v13640_v28  ;;  %v13642_v15 = vpop.f32.mrf.mxu0 }
 0x411   :  { %13823 = vst [vmem:[#allocation8_spill] sm:$0xff] %v13642_v15  ;;  %v9705_v43 = vpop.f32.mrf.mxu1  ;;  %v9665_v15 = vadd.f32 %v13558_v35, %v13556_v44  ;;  %v13664_v44 = vld [vmem:[%s13740_s6] ss:$0 sm:$0xff]  ;;  %s10704_s6 = smov [#allocation3]  }
 0x412   :  { %v13644_v18 = vpop.f32.mrf.mxu0  ;;  %s7905_s16 = sshll.u32 %s10704_s6, 4  ;;  %s7906_s16 = int_to_ptr.vmem [resolvable:$true] %s7905_s16 }
 0x413   :  { %13824 = vst [vmem:[#allocation17_spill] sm:$0xff] %v13644_v18  ;;  %v9706_v40 = vpop.f32.mrf.mxu1  ;;  %s10681_s17 = scalar_lea.vmem %s7906_s16, 2048  ;;  %p10686_p1 = scmp.lt.s32.totalorder %s7906_s16, %s7906_s16 }
 0x414   :  { %v10061_v33 = vpop.f32.mrf.mxu0  ;;  %v9707_v31 = vadd.f32 %v9706_v40, %v9705_v43  ;;  %p10682_p0 = scmp.ne.s32.totalorder %s7906_s16, %s10681_s17  ;;  %p10687_p2 = scmp.lt.s32.totalorder %s10681_s17, %s10681_s17 }
 0x415   :  { %v9708_v16 = vpop.f32.mrf.mxu1 }
 0x416   :  { %v13646_v48 = vpop.f32.mrf.mxu0  ;;  %v6955_v23 = vadd.f32 %v9707_v31, %v6666_v30  ;;  %v9668_v30 = vadd.f32 %v13564_v19, %v13562_v52  ;;  %p10688_p3 = por %p10687_p2, %p10686_p1 }
 0x417   :  { %v9709_v46 = vpop.f32.mrf.mxu1 }
 0x418   :  { %v13648_v25 = vadd.f32 %v10061_v33, %v6955_v23  ;;  %v10062_v29 = vpop.f32.mrf.mxu0  ;;  %v9710_v7 = vadd.f32 %v9709_v46, %v9708_v16  ;;  %v6899_v33 = vadd.f32 %v9665_v15, %v13542_v58  ;;  %p10689_p4 = pnand %p10688_p3, %p10682_p0 }
 0x419   :  { %v10081_v59 = vpop.f32.mrf.mxu1 }
 0x41a   :  { %v13650_v37 = vpop.f32.mrf.mxu0  ;;  %v6958_v28 = vadd.f32 %v9710_v7, %v6669_v0  ;;  %v6996_v23 = vadd.f32 %v6995_v6, %v6899_v33  ;;  %v9671_v7 = vadd.f32 %v13570_v53, %v13568_v63  ;;  %v9674_v63 = vadd.f32 %v13576_v4, %v13574_v57 }
 0x41b   :  { %v7766_v10 = vpop.f32.mrf.mxu1 }
 0x41c   :  { %v13654_v12 = vadd.f32 %v10062_v29, %v6958_v28  ;;  %v9743_v43 = vpop.f32.mrf.mxu0  ;;  %v6902_v29 = vadd.f32 %v9668_v30, %v13544_v3 }
 0x41d   :  { %v10082_v18 = vpop.f32.mrf.mxu1 }
 0x41e   :  { %13825 = vst [vmem:[#allocation18_spill] sm:$0xff] %v13654_v12  ;;  %v9744_v40 = vpop.f32.mrf.mxu0  ;;  %v6999_v58 = vadd.f32 %v6998_v41, %v6902_v29 }
 0x41f   :  { %v9745_v31 = vadd.f32 %v9744_v40, %v9743_v43  ;;  %v7769_v0 = vpop.f32.mrf.mxu1 }
 0x420   :  { %v9746_v16 = vpop.f32.mrf.mxu0 }
 0x421   :  { %v7767_v46 = vadd.f32 %v9745_v31, %v7766_v10  ;;  %v6907_v10 = vadd.f32 %v9671_v7, %v13546_v32  ;;  %v10085_v31 = vpop.f32.mrf.mxu1  ;;  %v6910_v32 = vadd.f32 %v9674_v63, %v13548_v38 }
 0x422   :  { %v9747_v35 = vpop.f32.mrf.mxu0 }
 0x423   :  { %v7829_v28 = vadd.f32 %v7767_v46, %v6996_v23  ;;  %v9748_v52 = vadd.f32 %v9747_v35, %v9746_v16  ;;  %v7004_v3 = vadd.f32 %v13606_v49, %v6907_v10  ;;  %v9677_v16 = vadd.f32 %v13582_v9, %v13580_v60  ;;  %v7782_v4 = vpop.f32.mrf.mxu1 }
 0x424   :  { %v9749_v19 = vpop.f32.mrf.mxu0  ;;  %v9680_v60 = vadd.f32 %v13588_v47, %v13586_v27 }
 0x425   :  { %v7852_v15 = vadd.f32 %v13664_v44, %v7829_v28  ;;  %v7770_v6 = vadd.f32 %v9748_v52, %v7769_v0  ;;  %v7007_v0 = vadd.f32 %v13612_v24, %v6910_v32  ;;  %v6915_v28 = vadd.f32 %v9677_v16, %v13550_v61 }
 0x426   :  { %v9750_v43 = vpop.f32.mrf.mxu0  ;;  %v6918_v61 = vadd.f32 %v9680_v60, %v13552_v34 }
 0x427   :  { %v7868_v53 = vmax.f32 %v7852_v15, 0.0  ;;  %v7830_v40 = vadd.f32 %v7770_v6, %v6999_v58  ;;  %v9751_v33 = vadd.f32 %v9750_v43, %v9749_v19  ;;  %v10086_v19 = vpop.f32.mrf.mxu1 }
 0x428   :  { %v9752_v12 = vpop.f32.mrf.mxu0 }
 0x429   :  { %7884 = vst [vmem:[#allocation3] sm:$0xff] %v7868_v53  ;;  %v7853_v30 = vadd.f32 %v13664_v44, %v7830_v40  ;;  %v7775_v41 = vadd.f32 %v10081_v59, %v9751_v33  ;;  %v7785_v47 = vpop.f32.mrf.mxu1  ;;  %v7015_v53 = vadd.f32 %v13630_v5, %v6918_v61 }
 0x42a   :  { %v9753_v23 = vpop.f32.mrf.mxu0 }
 0x42b   :  { %v7869_v46 = vmax.f32 %v7853_v30, 0.0  ;;  %v7831_v7 = vadd.f32 %v7775_v41, %v7004_v3  ;;  %v9754_v57 = vadd.f32 %v9753_v23, %v9752_v12  ;;  %v7012_v12 = vadd.f32 %v13622_v21, %v6915_v28  ;;  %v10089_v41 = vpop.f32.mrf.mxu1 }
 0x42c   :  { %v9755_v35 = vpop.f32.mrf.mxu0 }
 0x42d   :  { %7885 = vst [vmem:[#allocation3 + $0x8] sm:$0xff] %v7869_v46  ;;  %v7854_v49 = vadd.f32 %v13664_v44, %v7831_v7  ;;  %v7778_v29 = vadd.f32 %v10082_v18, %v9754_v57  ;;  %v9683_v18 = vadd.f32 %v13594_v11, %v13592_v54  ;;  %v9686_v54 = vadd.f32 %v13600_v42, %v13598_v56  ;;  %v7798_v42 = vpop.f32.mrf.mxu1 }
 0x42e   :  { %v9756_v59 = vpop.f32.mrf.mxu0  ;;  %v9689_v46 = vadd.f32 %v13604_v26, %v13602_v2  ;;  %v9692_v2 = vadd.f32 %v13610_v22, %v13608_v14 }
 0x42f   :  { %v7870_v9 = vmax.f32 %v7854_v49, 0.0  ;;  %v7832_v52 = vadd.f32 %v7778_v29, %v7007_v0  ;;  %v9757_v38 = vadd.f32 %v9756_v59, %v9755_v35  ;;  %v6923_v33 = vadd.f32 %v9683_v18, %v13554_v8  ;;  %v10090_v60 = vpop.f32.mrf.mxu1 }
 0x430   :  { %v9758_v58 = vpop.f32.mrf.mxu0  ;;  %v6926_v8 = vadd.f32 %v9686_v54, %v13560_v55  ;;  %v6931_v29 = vadd.f32 %v9689_v46, %v13566_v13  ;;  %v9695_v59 = vadd.f32 %v13616_v51, %v13614_v39  ;;  %v6934_v13 = vadd.f32 %v9692_v2, %v13572_v50  ;;  %v13826_v51 = vld [vmem:[#allocation17_spill] sm:$0xff] }
 0x431   :  { %7886 = vst [vmem:[#allocation3 + $0x10] sm:$0xff] %v7870_v9  ;;  %v7855_v24 = vadd.f32 %v13664_v44, %v7832_v52  ;;  %v7783_v15 = vadd.f32 %v9757_v38, %v7782_v4  ;;  %v7020_v23 = vadd.f32 %v13618_v62, %v6923_v33  ;;  %v9698_v39 = vadd.f32 %v13624_v36, %v13620_v20  ;;  %v13829_v36 = vld [vmem:[#allocation13_spill] sm:$0xff]  ;;  %v13830_v33 = vld [vmem:[#allocation15_spill] sm:$0xff] }
 0x432   :  { %v9759_v6 = vpop.f32.mrf.mxu0  ;;  %v7023_v0 = vadd.f32 %v13626_v45, %v6926_v8  ;;  %v7028_v45 = vadd.f32 %v13638_v17, %v6931_v29  ;;  %v6939_v22 = vadd.f32 %v9695_v59, %v13578_v1  ;;  %v7031_v18 = vadd.f32 %v13826_v51, %v6934_v13  ;;  %v13828_v1 = vld [vmem:[#allocation14_spill] sm:$0xff]  ;;  %v13832_v8 = vld [vmem:[#allocation21_spill] sm:$0xff] }
 0x433   :  { %v7871_v10 = vmax.f32 %v7855_v24, 0.0  ;;  %v7833_v43 = vadd.f32 %v7783_v15, %v7012_v12  ;;  %v9760_v27 = vadd.f32 %v9759_v6, %v9758_v58  ;;  %v7801_v24 = vpop.f32.mrf.mxu1 }
 0x434   :  { %v9761_v63 = vpop.f32.mrf.mxu0 }
 0x435   :  { %7887 = vst [vmem:[#allocation3 + $0x18] sm:$0xff] %v7871_v10  ;;  %v7856_v21 = vadd.f32 %v13664_v44, %v7833_v43  ;;  %v7786_v40 = vadd.f32 %v9760_v27, %v7785_v47  ;;  %v10093_v27 = vpop.f32.mrf.mxu1 }
 0x436   :  { %v9762_v3 = vpop.f32.mrf.mxu0 }
 0x437   :  { %v7872_v11 = vmax.f32 %v7856_v21, 0.0  ;;  %v7834_v30 = vadd.f32 %v7786_v40, %v7015_v53  ;;  %v9763_v34 = vadd.f32 %v9762_v3, %v9761_v63  ;;  %v13827_v63 = vld [vmem:[#allocation11_spill] sm:$0xff]  ;;  %v6942_v21 = vadd.f32 %v9698_v39, %v13828_v1 }
 0x438   :  { %v9764_v16 = vpop.f32.mrf.mxu0  ;;  %v7036_v53 = vadd.f32 %v13827_v63, %v6939_v22  ;;  %v9701_v3 = vadd.f32 %v13830_v33, %v13829_v36 }
 0x439   :  { %7888 = vst [vmem:[#allocation3 + $0x20] sm:$0xff] %v7872_v11  ;;  %v7857_v5 = vadd.f32 %v13664_v44, %v7834_v30  ;;  %v7791_v32 = vadd.f32 %v10085_v31, %v9763_v34 }
 0x43a   :  { %v9765_v7 = vpop.f32.mrf.mxu0 }
 0x43b   :  { %v7873_v57 = vmax.f32 %v7857_v5, 0.0  ;;  %v7835_v4 = vadd.f32 %v7791_v32, %v7020_v23  ;;  %v9766_v56 = vadd.f32 %v9765_v7, %v9764_v16  ;;  %v7814_v16 = vpop.f32.mrf.mxu1  ;;  %v13831_v5 = vld [vmem:[#allocation8_spill] sm:$0xff] }
 0x43c   :  { %v9767_v35 = vpop.f32.mrf.mxu0  ;;  %v7039_v32 = vadd.f32 %v13831_v5, %v6942_v21 }
 0x43d   :  { %7889 = vst [vmem:[#allocation3 + $0x28] sm:$0xff] %v7873_v57  ;;  %v7858_v62 = vadd.f32 %v13664_v44, %v7835_v4  ;;  %v7794_v49 = vadd.f32 %v10086_v19, %v9766_v56  ;;  %v6947_v57 = vadd.f32 %v9701_v3, %v13832_v8  ;;  %v13833_v56 = vld [vmem:[#allocation12_spill] sm:$0xff] }
 0x43e   :  { %v9768_v31 = vpop.f32.mrf.mxu0 }
 0x43f   :  { %v7874_v26 = vmax.f32 %v7858_v62, 0.0  ;;  %v7836_v28 = vadd.f32 %v7794_v49, %v7023_v0  ;;  %v9769_v55 = vadd.f32 %v9768_v31, %v9767_v35  ;;  %v10094_v49 = vpop.f32.mrf.mxu1  ;;  %v7044_v31 = vadd.f32 %v13646_v48, %v6947_v57 }
 0x440   :  { %v9770_v9 = vpop.f32.mrf.mxu0 }
 0x441   :  { %7890 = vst [vmem:[#allocation3 + $0x30] sm:$0xff] %v7874_v26  ;;  %v7859_v52 = vadd.f32 %v13664_v44, %v7836_v28  ;;  %v7799_v38 = vadd.f32 %v9769_v55, %v7798_v42  ;;  %v13835_v55 = vld [vmem:[#allocation7_spill] sm:$0xff] }
 0x442   :  { %v9771_v19 = vpop.f32.mrf.mxu0 }
 0x443   :  { %v7875_v58 = vmax.f32 %v7859_v52, 0.0  ;;  %v7837_v12 = vadd.f32 %v7799_v38, %v7028_v45  ;;  %v9772_v14 = vadd.f32 %v9771_v19, %v9770_v9  ;;  %v7817_v52 = vpop.f32.mrf.mxu1 }
 0x444   :  { %v9773_v15 = vpop.f32.mrf.mxu0 }
 0x445   :  { %7891 = vst [vmem:[#allocation3 + $0x38] sm:$0xff] %v7875_v58  ;;  %v7860_v17 = vadd.f32 %v13664_v44, %v7837_v12  ;;  %v7802_v6 = vadd.f32 %v9772_v14, %v7801_v24 }
 0x446   :  { %v9774_v61 = vpop.f32.mrf.mxu0 }
 0x447   :  { %v7876_v10 = vmax.f32 %v7860_v17, 0.0  ;;  %v7838_v43 = vadd.f32 %v7802_v6, %v7031_v18  ;;  %v9775_v50 = vadd.f32 %v9774_v61, %v9773_v15 }
 0x448   :  { %v9776_v47 = vpop.f32.mrf.mxu0 }
 0x449   :  { %7892 = vst [vmem:[#allocation3 + $0x40] sm:$0xff] %v7876_v10  ;;  %v7861_v40 = vadd.f32 %v13664_v44, %v7838_v43  ;;  %v7807_v20 = vadd.f32 %v10089_v41, %v9775_v50  ;;  %v13834_v41 = vld [vmem:[#allocation23_spill] sm:$0xff]  ;;  %v13836_v43 = vld [vmem:[#allocation18_spill] sm:$0xff] }
 0x44a   :  { %v9777_v54 = vpop.f32.mrf.mxu0  ;;  %v9704_v42 = vadd.f32 %v13834_v41, %v13833_v56 }
 0x44b   :  { %v7877_v11 = vmax.f32 %v7861_v40, 0.0  ;;  %v7839_v30 = vadd.f32 %v7807_v20, %v7036_v53  ;;  %v9778_v34 = vadd.f32 %v9777_v54, %v9776_v47 }
 0x44c   :  { %v9779_v23 = vpop.f32.mrf.mxu0  ;;  %v6950_v59 = vadd.f32 %v9704_v42, %v13835_v55 }
 0x44d   :  { %7893 = vst [vmem:[#allocation3 + $0x48] sm:$0xff] %v7877_v11  ;;  %v7862_v46 = vadd.f32 %v13664_v44, %v7839_v30  ;;  %v7810_v7 = vadd.f32 %v10090_v60, %v9778_v34 }
 0x44e   :  { %v9780_v4 = vpop.f32.mrf.mxu0  ;;  %v7047_v19 = vadd.f32 %v13650_v37, %v6950_v59 }
 0x44f   :  { %v7878_v35 = vmax.f32 %v7862_v46, 0.0  ;;  %v7840_v0 = vadd.f32 %v7810_v7, %v7039_v32  ;;  %v9781_v62 = vadd.f32 %v9780_v4, %v9779_v23 }
 0x450   :  { %v9782_v29 = vpop.f32.mrf.mxu0 }
 0x451   :  { %7894 = vst [vmem:[#allocation3 + $0x50] sm:$0xff] %v7878_v35  ;;  %v7863_v2 = vadd.f32 %v13664_v44, %v7840_v0  ;;  %v7815_v26 = vadd.f32 %v9781_v62, %v7814_v16 }
 0x452   :  { %v9783_v28 = vpop.f32.mrf.mxu0 }
 0x453   :  { %v7879_v60 = vmax.f32 %v7863_v2, 0.0  ;;  %v7841_v9 = vadd.f32 %v7815_v26, %v7044_v31  ;;  %v9784_v45 = vadd.f32 %v9783_v28, %v9782_v29 }
 0x454   :  { %v9785_v38 = vpop.f32.mrf.mxu0 }
 0x455   :  { %7895 = vst [vmem:[#allocation3 + $0x58] sm:$0xff] %v7879_v60  ;;  %v7864_v13 = vadd.f32 %v13664_v44, %v7841_v9  ;;  %v7818_v58 = vadd.f32 %v9784_v45, %v7817_v52 }
 0x456   :  { %v9786_v12 = vpop.f32.mrf.mxu0 }
 0x457   :  { %v7880_v48 = vmax.f32 %v7864_v13, 0.0  ;;  %v7842_v14 = vadd.f32 %v7818_v58, %v7047_v19  ;;  %v9787_v22 = vadd.f32 %v9786_v12, %v9785_v38 }
 0x458   :  { %v9788_v24 = vpop.f32.mrf.mxu0 }
 0x459   :  { %7896 = vst [vmem:[#allocation3 + $0x60] sm:$0xff] %v7880_v48  ;;  %v7865_v15 = vadd.f32 %v13664_v44, %v7842_v14  ;;  %v7823_v39 = vadd.f32 %v10093_v27, %v9787_v22 }
 0x45a   :  { %v9789_v51 = vpop.f32.mrf.mxu0 }
 0x45b   :  { %v7881_v18 = vmax.f32 %v7865_v15, 0.0  ;;  %v7843_v17 = vadd.f32 %v7823_v39, %v13648_v25  ;;  %v9790_v6 = vadd.f32 %v9789_v51, %v9788_v24 }
 0x45d   :  { %7897 = vst [vmem:[#allocation3 + $0x68] sm:$0xff] %v7881_v18  ;;  %v7866_v37 = vadd.f32 %v13664_v44, %v7843_v17  ;;  %v7826_v61 = vadd.f32 %v10094_v49, %v9790_v6 }
 0x45f   :  { %v7882_v10 = vmax.f32 %v7866_v37, 0.0  ;;  %v7844_v50 = vadd.f32 %v7826_v61, %v13836_v43 }
 0x461   :  { %7898 = vst [vmem:[#allocation3 + $0x70] sm:$0xff] %v7882_v10  ;;  %v7867_v47 = vadd.f32 %v13664_v44, %v7844_v50 }
 0x463   :  { %v7883_v63 = vmax.f32 %v7867_v47, 0.0 }
 0x465   :  { %7899 = vst [vmem:[#allocation3 + $0x78] sm:$0xff] %v7883_v63 }
 0x466   :  { %10692 = shalt.err (!%p10689_p4)
}
 0x467   :  { %s10705_s18 = smov 128   ;;  %s10706_s4 = smov 8  }
 0x468   :  { %7911 = dma.vmem_to_hbm [thread:$0]  %s7906_s16, 2048, %s13741_s7, [#allocation4], %s10705_s18, %s10705_s18, %s10706_s4  }
 0x469   :  { %10701 = dma.done.wait [#allocation4], 2048  }
 0x46a   :  { %10702 = vsyncadd [#allocation4], 4294965248 }
 0x46b   :  { %7915 = vsyncpa [#allocation4], 1 }

</bundles_post_ra>
